<compile_context>
chip_gen: v7x
topology: tpu7x:2x2x1
jax: 0.10.0
libtpu: 0.0.40
codegen_flags: <defaults>
</compile_context>

<pallas_src>
import functools

import jax
import jax.numpy as jnp
from jax.experimental import pallas as pl
from jax.experimental.pallas import tpu as pltpu


ROW_TILE_TARGET = 512     # rows per grid step for the row-parallel kernels
MLP_K_TILE = 512          # mlp_dim slice per reduction step in the fused MLP kernel


def _row_tile(R, target=ROW_TILE_TARGET):
    """Largest multiple-of-8 divisor of R that is <= min(target, R//2) (keeps >=2 grid
    steps so megacore can shard); falls back to R if R is too small to split."""
    cap = min(target, max(R // 2, 8))
    t = cap - cap % 8
    while t >= 8:
        if R % t == 0:
            return t
        t -= 8
    return R


def _mlp_k_tile(Dm, target=MLP_K_TILE):
    """Largest multiple-of-128 divisor of Dm that is <= target, else Dm (full)."""
    t = min(target, Dm)
    t -= t % 128
    while t >= 128:
        if Dm % t == 0:
            return t
        t -= 128
    return Dm


def _est_vmem(*block_bytes):
    # 2x for double-buffering of every pipelined block + 1 MiB slack.
    return 2 * sum(int(b) for b in block_bytes) + (1 << 20)


def _cparams(semantics, est_bytes):
    # Raise the scoped-VMEM cap (defaults: 16 MiB v5e / 32 MiB v6e,v7x) but stay well
    # inside v7x's 64 MiB physical VMEM.
    limit = int(min(max(est_bytes, 32 * 1024 * 1024), 56 * 1024 * 1024))
    return pltpu.CompilerParams(dimension_semantics=semantics, vmem_limit_bytes=limit)


# --------------------------- fused Pallas kernels ---------------------------

def _ln_qkv_kernel(x_ref, g_ref, b_ref, w_ref, bias_ref, o_ref, *, eps):
    """LayerNorm -> fused QKV projection. fp32 LN stats, bf16 MXU operands, fp32 acc."""
    x = x_ref[...].astype(jnp.float32)                                   # (tr, D)
    mean = jnp.mean(x, axis=-1, keepdims=True)
    var = jnp.mean(jnp.square(x - mean), axis=-1, keepdims=True)
    xn = (x - mean) * jax.lax.rsqrt(var + eps)
    xn = xn * g_ref[...] + b_ref[...]                                    # fp32 elementwise
    y = jnp.dot(xn.astype(w_ref.dtype), w_ref[...],                      # bf16 @ bf16 on MXU
                preferred_element_type=jnp.float32)                      # (tr, 3D) fp32
    o_ref[...] = (y + bias_ref[...]).astype(o_ref.dtype)


def _attn_kernel(q_ref, k_ref, v_ref, res_ref, wo_ref, bo_ref, o_ref, acc_ref, *, n_head):
    """One (batch, head) step: QK^T -> softmax -> PV -> per-head out-projection,
    accumulated over heads into an fp32 VMEM scratch; residual+bias added at head 0,
    result stored at the last head. 1/sqrt(hd) is folded into the Q weight columns."""
    h = pl.program_id(1)

    @pl.when(h == 0)
    def _():
        acc_ref[...] = res_ref[0].astype(jnp.float32) + bo_ref[...]

    q = q_ref[0, 0]                                                      # (S, hd) bf16
    k = k_ref[0, 0]
    v = v_ref[0, 0]
    s = jax.lax.dot_general(q, k, (((1,), (1,)), ((), ())),
                            preferred_element_type=jnp.float32)          # (S, S) fp32
    s = s - jnp.max(s, axis=-1, keepdims=True)
    p = jnp.exp(s)
    l = jnp.sum(p, axis=-1, keepdims=True)
    o_h = jnp.dot(p.astype(v.dtype), v, preferred_element_type=jnp.float32)   # bf16 p @ v
    o_h = o_h * pl.reciprocal(l, approx=True)                            # (S, hd) fp32
    acc_ref[...] += jnp.dot(o_h.astype(wo_ref.dtype), wo_ref[0],
                            preferred_element_type=jnp.float32)          # (S, D)

    @pl.when(h == n_head - 1)
    def _():
        o_ref[0] = acc_ref[...].astype(o_ref.dtype)


def _ln_mlp_residual_kernel(h_ref, g_ref, b_ref, w1_ref, b1_ref, w2_ref, b2_ref,
                            o_ref, acc_ref, xn_ref, *, eps):
    """LayerNorm -> fc1 -> gelu_pytorch_tanh -> fc2 -> residual, K-tiled over mlp_dim.
    fp32 accumulator in VMEM; normalized activations cached in bf16 across K steps."""
    k = pl.program_id(1)
    nk = pl.num_programs(1)

    @pl.when(k == 0)
    def _():
        h = h_ref[...].astype(jnp.float32)                               # (tr, D)
        mean = jnp.mean(h, axis=-1, keepdims=True)
        var = jnp.mean(jnp.square(h - mean), axis=-1, keepdims=True)
        xn = (h - mean) * jax.lax.rsqrt(var + eps)
        xn = xn * g_ref[...] + b_ref[...]
        xn_ref[...] = xn.astype(xn_ref.dtype)                            # bf16 MXU operand
        acc_ref[...] = h + b2_ref[...]                                   # residual + fc2 bias

    z = jnp.dot(xn_ref[...], w1_ref[...],
                preferred_element_type=jnp.float32) + b1_ref[...]        # (tr, tk) fp32
    c = jnp.float32(0.7978845608028654)                                  # sqrt(2/pi)
    z = 0.5 * z * (1.0 + jnp.tanh(c * (z + 0.044715 * z * z * z)))       # gelu tanh, fp32
    acc_ref[...] += jnp.dot(z.astype(w2_ref.dtype), w2_ref[...],
                            preferred_element_type=jnp.float32)

    @pl.when(k == nk - 1)
    def _():
        o_ref[...] = acc_ref[...].astype(o_ref.dtype)


def _layernorm_kernel(x_ref, g_ref, b_ref, o_ref, *, eps):
    x = x_ref[...].astype(jnp.float32)
    mean = jnp.mean(x, axis=-1, keepdims=True)
    var = jnp.mean(jnp.square(x - mean), axis=-1, keepdims=True)
    xn = (x - mean) * jax.lax.rsqrt(var + eps)
    o_ref[...] = (xn * g_ref[...] + b_ref[...]).astype(o_ref.dtype)


# --------------------------- pallas_call wrappers ---------------------------

def ln_qkv(x2d, g, b, wqkv, bqkv, eps):
    R, D = x2d.shape
    D3 = wqkv.shape[1]
    tr = _row_tile(R)
    est = _est_vmem(tr * D * x2d.dtype.itemsize, D * D3 * wqkv.dtype.itemsize,
                    tr * D3 * 2, (2 * D + D3) * 4)
    return pl.pallas_call(
        functools.partial(_ln_qkv_kernel, eps=eps),
        out_shape=jax.ShapeDtypeStruct((R, D3), jnp.bfloat16),
        grid=(R // tr,),
        in_specs=[
            pl.BlockSpec((tr, D), lambda r: (r, 0)),
            pl.BlockSpec((1, D), lambda r: (0, 0)),
            pl.BlockSpec((1, D), lambda r: (0, 0)),
            pl.BlockSpec((D, D3), lambda r: (0, 0)),    # bf16 weight, VMEM-resident
            pl.BlockSpec((1, D3), lambda r: (0, 0)),
        ],
        out_specs=pl.BlockSpec((tr, D3), lambda r: (r, 0)),
        compiler_params=_cparams(("parallel",), est),
    )(x2d, g, b, wqkv, bqkv)


def attention_out_residual(qkv_heads, res, wo_heads, bo, n_head):
    """qkv_heads: (3*H, B, S, hd) bf16, head-major. res: (B, S, D) bf16."""
    _, B, S, hd = qkv_heads.shape
    D = n_head * hd
    est = _est_vmem(3 * S * hd * 2, 2 * S * D * res.dtype.itemsize,
                    hd * D * 2, D * 4, S * D * 4)
    return pl.pallas_call(
        functools.partial(_attn_kernel, n_head=n_head),
        out_shape=jax.ShapeDtypeStruct((B, S, D), res.dtype),
        grid=(B, n_head),
        in_specs=[
            pl.BlockSpec((1, 1, S, hd), lambda b, h: (h, b, 0, 0)),               # Q head h
            pl.BlockSpec((1, 1, S, hd), lambda b, h: (n_head + h, b, 0, 0)),      # K head h
            pl.BlockSpec((1, 1, S, hd), lambda b, h: (2 * n_head + h, b, 0, 0)),  # V head h
            pl.BlockSpec((1, S, D), lambda b, h: (b, 0, 0)),                      # residual
            pl.BlockSpec((1, hd, D), lambda b, h: (h, 0, 0)),                     # wo[h]
            pl.BlockSpec((1, D), lambda b, h: (0, 0)),
        ],
        out_specs=pl.BlockSpec((1, S, D), lambda b, h: (b, 0, 0)),
        scratch_shapes=[pltpu.VMEM((S, D), jnp.float32)],
        compiler_params=_cparams(("parallel", "arbitrary"), est),
    )(qkv_heads, qkv_heads, qkv_heads, res, wo_heads, bo)


def ln_mlp_residual(h2d, g, b, w1, b1, w2, b2, eps):
    R, D = h2d.shape
    Dm = w1.shape[1]
    tr = _row_tile(R)
    tk = _mlp_k_tile(Dm)
    est = _est_vmem(tr * D * h2d.dtype.itemsize, D * tk * w1.dtype.itemsize,
                    tk * D * w2.dtype.itemsize, tr * D * 2,
                    (tk + 3 * D) * 4, tr * D * 4 + tr * D * 2)
    return pl.pallas_call(
        functools.partial(_ln_mlp_residual_kernel, eps=eps),
        out_shape=jax.ShapeDtypeStruct((R, D), jnp.bfloat16),
        grid=(R // tr, Dm // tk),
        in_specs=[
            pl.BlockSpec((tr, D), lambda r, k: (r, 0)),
            pl.BlockSpec((1, D), lambda r, k: (0, 0)),
            pl.BlockSpec((1, D), lambda r, k: (0, 0)),
            pl.BlockSpec((D, tk), lambda r, k: (0, k)),   # fc1 weight K-slice
            pl.BlockSpec((1, tk), lambda r, k: (0, k)),
            pl.BlockSpec((tk, D), lambda r, k: (k, 0)),   # fc2 weight K-slice
            pl.BlockSpec((1, D), lambda r, k: (0, 0)),
        ],
        out_specs=pl.BlockSpec((tr, D), lambda r, k: (r, 0)),
        scratch_shapes=[pltpu.VMEM((tr, D), jnp.float32),    # fp32 accumulator
                        pltpu.VMEM((tr, D), jnp.bfloat16)],  # cached LN(x) in bf16
        compiler_params=_cparams(("parallel", "arbitrary"), est),
    )(h2d, g, b, w1, b1, w2, b2)


def layernorm_rows(x2d, g, b, eps):
    R, D = x2d.shape
    tr = _row_tile(R)
    est = _est_vmem(tr * D * x2d.dtype.itemsize, tr * D * 4, 2 * D * 4)
    return pl.pallas_call(
        functools.partial(_layernorm_kernel, eps=eps),
        out_shape=jax.ShapeDtypeStruct((R, D), jnp.float32),   # fp32 API contract
        grid=(R // tr,),
        in_specs=[
            pl.BlockSpec((tr, D), lambda r: (r, 0)),
            pl.BlockSpec((1, D), lambda r: (0, 0)),
            pl.BlockSpec((1, D), lambda r: (0, 0)),
        ],
        out_specs=pl.BlockSpec((tr, D), lambda r: (r, 0)),
        compiler_params=_cparams(("parallel",), est),
    )(x2d, g, b)


# ------------------------------- model glue ---------------------------------

def prepare_params(raw, n_head):
    """One-time parameter packing (outside the jitted forward):
    fuse QKV and fold 1/sqrt(hd) into the Q columns, reshape wo head-major,
    cast all matmul weights and the embeddings to bf16 (MXU-native)."""
    def pack_layer(p):
        D = p["wq"].shape[0]
        hd = D // n_head
        scale = 1.0 / float(hd) ** 0.5
        wqkv = jnp.concatenate([p["wq"] * scale, p["wk"], p["wv"]],
                               axis=1).astype(jnp.bfloat16)               # (D, 3D)
        bqkv = jnp.concatenate([p["bq"] * scale, p["bk"], p["bv"]], axis=1)  # fp32, post-MXU
        wo_heads = p["wo"].reshape(n_head, hd, D).astype(jnp.bfloat16)    # (H, hd, D)
        return {
            "ln1_g": p["ln1_g"], "ln1_b": p["ln1_b"],
            "wqkv": wqkv, "bqkv": bqkv,
            "wo_heads": wo_heads, "bo": p["bo"],
            "ln2_g": p["ln2_g"], "ln2_b": p["ln2_b"],
            "fc1_w": p["fc1_w"].astype(jnp.bfloat16), "fc1_b": p["fc1_b"],
            "fc2_w": p["fc2_w"].astype(jnp.bfloat16), "fc2_b": p["fc2_b"],
        }
    return {
        "tok_emb": raw["tok_emb"].astype(jnp.bfloat16),
        "pos_emb": raw["pos_emb"].astype(jnp.bfloat16),
        "layers": [pack_layer(p) for p in raw["layers"]],
        "fln_g": raw["fln_g"], "fln_b": raw["fln_b"],
        "head_w": raw["head_w"], "head_b": raw["head_b"],
    }


def siglip_encoder_layer(x, p, n_head, eps=1e-6):
    B, S, D = x.shape
    R = B * S
    hd = D // n_head
    qkv = ln_qkv(x.reshape(R, D), p["ln1_g"], p["ln1_b"], p["wqkv"], p["bqkv"], eps)  # (R, 3D) bf16
    # Head-major relayout done once per layer in XLA (a single HBM transpose pass) so the
    # attention kernel sees (S, hd) blocks and never slices / concatenates along lanes.
    qkv_heads = qkv.reshape(B, S, 3 * n_head, hd).transpose(2, 0, 1, 3)               # (3H, B, S, hd)
    h = attention_out_residual(qkv_heads, x, p["wo_heads"], p["bo"], n_head)           # (B, S, D) bf16
    out = ln_mlp_residual(h.reshape(R, D), p["ln2_g"], p["ln2_b"],
                          p["fc1_w"], p["fc1_b"], p["fc2_w"], p["fc2_b"], eps)
    return out.reshape(B, S, D)


def siglip_text_model(input_ids, params, *, n_head):
    # TODO(synk): tokenizer (string processing) and pretrained-weight loading are host-side;
    # synthetic ids/weights stand in. Embedding gather stays in XLA (no dense-BlockSpec form).
    x = (jnp.take(params["tok_emb"], input_ids, axis=0)
         + params["pos_emb"][None, :, :]).astype(jnp.bfloat16)

    for lp in params["layers"]:
        x = siglip_encoder_layer(x, lp, n_head)

    B, S, D = x.shape
    last_hidden = layernorm_rows(x.reshape(B * S, D),
                                 params["fln_g"], params["fln_b"], 1e-6).reshape(B, S, D)
    # "Sticky EOS" pooling + head: only B rows — left to XLA (a dedicated pallas_call would be
    # dominated by per-launch overhead and an extra weight DMA).
    pooled = last_hidden[:, -1, :] @ params["head_w"] + params["head_b"]
    return pooled, last_hidden


def init_params(key, vocab, seq_len, d_model, mlp_dim, n_layers):
    std = 0.02
    keys = iter(jax.random.split(key, 16 + 16 * n_layers))

    def w(shape):
        return std * jax.random.normal(next(keys), shape, jnp.float32)

    def b(n):
        return std * jax.random.normal(next(keys), (1, n), jnp.float32)

    def layer():
        return {
            "ln1_g": jnp.ones((1, d_model), jnp.float32),
            "ln1_b": jnp.zeros((1, d_model), jnp.float32),
            "wq": w((d_model, d_model)), "bq": b(d_model),
            "wk": w((d_model, d_model)), "bk": b(d_model),
            "wv": w((d_model, d_model)), "bv": b(d_model),
            "wo": w((d_model, d_model)), "bo": b(d_model),
            "ln2_g": jnp.ones((1, d_model), jnp.float32),
            "ln2_b": jnp.zeros((1, d_model), jnp.float32),
            "fc1_w": w((d_model, mlp_dim)), "fc1_b": b(mlp_dim),
            "fc2_w": w((mlp_dim, d_model)), "fc2_b": b(d_model),
        }

    return {
        "tok_emb": w((vocab, d_model)),
        "pos_emb": w((seq_len, d_model)),
        "layers": [layer() for _ in range(n_layers)],
        "fln_g": jnp.ones((1, d_model), jnp.float32),
        "fln_b": jnp.zeros((1, d_model), jnp.float32),
        "head_w": w((d_model, d_model)),
        "head_b": b(d_model),
    }


if __name__ == "__main__":
    # Small shapes consistent with a SigLIP text model (seq len 64); mlp_dim chosen so the
    # K-tiled MLP reduction runs with 2 accumulation steps.
    B, S = 4, 64
    vocab, d_model, n_head, mlp_dim, n_layers = 256, 128, 4, 1024, 2

    key = jax.random.PRNGKey(0)
    k_ids, k_params = jax.random.split(key)
    input_ids = jax.random.randint(k_ids, (B, S), 0, vocab, dtype=jnp.int32)
    raw_params = init_params(k_params, vocab, S, d_model, mlp_dim, n_layers)
    params = prepare_params(raw_params, n_head)      # one-time packing, outside the forward jit

    fwd = jax.jit(functools.partial(siglip_text_model, n_head=n_head))
    pooled, last_hidden = fwd(input_ids, params)
    jax.block_until_ready((pooled, last_hidden))

    assert pooled.shape == (B, d_model) and pooled.dtype == jnp.float32
    assert last_hidden.shape == (B, S, d_model) and last_hidden.dtype == jnp.float32
    print("KERNEL_OK")
</pallas_src>

<mosaic_0001>
module attributes {stable_mosaic.version = 11 : i64} {
  func.func @_ln_qkv_kernel(%arg0: i32, %arg1: memref<128x128xbf16, #tpu.memory_space<vmem>>, %arg2: memref<1x128xf32, #tpu.memory_space<vmem>>, %arg3: memref<1x128xf32, #tpu.memory_space<vmem>>, %arg4: memref<128x384xbf16, #tpu.memory_space<vmem>>, %arg5: memref<1x384xf32, #tpu.memory_space<vmem>>, %arg6: memref<128x384xbf16, #tpu.memory_space<vmem>>) attributes {dimension_semantics = [#tpu.dimension_semantics<parallel>], iteration_bounds = array<i64: 2>, scalar_prefetch = 0 : i64, scratch_operands = 0 : i64, tpu.core_type = #tpu.core_type<tc>, window_params = [{transform_indices = @transform_0, window_bounds = array<i64: 128, 128>}, {pipeline_mode = #tpu.pipeline_mode<synchronous>, transform_indices = @transform_1, window_bounds = array<i64: 1, 128>}, {pipeline_mode = #tpu.pipeline_mode<synchronous>, transform_indices = @transform_2, window_bounds = array<i64: 1, 128>}, {pipeline_mode = #tpu.pipeline_mode<synchronous>, transform_indices = @transform_3, window_bounds = array<i64: 128, 384>}, {pipeline_mode = #tpu.pipeline_mode<synchronous>, transform_indices = @transform_4, window_bounds = array<i64: 1, 384>}, {transform_indices = @transform_5, window_bounds = array<i64: 128, 384>}]} {
    %c0 = arith.constant 0 : index
    %c0_0 = arith.constant 0 : index
    %0 = vector.load %arg1[%c0, %c0_0] : memref<128x128xbf16, #tpu.memory_space<vmem>>, vector<128x128xbf16>
    %1 = arith.extf %0 : vector<128x128xbf16> to vector<128x128xf32>
    %cst = arith.constant dense<0.000000e+00> : vector<128xf32>
    %2 = vector.multi_reduction <add>, %1, %cst [1] : vector<128x128xf32> to vector<128xf32>
    %3 = vector.shape_cast %2 : vector<128xf32> to vector<128x1xf32>
    %cst_1 = arith.constant 1.280000e+02 : f32
    %4 = vector.broadcast %cst_1 : f32 to vector<128x1xf32>
    %5 = arith.divf %3, %4 : vector<128x1xf32>
    %6 = vector.broadcast %5 : vector<128x1xf32> to vector<128x128xf32>
    %7 = arith.subf %1, %6 : vector<128x128xf32>
    %8 = arith.mulf %7, %7 : vector<128x128xf32>
    %cst_2 = arith.constant dense<0.000000e+00> : vector<128xf32>
    %9 = vector.multi_reduction <add>, %8, %cst_2 [1] : vector<128x128xf32> to vector<128xf32>
    %10 = vector.shape_cast %9 : vector<128xf32> to vector<128x1xf32>
    %cst_3 = arith.constant 1.280000e+02 : f32
    %11 = vector.broadcast %cst_3 : f32 to vector<128x1xf32>
    %12 = arith.divf %10, %11 : vector<128x1xf32>
    %13 = vector.broadcast %5 : vector<128x1xf32> to vector<128x128xf32>
    %14 = arith.subf %1, %13 : vector<128x128xf32>
    %cst_4 = arith.constant 9.99999997E-7 : f32
    %15 = vector.broadcast %cst_4 : f32 to vector<128x1xf32>
    %16 = arith.addf %12, %15 : vector<128x1xf32>
    %17 = math.rsqrt %16 : vector<128x1xf32>
    %18 = vector.broadcast %17 : vector<128x1xf32> to vector<128x128xf32>
    %19 = arith.mulf %14, %18 : vector<128x128xf32>
    %c0_5 = arith.constant 0 : index
    %c0_6 = arith.constant 0 : index
    %20 = vector.load %arg2[%c0_5, %c0_6] : memref<1x128xf32, #tpu.memory_space<vmem>>, vector<1x128xf32>
    %21 = vector.broadcast %20 : vector<1x128xf32> to vector<128x128xf32>
    %22 = arith.mulf %19, %21 : vector<128x128xf32>
    %c0_7 = arith.constant 0 : index
    %c0_8 = arith.constant 0 : index
    %23 = vector.load %arg3[%c0_7, %c0_8] : memref<1x128xf32, #tpu.memory_space<vmem>>, vector<1x128xf32>
    %24 = vector.broadcast %23 : vector<1x128xf32> to vector<128x128xf32>
    %25 = arith.addf %22, %24 : vector<128x128xf32>
    %26 = arith.truncf %25 : vector<128x128xf32> to vector<128x128xbf16>
    %c0_9 = arith.constant 0 : index
    %c0_10 = arith.constant 0 : index
    %27 = vector.load %arg4[%c0_9, %c0_10] : memref<128x384xbf16, #tpu.memory_space<vmem>>, vector<128x384xbf16>
    %cst_11 = arith.constant dense<0.000000e+00> : vector<128x384xf32>
    %28 = tpu.matmul %26, %27, %cst_11 {dimension_numbers = #tpu.dot_dimension_numbers<[1], [0], [0], [1], [0, 0, 1, 1], [], []>} : vector<128x128xbf16>, vector<128x384xbf16>, vector<128x384xf32> -> vector<128x384xf32>
    %c0_12 = arith.constant 0 : index
    %c0_13 = arith.constant 0 : index
    %29 = vector.load %arg5[%c0_12, %c0_13] : memref<1x384xf32, #tpu.memory_space<vmem>>, vector<1x384xf32>
    %30 = vector.broadcast %29 : vector<1x384xf32> to vector<128x384xf32>
    %31 = arith.addf %28, %30 : vector<128x384xf32>
    %32 = arith.truncf %31 : vector<128x384xf32> to vector<128x384xbf16>
    %c0_14 = arith.constant 0 : index
    %c0_15 = arith.constant 0 : index
    %33 = vector.load %arg6[%c0_14, %c0_15] : memref<128x384xbf16, #tpu.memory_space<vmem>>, vector<128x384xbf16>
    tpu.vector_store %arg6[%c0_14, %c0_15], %32 {strides = array<i32>} : memref<128x384xbf16, #tpu.memory_space<vmem>>, vector<128x384xbf16>,
    return
  }
  func.func @transform_0(%arg0: i32) -> (i32, i32) {
    %c0_i32 = arith.constant 0 : i32
    %c0_i32_0 = arith.constant 0 : i32
    return %arg0, %c0_i32 : i32, i32
  }
  func.func @transform_1(%arg0: i32) -> (i32, i32) {
    %c0_i32 = arith.constant 0 : i32
    %c0_i32_0 = arith.constant 0 : i32
    %c0_i32_1 = arith.constant 0 : i32
    return %c0_i32, %c0_i32_0 : i32, i32
  }
  func.func @transform_2(%arg0: i32) -> (i32, i32) {
    %c0_i32 = arith.constant 0 : i32
    %c0_i32_0 = arith.constant 0 : i32
    %c0_i32_1 = arith.constant 0 : i32
    return %c0_i32, %c0_i32_0 : i32, i32
  }
  func.func @transform_3(%arg0: i32) -> (i32, i32) {
    %c0_i32 = arith.constant 0 : i32
    %c0_i32_0 = arith.constant 0 : i32
    %c0_i32_1 = arith.constant 0 : i32
    return %c0_i32, %c0_i32_0 : i32, i32
  }
  func.func @transform_4(%arg0: i32) -> (i32, i32) {
    %c0_i32 = arith.constant 0 : i32
    %c0_i32_0 = arith.constant 0 : i32
    %c0_i32_1 = arith.constant 0 : i32
    return %c0_i32, %c0_i32_0 : i32, i32
  }
  func.func @transform_5(%arg0: i32) -> (i32, i32) {
    %c0_i32 = arith.constant 0 : i32
    %c0_i32_0 = arith.constant 0 : i32
    return %arg0, %c0_i32 : i32, i32
  }
}

module attributes {stable_mosaic.version = 11 : i64} {
  func.func @_attn_kernel(%arg0: i32, %arg1: i32, %arg2: memref<1x1x64x32xbf16, #tpu.memory_space<vmem>>, %arg3: memref<1x1x64x32xbf16, #tpu.memory_space<vmem>>, %arg4: memref<1x1x64x32xbf16, #tpu.memory_space<vmem>>, %arg5: memref<1x64x128xbf16, #tpu.memory_space<vmem>>, %arg6: memref<1x32x128xbf16, #tpu.memory_space<vmem>>, %arg7: memref<1x128xf32, #tpu.memory_space<vmem>>, %arg8: memref<1x64x128xbf16, #tpu.memory_space<vmem>>, %arg9: memref<64x128xf32, #tpu.memory_space<vmem>>) attributes {dimension_semantics = [#tpu.dimension_semantics<parallel>, #tpu.dimension_semantics<arbitrary>], iteration_bounds = array<i64: 4, 4>, scalar_prefetch = 0 : i64, scratch_operands = 1 : i64, tpu.core_type = #tpu.core_type<tc>, window_params = [{transform_indices = @transform_0, window_bounds = array<i64: 1, 1, 64, 32>}, {transform_indices = @transform_1, window_bounds = array<i64: 1, 1, 64, 32>}, {transform_indices = @transform_2, window_bounds = array<i64: 1, 1, 64, 32>}, {transform_indices = @transform_3, window_bounds = array<i64: 1, 64, 128>}, {transform_indices = @transform_4, window_bounds = array<i64: 1, 32, 128>}, {pipeline_mode = #tpu.pipeline_mode<synchronous>, transform_indices = @transform_5, window_bounds = array<i64: 1, 128>}, {transform_indices = @transform_6, window_bounds = array<i64: 1, 64, 128>}]} {
    %c0_i32 = arith.constant 0 : i32
    %0 = arith.cmpi eq, %arg1, %c0_i32 : i32
    %1 = arith.extui %0 : i1 to i32
    %c0_i32_0 = arith.constant 0 : i32
    %2 = arith.cmpi ne, %1, %c0_i32_0 : i32
    scf.if %2 {
      %c0_24 = arith.constant 0 : index
      %c0_25 = arith.constant 0 : index
      %c0_26 = arith.constant 0 : index
      %32 = vector.load %arg5[%c0_24, %c0_25, %c0_26] : memref<1x64x128xbf16, #tpu.memory_space<vmem>>, vector<1x64x128xbf16>
      %33 = vector.shape_cast %32 : vector<1x64x128xbf16> to vector<64x128xbf16>
      %34 = arith.extf %33 : vector<64x128xbf16> to vector<64x128xf32>
      %c0_27 = arith.constant 0 : index
      %c0_28 = arith.constant 0 : index
      %35 = vector.load %arg7[%c0_27, %c0_28] : memref<1x128xf32, #tpu.memory_space<vmem>>, vector<1x128xf32>
      %36 = vector.broadcast %35 : vector<1x128xf32> to vector<64x128xf32>
      %37 = arith.addf %34, %36 : vector<64x128xf32>
      %c0_29 = arith.constant 0 : index
      %c0_30 = arith.constant 0 : index
      %38 = vector.load %arg9[%c0_29, %c0_30] : memref<64x128xf32, #tpu.memory_space<vmem>>, vector<64x128xf32>
      tpu.vector_store %arg9[%c0_29, %c0_30], %37 {strides = array<i32>} : memref<64x128xf32, #tpu.memory_space<vmem>>, vector<64x128xf32>,
    } else {
    }
    %c0 = arith.constant 0 : index
    %c0_1 = arith.constant 0 : index
    %c0_2 = arith.constant 0 : index
    %c0_3 = arith.constant 0 : index
    %3 = vector.load %arg2[%c0, %c0_1, %c0_2, %c0_3] : memref<1x1x64x32xbf16, #tpu.memory_space<vmem>>, vector<1x1x64x32xbf16>
    %4 = vector.shape_cast %3 : vector<1x1x64x32xbf16> to vector<64x32xbf16>
    %c0_4 = arith.constant 0 : index
    %c0_5 = arith.constant 0 : index
    %c0_6 = arith.constant 0 : index
    %c0_7 = arith.constant 0 : index
    %5 = vector.load %arg3[%c0_4, %c0_5, %c0_6, %c0_7] : memref<1x1x64x32xbf16, #tpu.memory_space<vmem>>, vector<1x1x64x32xbf16>
    %6 = vector.shape_cast %5 : vector<1x1x64x32xbf16> to vector<64x32xbf16>
    %c0_8 = arith.constant 0 : index
    %c0_9 = arith.constant 0 : index
    %c0_10 = arith.constant 0 : index
    %c0_11 = arith.constant 0 : index
    %7 = vector.load %arg4[%c0_8, %c0_9, %c0_10, %c0_11] : memref<1x1x64x32xbf16, #tpu.memory_space<vmem>>, vector<1x1x64x32xbf16>
    %8 = vector.shape_cast %7 : vector<1x1x64x32xbf16> to vector<64x32xbf16>
    %cst = arith.constant dense<0.000000e+00> : vector<64x64xf32>
    %9 = tpu.matmul %4, %6, %cst {dimension_numbers = #tpu.dot_dimension_numbers<[1], [1], [0], [0], [0, 0, 1, 0], [], []>} : vector<64x32xbf16>, vector<64x32xbf16>, vector<64x64xf32> -> vector<64x64xf32>
    %cst_12 = arith.constant dense<0xFF800000> : vector<64xf32>
    %10 = vector.multi_reduction <maximumf>, %9, %cst_12 [1] : vector<64x64xf32> to vector<64xf32>
    %11 = vector.shape_cast %10 : vector<64xf32> to vector<64x1xf32>
    %12 = vector.broadcast %11 : vector<64x1xf32> to vector<64x64xf32>
    %13 = arith.subf %9, %12 : vector<64x64xf32>
    %14 = math.exp %13 : vector<64x64xf32>
    %cst_13 = arith.constant dense<0.000000e+00> : vector<64xf32>
    %15 = vector.multi_reduction <add>, %14, %cst_13 [1] : vector<64x64xf32> to vector<64xf32>
    %16 = vector.shape_cast %15 : vector<64xf32> to vector<64x1xf32>
    %17 = arith.truncf %14 : vector<64x64xf32> to vector<64x64xbf16>
    %cst_14 = arith.constant dense<0.000000e+00> : vector<64x32xf32>
    %18 = tpu.matmul %17, %8, %cst_14 {dimension_numbers = #tpu.dot_dimension_numbers<[1], [0], [0], [1], [0, 0, 1, 1], [], []>} : vector<64x64xbf16>, vector<64x32xbf16>, vector<64x32xf32> -> vector<64x32xf32>
    %19 = tpu.reciprocal %16 {approx = true} : vector<64x1xf32> -> vector<64x1xf32>
    %20 = vector.broadcast %19 : vector<64x1xf32> to vector<64x32xf32>
    %21 = arith.mulf %18, %20 : vector<64x32xf32>
    %c0_15 = arith.constant 0 : index
    %c0_16 = arith.constant 0 : index
    %22 = vector.load %arg9[%c0_15, %c0_16] : memref<64x128xf32, #tpu.memory_space<vmem>>, vector<64x128xf32>
    %23 = arith.truncf %21 : vector<64x32xf32> to vector<64x32xbf16>
    %c0_17 = arith.constant 0 : index
    %c0_18 = arith.constant 0 : index
    %c0_19 = arith.constant 0 : index
    %24 = vector.load %arg6[%c0_17, %c0_18, %c0_19] : memref<1x32x128xbf16, #tpu.memory_space<vmem>>, vector<1x32x128xbf16>
    %25 = vector.shape_cast %24 : vector<1x32x128xbf16> to vector<32x128xbf16>
    %cst_20 = arith.constant dense<0.000000e+00> : vector<64x128xf32>
    %26 = tpu.matmul %23, %25, %cst_20 {dimension_numbers = #tpu.dot_dimension_numbers<[1], [0], [0], [1], [0, 0, 1, 1], [], []>} : vector<64x32xbf16>, vector<32x128xbf16>, vector<64x128xf32> -> vector<64x128xf32>
    %27 = arith.addf %22, %26 : vector<64x128xf32>
    %c0_21 = arith.constant 0 : index
    %c0_22 = arith.constant 0 : index
    %28 = vector.load %arg9[%c0_21, %c0_22] : memref<64x128xf32, #tpu.memory_space<vmem>>, vector<64x128xf32>
    tpu.vector_store %arg9[%c0_21, %c0_22], %27 {strides = array<i32>} : memref<64x128xf32, #tpu.memory_space<vmem>>, vector<64x128xf32>,
    %c3_i32 = arith.constant 3 : i32
    %29 = arith.cmpi eq, %arg1, %c3_i32 : i32
    %30 = arith.extui %29 : i1 to i32
    %c0_i32_23 = arith.constant 0 : i32
    %31 = arith.cmpi ne, %30, %c0_i32_23 : i32
    scf.if %31 {
      %c0_24 = arith.constant 0 : index
      %c0_25 = arith.constant 0 : index
      %32 = vector.load %arg9[%c0_24, %c0_25] : memref<64x128xf32, #tpu.memory_space<vmem>>, vector<64x128xf32>
      %33 = arith.truncf %32 : vector<64x128xf32> to vector<64x128xbf16>
      %c0_26 = arith.constant 0 : index
      %c0_27 = arith.constant 0 : index
      %c0_28 = arith.constant 0 : index
      %34 = vector.load %arg8[%c0_26, %c0_27, %c0_28] : memref<1x64x128xbf16, #tpu.memory_space<vmem>>, vector<1x64x128xbf16>
      %35 = vector.shape_cast %34 : vector<1x64x128xbf16> to vector<64x128xbf16>
      %36 = vector.shape_cast %33 : vector<64x128xbf16> to vector<1x64x128xbf16>
      tpu.vector_store %arg8[%c0_26, %c0_27, %c0_28], %36 {strides = array<i32>} : memref<1x64x128xbf16, #tpu.memory_space<vmem>>, vector<1x64x128xbf16>,
    } else {
    }
    return
  }
  func.func @transform_0(%arg0: i32, %arg1: i32) -> (i32, i32, i32, i32) {
    %c0_i32 = arith.constant 0 : i32
    %c0_i32_0 = arith.constant 0 : i32
    %c0_i32_1 = arith.constant 0 : i32
    return %arg1, %arg0, %c0_i32, %c0_i32_0 : i32, i32, i32, i32
  }
  func.func @transform_1(%arg0: i32, %arg1: i32) -> (i32, i32, i32, i32) {
    %c4_i32 = arith.constant 4 : i32
    %0 = arith.addi %c4_i32, %arg1 : i32
    %c0_i32 = arith.constant 0 : i32
    %c0_i32_0 = arith.constant 0 : i32
    %c0_i32_1 = arith.constant 0 : i32
    return %0, %arg0, %c0_i32, %c0_i32_0 : i32, i32, i32, i32
  }
  func.func @transform_2(%arg0: i32, %arg1: i32) -> (i32, i32, i32, i32) {
    %c8_i32 = arith.constant 8 : i32
    %0 = arith.addi %c8_i32, %arg1 : i32
    %c0_i32 = arith.constant 0 : i32
    %c0_i32_0 = arith.constant 0 : i32
    %c0_i32_1 = arith.constant 0 : i32
    return %0, %arg0, %c0_i32, %c0_i32_0 : i32, i32, i32, i32
  }
  func.func @transform_3(%arg0: i32, %arg1: i32) -> (i32, i32, i32) {
    %c0_i32 = arith.constant 0 : i32
    %c0_i32_0 = arith.constant 0 : i32
    %c0_i32_1 = arith.constant 0 : i32
    return %arg0, %c0_i32, %c0_i32_0 : i32, i32, i32
  }
  func.func @transform_4(%arg0: i32, %arg1: i32) -> (i32, i32, i32) {
    %c0_i32 = arith.constant 0 : i32
    %c0_i32_0 = arith.constant 0 : i32
    %c0_i32_1 = arith.constant 0 : i32
    return %arg1, %c0_i32, %c0_i32_0 : i32, i32, i32
  }
  func.func @transform_5(%arg0: i32, %arg1: i32) -> (i32, i32) {
    %c0_i32 = arith.constant 0 : i32
    %c0_i32_0 = arith.constant 0 : i32
    %c0_i32_1 = arith.constant 0 : i32
    return %c0_i32, %c0_i32_0 : i32, i32
  }
  func.func @transform_6(%arg0: i32, %arg1: i32) -> (i32, i32, i32) {
    %c0_i32 = arith.constant 0 : i32
    %c0_i32_0 = arith.constant 0 : i32
    %c0_i32_1 = arith.constant 0 : i32
    return %arg0, %c0_i32, %c0_i32_0 : i32, i32, i32
  }
}

module attributes {stable_mosaic.version = 11 : i64} {
  func.func @_layernorm_kernel(%arg0: i32, %arg1: memref<128x128xbf16, #tpu.memory_space<vmem>>, %arg2: memref<1x128xf32, #tpu.memory_space<vmem>>, %arg3: memref<1x128xf32, #tpu.memory_space<vmem>>, %arg4: memref<128x128xf32, #tpu.memory_space<vmem>>) attributes {dimension_semantics = [#tpu.dimension_semantics<parallel>], iteration_bounds = array<i64: 2>, scalar_prefetch = 0 : i64, scratch_operands = 0 : i64, tpu.core_type = #tpu.core_type<tc>, window_params = [{transform_indices = @transform_0, window_bounds = array<i64: 128, 128>}, {pipeline_mode = #tpu.pipeline_mode<synchronous>, transform_indices = @transform_1, window_bounds = array<i64: 1, 128>}, {pipeline_mode = #tpu.pipeline_mode<synchronous>, transform_indices = @transform_2, window_bounds = array<i64: 1, 128>}, {transform_indices = @transform_3, window_bounds = array<i64: 128, 128>}]} {
    %c0 = arith.constant 0 : index
    %c0_0 = arith.constant 0 : index
    %0 = vector.load %arg1[%c0, %c0_0] : memref<128x128xbf16, #tpu.memory_space<vmem>>, vector<128x128xbf16>
    %1 = arith.extf %0 : vector<128x128xbf16> to vector<128x128xf32>
    %cst = arith.constant dense<0.000000e+00> : vector<128xf32>
    %2 = vector.multi_reduction <add>, %1, %cst [1] : vector<128x128xf32> to vector<128xf32>
    %3 = vector.shape_cast %2 : vector<128xf32> to vector<128x1xf32>
    %cst_1 = arith.constant 1.280000e+02 : f32
    %4 = vector.broadcast %cst_1 : f32 to vector<128x1xf32>
    %5 = arith.divf %3, %4 : vector<128x1xf32>
    %6 = vector.broadcast %5 : vector<128x1xf32> to vector<128x128xf32>
    %7 = arith.subf %1, %6 : vector<128x128xf32>
    %8 = arith.mulf %7, %7 : vector<128x128xf32>
    %cst_2 = arith.constant dense<0.000000e+00> : vector<128xf32>
    %9 = vector.multi_reduction <add>, %8, %cst_2 [1] : vector<128x128xf32> to vector<128xf32>
    %10 = vector.shape_cast %9 : vector<128xf32> to vector<128x1xf32>
    %cst_3 = arith.constant 1.280000e+02 : f32
    %11 = vector.broadcast %cst_3 : f32 to vector<128x1xf32>
    %12 = arith.divf %10, %11 : vector<128x1xf32>
    %13 = vector.broadcast %5 : vector<128x1xf32> to vector<128x128xf32>
    %14 = arith.subf %1, %13 : vector<128x128xf32>
    %cst_4 = arith.constant 9.99999997E-7 : f32
    %15 = vector.broadcast %cst_4 : f32 to vector<128x1xf32>
    %16 = arith.addf %12, %15 : vector<128x1xf32>
    %17 = math.rsqrt %16 : vector<128x1xf32>
    %18 = vector.broadcast %17 : vector<128x1xf32> to vector<128x128xf32>
    %19 = arith.mulf %14, %18 : vector<128x128xf32>
    %c0_5 = arith.constant 0 : index
    %c0_6 = arith.constant 0 : index
    %20 = vector.load %arg2[%c0_5, %c0_6] : memref<1x128xf32, #tpu.memory_space<vmem>>, vector<1x128xf32>
    %21 = vector.broadcast %20 : vector<1x128xf32> to vector<128x128xf32>
    %22 = arith.mulf %19, %21 : vector<128x128xf32>
    %c0_7 = arith.constant 0 : index
    %c0_8 = arith.constant 0 : index
    %23 = vector.load %arg3[%c0_7, %c0_8] : memref<1x128xf32, #tpu.memory_space<vmem>>, vector<1x128xf32>
    %24 = vector.broadcast %23 : vector<1x128xf32> to vector<128x128xf32>
    %25 = arith.addf %22, %24 : vector<128x128xf32>
    %c0_9 = arith.constant 0 : index
    %c0_10 = arith.constant 0 : index
    %26 = vector.load %arg4[%c0_9, %c0_10] : memref<128x128xf32, #tpu.memory_space<vmem>>, vector<128x128xf32>
    tpu.vector_store %arg4[%c0_9, %c0_10], %25 {strides = array<i32>} : memref<128x128xf32, #tpu.memory_space<vmem>>, vector<128x128xf32>,
    return
  }
  func.func @transform_0(%arg0: i32) -> (i32, i32) {
    %c0_i32 = arith.constant 0 : i32
    %c0_i32_0 = arith.constant 0 : i32
    return %arg0, %c0_i32 : i32, i32
  }
  func.func @transform_1(%arg0: i32) -> (i32, i32) {
    %c0_i32 = arith.constant 0 : i32
    %c0_i32_0 = arith.constant 0 : i32
    %c0_i32_1 = arith.constant 0 : i32
    return %c0_i32, %c0_i32_0 : i32, i32
  }
  func.func @transform_2(%arg0: i32) -> (i32, i32) {
    %c0_i32 = arith.constant 0 : i32
    %c0_i32_0 = arith.constant 0 : i32
    %c0_i32_1 = arith.constant 0 : i32
    return %c0_i32, %c0_i32_0 : i32, i32
  }
  func.func @transform_3(%arg0: i32) -> (i32, i32) {
    %c0_i32 = arith.constant 0 : i32
    %c0_i32_0 = arith.constant 0 : i32
    return %arg0, %c0_i32 : i32, i32
  }
}

module attributes {stable_mosaic.version = 11 : i64} {
  func.func @_ln_mlp_residual_kernel(%arg0: i32, %arg1: i32, %arg2: memref<128x128xbf16, #tpu.memory_space<vmem>>, %arg3: memref<1x128xf32, #tpu.memory_space<vmem>>, %arg4: memref<1x128xf32, #tpu.memory_space<vmem>>, %arg5: memref<128x512xbf16, #tpu.memory_space<vmem>>, %arg6: memref<1x512xf32, #tpu.memory_space<vmem>>, %arg7: memref<512x128xbf16, #tpu.memory_space<vmem>>, %arg8: memref<1x128xf32, #tpu.memory_space<vmem>>, %arg9: memref<128x128xbf16, #tpu.memory_space<vmem>>, %arg10: memref<128x128xf32, #tpu.memory_space<vmem>>, %arg11: memref<128x128xbf16, #tpu.memory_space<vmem>>) attributes {dimension_semantics = [#tpu.dimension_semantics<parallel>, #tpu.dimension_semantics<arbitrary>], iteration_bounds = array<i64: 2, 2>, scalar_prefetch = 0 : i64, scratch_operands = 2 : i64, tpu.core_type = #tpu.core_type<tc>, window_params = [{transform_indices = @transform_0, window_bounds = array<i64: 128, 128>}, {pipeline_mode = #tpu.pipeline_mode<synchronous>, transform_indices = @transform_1, window_bounds = array<i64: 1, 128>}, {pipeline_mode = #tpu.pipeline_mode<synchronous>, transform_indices = @transform_2, window_bounds = array<i64: 1, 128>}, {transform_indices = @transform_3, window_bounds = array<i64: 128, 512>}, {transform_indices = @transform_4, window_bounds = array<i64: 1, 512>}, {transform_indices = @transform_5, window_bounds = array<i64: 512, 128>}, {pipeline_mode = #tpu.pipeline_mode<synchronous>, transform_indices = @transform_6, window_bounds = array<i64: 1, 128>}, {transform_indices = @transform_7, window_bounds = array<i64: 128, 128>}]} {
    %c0_i32 = arith.constant 0 : i32
    %0 = arith.cmpi eq, %arg1, %c0_i32 : i32
    %1 = arith.extui %0 : i1 to i32
    %c0_i32_0 = arith.constant 0 : i32
    %2 = arith.cmpi ne, %1, %c0_i32_0 : i32
    scf.if %2 {
      %c0_18 = arith.constant 0 : index
      %c0_19 = arith.constant 0 : index
      %31 = vector.load %arg2[%c0_18, %c0_19] : memref<128x128xbf16, #tpu.memory_space<vmem>>, vector<128x128xbf16>
      %32 = arith.extf %31 : vector<128x128xbf16> to vector<128x128xf32>
      %cst_20 = arith.constant dense<0.000000e+00> : vector<128xf32>
      %33 = vector.multi_reduction <add>, %32, %cst_20 [1] : vector<128x128xf32> to vector<128xf32>
      %34 = vector.shape_cast %33 : vector<128xf32> to vector<128x1xf32>
      %cst_21 = arith.constant 1.280000e+02 : f32
      %35 = vector.broadcast %cst_21 : f32 to vector<128x1xf32>
      %36 = arith.divf %34, %35 : vector<128x1xf32>
      %37 = vector.broadcast %36 : vector<128x1xf32> to vector<128x128xf32>
      %38 = arith.subf %32, %37 : vector<128x128xf32>
      %39 = arith.mulf %38, %38 : vector<128x128xf32>
      %cst_22 = arith.constant dense<0.000000e+00> : vector<128xf32>
      %40 = vector.multi_reduction <add>, %39, %cst_22 [1] : vector<128x128xf32> to vector<128xf32>
      %41 = vector.shape_cast %40 : vector<128xf32> to vector<128x1xf32>
      %cst_23 = arith.constant 1.280000e+02 : f32
      %42 = vector.broadcast %cst_23 : f32 to vector<128x1xf32>
      %43 = arith.divf %41, %42 : vector<128x1xf32>
      %44 = vector.broadcast %36 : vector<128x1xf32> to vector<128x128xf32>
      %45 = arith.subf %32, %44 : vector<128x128xf32>
      %cst_24 = arith.constant 9.99999997E-7 : f32
      %46 = vector.broadcast %cst_24 : f32 to vector<128x1xf32>
      %47 = arith.addf %43, %46 : vector<128x1xf32>
      %48 = math.rsqrt %47 : vector<128x1xf32>
      %49 = vector.broadcast %48 : vector<128x1xf32> to vector<128x128xf32>
      %50 = arith.mulf %45, %49 : vector<128x128xf32>
      %c0_25 = arith.constant 0 : index
      %c0_26 = arith.constant 0 : index
      %51 = vector.load %arg3[%c0_25, %c0_26] : memref<1x128xf32, #tpu.memory_space<vmem>>, vector<1x128xf32>
      %52 = vector.broadcast %51 : vector<1x128xf32> to vector<128x128xf32>
      %53 = arith.mulf %50, %52 : vector<128x128xf32>
      %c0_27 = arith.constant 0 : index
      %c0_28 = arith.constant 0 : index
      %54 = vector.load %arg4[%c0_27, %c0_28] : memref<1x128xf32, #tpu.memory_space<vmem>>, vector<1x128xf32>
      %55 = vector.broadcast %54 : vector<1x128xf32> to vector<128x128xf32>
      %56 = arith.addf %53, %55 : vector<128x128xf32>
      %57 = arith.truncf %56 : vector<128x128xf32> to vector<128x128xbf16>
      %c0_29 = arith.constant 0 : index
      %c0_30 = arith.constant 0 : index
      %58 = vector.load %arg11[%c0_29, %c0_30] : memref<128x128xbf16, #tpu.memory_space<vmem>>, vector<128x128xbf16>
      tpu.vector_store %arg11[%c0_29, %c0_30], %57 {strides = array<i32>} : memref<128x128xbf16, #tpu.memory_space<vmem>>, vector<128x128xbf16>,
      %c0_31 = arith.constant 0 : index
      %c0_32 = arith.constant 0 : index
      %59 = vector.load %arg8[%c0_31, %c0_32] : memref<1x128xf32, #tpu.memory_space<vmem>>, vector<1x128xf32>
      %60 = vector.broadcast %59 : vector<1x128xf32> to vector<128x128xf32>
      %61 = arith.addf %32, %60 : vector<128x128xf32>
      %c0_33 = arith.constant 0 : index
      %c0_34 = arith.constant 0 : index
      %62 = vector.load %arg10[%c0_33, %c0_34] : memref<128x128xf32, #tpu.memory_space<vmem>>, vector<128x128xf32>
      tpu.vector_store %arg10[%c0_33, %c0_34], %61 {strides = array<i32>} : memref<128x128xf32, #tpu.memory_space<vmem>>, vector<128x128xf32>,
    } else {
    }
    %c0 = arith.constant 0 : index
    %c0_1 = arith.constant 0 : index
    %3 = vector.load %arg11[%c0, %c0_1] : memref<128x128xbf16, #tpu.memory_space<vmem>>, vector<128x128xbf16>
    %c0_2 = arith.constant 0 : index
    %c0_3 = arith.constant 0 : index
    %4 = vector.load %arg5[%c0_2, %c0_3] : memref<128x512xbf16, #tpu.memory_space<vmem>>, vector<128x512xbf16>
    %cst = arith.constant dense<0.000000e+00> : vector<128x512xf32>
    %5 = tpu.matmul %3, %4, %cst {dimension_numbers = #tpu.dot_dimension_numbers<[1], [0], [0], [1], [0, 0, 1, 1], [], []>} : vector<128x128xbf16>, vector<128x512xbf16>, vector<128x512xf32> -> vector<128x512xf32>
    %c0_4 = arith.constant 0 : index
    %c0_5 = arith.constant 0 : index
    %6 = vector.load %arg6[%c0_4, %c0_5] : memref<1x512xf32, #tpu.memory_space<vmem>>, vector<1x512xf32>
    %7 = vector.broadcast %6 : vector<1x512xf32> to vector<128x512xf32>
    %8 = arith.addf %5, %7 : vector<128x512xf32>
    %cst_6 = arith.constant 5.000000e-01 : f32
    %9 = vector.broadcast %cst_6 : f32 to vector<128x512xf32>
    %10 = arith.mulf %9, %8 : vector<128x512xf32>
    %cst_7 = arith.constant 4.471500e-02 : f32
    %11 = vector.broadcast %cst_7 : f32 to vector<128x512xf32>
    %12 = arith.mulf %11, %8 : vector<128x512xf32>
    %13 = arith.mulf %12, %8 : vector<128x512xf32>
    %14 = arith.mulf %13, %8 : vector<128x512xf32>
    %15 = arith.addf %8, %14 : vector<128x512xf32>
    %cst_8 = arith.constant 0.797884583 : f32
    %16 = vector.broadcast %cst_8 : f32 to vector<128x512xf32>
    %17 = arith.mulf %16, %15 : vector<128x512xf32>
    %18 = math.tanh %17 : vector<128x512xf32>
    %cst_9 = arith.constant 1.000000e+00 : f32
    %19 = vector.broadcast %cst_9 : f32 to vector<128x512xf32>
    %20 = arith.addf %19, %18 : vector<128x512xf32>
    %21 = arith.mulf %10, %20 : vector<128x512xf32>
    %c0_10 = arith.constant 0 : index
    %c0_11 = arith.constant 0 : index
    %22 = vector.load %arg10[%c0_10, %c0_11] : memref<128x128xf32, #tpu.memory_space<vmem>>, vector<128x128xf32>
    %23 = arith.truncf %21 : vector<128x512xf32> to vector<128x512xbf16>
    %c0_12 = arith.constant 0 : index
    %c0_13 = arith.constant 0 : index
    %24 = vector.load %arg7[%c0_12, %c0_13] : memref<512x128xbf16, #tpu.memory_space<vmem>>, vector<512x128xbf16>
    %cst_14 = arith.constant dense<0.000000e+00> : vector<128x128xf32>
    %25 = tpu.matmul %23, %24, %cst_14 {dimension_numbers = #tpu.dot_dimension_numbers<[1], [0], [0], [1], [0, 0, 1, 1], [], []>} : vector<128x512xbf16>, vector<512x128xbf16>, vector<128x128xf32> -> vector<128x128xf32>
    %26 = arith.addf %22, %25 : vector<128x128xf32>
    %c0_15 = arith.constant 0 : index
    %c0_16 = arith.constant 0 : index
    %27 = vector.load %arg10[%c0_15, %c0_16] : memref<128x128xf32, #tpu.memory_space<vmem>>, vector<128x128xf32>
    tpu.vector_store %arg10[%c0_15, %c0_16], %26 {strides = array<i32>} : memref<128x128xf32, #tpu.memory_space<vmem>>, vector<128x128xf32>,
    %c1_i32 = arith.constant 1 : i32
    %28 = arith.cmpi eq, %arg1, %c1_i32 : i32
    %29 = arith.extui %28 : i1 to i32
    %c0_i32_17 = arith.constant 0 : i32
    %30 = arith.cmpi ne, %29, %c0_i32_17 : i32
    scf.if %30 {
      %c0_18 = arith.constant 0 : index
      %c0_19 = arith.constant 0 : index
      %31 = vector.load %arg10[%c0_18, %c0_19] : memref<128x128xf32, #tpu.memory_space<vmem>>, vector<128x128xf32>
      %32 = arith.truncf %31 : vector<128x128xf32> to vector<128x128xbf16>
      %c0_20 = arith.constant 0 : index
      %c0_21 = arith.constant 0 : index
      %33 = vector.load %arg9[%c0_20, %c0_21] : memref<128x128xbf16, #tpu.memory_space<vmem>>, vector<128x128xbf16>
      tpu.vector_store %arg9[%c0_20, %c0_21], %32 {strides = array<i32>} : memref<128x128xbf16, #tpu.memory_space<vmem>>, vector<128x128xbf16>,
    } else {
    }
    return
  }
  func.func @transform_0(%arg0: i32, %arg1: i32) -> (i32, i32) {
    %c0_i32 = arith.constant 0 : i32
    %c0_i32_0 = arith.constant 0 : i32
    return %arg0, %c0_i32 : i32, i32
  }
  func.func @transform_1(%arg0: i32, %arg1: i32) -> (i32, i32) {
    %c0_i32 = arith.constant 0 : i32
    %c0_i32_0 = arith.constant 0 : i32
    %c0_i32_1 = arith.constant 0 : i32
    return %c0_i32, %c0_i32_0 : i32, i32
  }
  func.func @transform_2(%arg0: i32, %arg1: i32) -> (i32, i32) {
    %c0_i32 = arith.constant 0 : i32
    %c0_i32_0 = arith.constant 0 : i32
    %c0_i32_1 = arith.constant 0 : i32
    return %c0_i32, %c0_i32_0 : i32, i32
  }
  func.func @transform_3(%arg0: i32, %arg1: i32) -> (i32, i32) {
    %c0_i32 = arith.constant 0 : i32
    %c0_i32_0 = arith.constant 0 : i32
    return %c0_i32, %arg1 : i32, i32
  }
  func.func @transform_4(%arg0: i32, %arg1: i32) -> (i32, i32) {
    %c0_i32 = arith.constant 0 : i32
    %c0_i32_0 = arith.constant 0 : i32
    return %c0_i32, %arg1 : i32, i32
  }
  func.func @transform_5(%arg0: i32, %arg1: i32) -> (i32, i32) {
    %c0_i32 = arith.constant 0 : i32
    %c0_i32_0 = arith.constant 0 : i32
    return %arg1, %c0_i32 : i32, i32
  }
  func.func @transform_6(%arg0: i32, %arg1: i32) -> (i32, i32) {
    %c0_i32 = arith.constant 0 : i32
    %c0_i32_0 = arith.constant 0 : i32
    %c0_i32_1 = arith.constant 0 : i32
    return %c0_i32, %c0_i32_0 : i32, i32
  }
  func.func @transform_7(%arg0: i32, %arg1: i32) -> (i32, i32) {
    %c0_i32 = arith.constant 0 : i32
    %c0_i32_0 = arith.constant 0 : i32
    return %arg0, %c0_i32 : i32, i32
  }
}

</mosaic_0001>

<bundles_post_ra>
// kernel: siglip_text_model.7
= control target key start
LH: loop header
LB: loop body
LE: loop exit
PB: predicated region body
PF: predicated region fallthrough
CT: control target
= control target key end

     0   :  { %s1432_s18 = smov 0   ;;  %s1820_s0 = inlined_call_operand.vmem [shape: bf16[256,128], index: 0, kind: input, shape index: {}]   ;;  %s1821_s1 = inlined_call_operand.vmem [shape: f32[1,128], index: 1, kind: input, shape index: {}]   ;;  %s1822_s2 = inlined_call_operand.vmem [shape: f32[1,128], index: 2, kind: input, shape index: {}]   ;;  %s1823_s3 = inlined_call_operand.vmem [shape: bf16[128,384], index: 3, kind: input, shape index: {}]   ;;  %s1824_s4 = inlined_call_operand.vmem [shape: f32[1,384], index: 4, kind: input, shape index: {}]   ;;  %s1825_s5 = inlined_call_operand.vmem [shape: bf16[256,384], index: 5, kind: output, shape index: {}]  }
   0x1 LB: > { %s1131_s19 = sadd.s32 4294967295, %s1399_s18   ;;  %p1135_p0 = scmp.ge.s32.totalorder %s1399_s18, 1  ;;  %s1399_s18 = sphi %s1432_s18, %s15_s18  }
   0x2   : > { %p188_p1 = scmp.lt.s32.totalorder %s1399_s18, 3 }
   0x4   : > { %p189_p2 = pnand %p1135_p0, %p188_p1 }
   0x5   : > { %s1136_s20 = sshll.u32 (!%p189_p2), %s1131_s19, 4  ;;  %v1329_v24 = vld [vmem:[%s1823_s3 + $0x4] ss:$12 sps:$4 sm:$0xff] (!%p189_p2)   ;;  %v1331_v25 = vld [vmem:[%s1823_s3] ss:$12 sps:$4 sm:$0xff] (!%p189_p2)  }
   0x6   : > { %192 = sbr.rel (%p189_p2) target bundleno = 612 (0x264), region = 40  ;;  %p218_p3 = scmp.lt.s32.totalorder (!%p189_p2), %s1136_s20, 31  ;;  %v1332_v26 = vld [vmem:[%s1823_s3 + $0x1c] ss:$12 sps:$4 sm:$0xff] (!%p189_p2)   ;;  %671 = vmatprep.subr.bf16.mxu0 (!%p189_p2), %v1329_v24 }
   0x7   : > { %v1334_v27 = vld [vmem:[%s1823_s3 + $0x8] ss:$12 sps:$4 sm:$0xff] (!%p189_p2)   ;;  %672 = vmatpush1.bf16.msra.mxu0 (!%p189_p2), %v1331_v25  ;;  %v1339_v24 = vld [vmem:[%s1823_s3 + $0x30] ss:$12 sps:$4 sm:$0xff] (!%p189_p2)  }
   0x8   : > { %1287 = vmatprep.subr.bf16.mxu1 (!%p189_p2), %v1334_v27  ;;  %673 = vmatprep.subr.bf16.mxu0 (!%p189_p2), %v1332_v26 }
   0x9   : > { %1288 = vmatpush3.bf16.msra.mxu1 (!%p189_p2), %v1334_v27 }
   0xd   : > { %s1827_s20 = smov (!%p218_p3, %s1136_s20), 31 }
   0xe   : > { %s1137_s21 = sshll.u32 %s1827_s20, 2  ;;  %s1319_s8 = smul.u32 12, %s1827_s20 }
   0xf   : > { %s1446_s24 = scalar_lea.vmem %s1820_s0, %s1137_s21 }
  0x10   : > { %v1233_v0 = vld [vmem:[%s1446_s24] sm:$0xff]   ;;  %v1264_v1 = vld [vmem:[%s1446_s24 + $0x8] sm:$0xff]   ;;  %v1451_v4 = vld [vmem:[%s1446_s24 + $0x10] sm:$0xff]   ;;  %s1737_s11 = scalar_lea.vmem %s1825_s5, %s1319_s8 }
  0x11   : > { %v1234_v2 = vunpack.c.l.bf16 %v1233_v0  ;;  %v1238_v3 = vunpack.c.l.bf16 %v1264_v1  ;;  %v1235_v5 = vunpack.c.h.bf16 %v1233_v0  ;;  %v1239_v6 = vunpack.c.h.bf16 %v1264_v1  ;;  %v1456_v9 = vld [vmem:[%s1446_s24 + $0x18] sm:$0xff]   ;;  %v1461_v12 = vld [vmem:[%s1446_s24 + $0x20] sm:$0xff]   ;;  %v1470_v15 = vld [vmem:[%s1446_s24 + $0x28] sm:$0xff]  }
  0x12   : > { %v1242_v7 = vunpack.c.l.bf16 %v1451_v4  ;;  %v1243_v8 = vunpack.c.h.bf16 %v1451_v4  ;;  %v1246_v10 = vunpack.c.l.bf16 %v1456_v9  ;;  %v1247_v11 = vunpack.c.h.bf16 %v1456_v9  ;;  %v1479_v18 = vld [vmem:[%s1446_s24 + $0x30] sm:$0xff]   ;;  %v1488_v21 = vld [vmem:[%s1446_s24 + $0x38] sm:$0xff]   ;;  %v1338_v9 = vld [vmem:[%s1823_s3 + $0x20] ss:$12 sps:$4 sm:$0xff]  }
  0x13   : > { %263 = vadd.xlane.f32.xlu0 %v1234_v2  ;;  %267 = vadd.xlane.f32.xlu1 %v1238_v3  ;;  %v1250_v13 = vunpack.c.l.bf16 %v1461_v12  ;;  %v1251_v14 = vunpack.c.h.bf16 %v1461_v12  ;;  %v1254_v16 = vunpack.c.l.bf16 %v1470_v15  ;;  %v1255_v17 = vunpack.c.h.bf16 %v1470_v15 }
  0x14   : > { %v1258_v19 = vunpack.c.l.bf16 %v1479_v18  ;;  %v1259_v20 = vunpack.c.h.bf16 %v1479_v18  ;;  %v1262_v22 = vunpack.c.l.bf16 %v1488_v21  ;;  %v1263_v23 = vunpack.c.h.bf16 %v1488_v21  ;;  %1289 = vmatprep.subr.bf16.mxu1 %v1338_v9 }
  0x15   : > { %1290 = vmatpush3.bf16.msra.mxu1 %v1338_v9 }
  0x17   : > { %265 = vadd.xlane.f32.xlu0 %v1235_v5  ;;  %269 = vadd.xlane.f32.xlu1 %v1239_v6 }
  0x1b   : > { %271 = vadd.xlane.f32.xlu0 %v1242_v7  ;;  %273 = vadd.xlane.f32.xlu1 %v1243_v8 }
  0x1f   : > { %275 = vadd.xlane.f32.xlu0 %v1246_v10  ;;  %277 = vadd.xlane.f32.xlu1 %v1247_v11 }
  0x23   : > { %279 = vadd.xlane.f32.xlu0 %v1250_v13  ;;  %281 = vadd.xlane.f32.xlu1 %v1251_v14 }
  0x27   : > { %283 = vadd.xlane.f32.xlu0 %v1254_v16  ;;  %285 = vadd.xlane.f32.xlu1 %v1255_v17 }
  0x2b   : > { %287 = vadd.xlane.f32.xlu0 %v1258_v19  ;;  %289 = vadd.xlane.f32.xlu1 %v1259_v20 }
  0x2f   : > { %291 = vadd.xlane.f32.xlu0 %v1262_v22  ;;  %293 = vadd.xlane.f32.xlu1 %v1263_v23 }
  0xa0   : > { %v264_v28 = vpop.xlane.xlu0 %263  ;;  %v268_v29 = vpop.xlane.xlu1 %267 }
  0xa1   : > { %v296_v30 = vmul.f32 0.0078125, %v264_v28  ;;  %v298_v31 = vmul.f32 0.0078125, %v268_v29  ;;  %v1340_v28 = vld [vmem:[%s1823_s3 + $0x4c] ss:$12 sps:$4 sm:$0xff]  }
  0xa2   : > { %v1342_v29 = vld [vmem:[%s1823_s3 + $0x38] ss:$12 sps:$4 sm:$0xff]  }
  0xa3   : > { %v1512_v32 = vsub.f32 %v1234_v2, %v296_v30  ;;  %v1514_v33 = vsub.f32 %v1238_v3, %v298_v31  ;;  %v1335_v2 = vld [vmem:[%s1823_s3 + $0x18] ss:$12 sps:$4 sm:$0xff]   ;;  %v1343_v31 = vld [vmem:[%s1823_s3 + $0x48] ss:$12 sps:$4 sm:$0xff]   ;;  %1291 = vmatprep.subr.bf16.mxu1 %v1342_v29 }
  0xa4   : > { %v266_v34 = vpop.xlane.xlu0 %265  ;;  %v270_v35 = vpop.xlane.xlu1 %269  ;;  %674 = vmatpush1.bf16.msra.mxu0 %v1335_v2  ;;  %1292 = vmatpush3.bf16.msra.mxu1 %v1342_v29 }
  0xa5   : > { %v297_v36 = vmul.f32 0.0078125, %v266_v34  ;;  %v328_v37 = vmul.f32 %v1512_v32, %v1512_v32  ;;  %v299_v38 = vmul.f32 0.0078125, %v270_v35  ;;  %v330_v41 = vmul.f32 %v1514_v33, %v1514_v33 }
  0xa7   : > { %v1518_v39 = vsub.f32 %v1235_v5, %v297_v36  ;;  %344 = vadd.xlane.f32.xlu0 %v328_v37  ;;  %v1520_v40 = vsub.f32 %v1239_v6, %v299_v38  ;;  %v1344_v38 = vld [vmem:[%s1823_s3 + $0x64] ss:$12 sps:$4 sm:$0xff]  }
  0xa8   : > { %v272_v42 = vpop.xlane.xlu0 %271  ;;  %v274_v43 = vpop.xlane.xlu1 %273 }
  0xa9   : > { %v300_v44 = vmul.f32 0.0078125, %v272_v42  ;;  %v329_v45 = vmul.f32 %v1518_v39, %v1518_v39  ;;  %v301_v46 = vmul.f32 0.0078125, %v274_v43  ;;  %v331_v49 = vmul.f32 %v1520_v40, %v1520_v40  ;;  %v1348_v42 = vld [vmem:[%s1823_s3 + $0x7c] ss:$12 sps:$4 sm:$0xff]  }
  0xaa   : > { %v1350_v43 = vld [vmem:[%s1823_s3 + $0x68] ss:$12 sps:$4 sm:$0xff]  }
  0xab   : > { %v1526_v47 = vsub.f32 %v1242_v7, %v300_v44  ;;  %348 = vadd.xlane.f32.xlu0 %v330_v41  ;;  %346 = vadd.xlane.f32.xlu1 %v329_v45  ;;  %v1528_v48 = vsub.f32 %v1243_v8, %v301_v46  ;;  %v1336_v8 = vld [vmem:[%s1823_s3 + $0x34] ss:$12 sps:$4 sm:$0xff]   ;;  %v1346_v41 = vld [vmem:[%s1823_s3 + $0x50] ss:$12 sps:$4 sm:$0xff]   ;;  %v1351_v44 = vld [vmem:[%s1823_s3 + $0x78] ss:$12 sps:$4 sm:$0xff]  }
  0xac   : > { %v276_v50 = vpop.xlane.xlu0 %275  ;;  %v278_v51 = vpop.xlane.xlu1 %277  ;;  %675 = vmatprep.subr.bf16.mxu0 %v1336_v8  ;;  %1293 = vmatprep.subr.bf16.mxu1 %v1346_v41  ;;  %v1352_v45 = vld [vmem:[%s1823_s3 + $0x94] ss:$12 sps:$4 sm:$0xff]  }
  0xad   : > { %v302_v52 = vmul.f32 0.0078125, %v276_v50  ;;  %v332_v53 = vmul.f32 %v1526_v47, %v1526_v47  ;;  %v303_v54 = vmul.f32 0.0078125, %v278_v51  ;;  %v333_v57 = vmul.f32 %v1528_v48, %v1528_v48  ;;  %676 = vmatpush1.bf16.msra.mxu0 %v1339_v24  ;;  %1294 = vmatpush3.bf16.msra.mxu1 %v1346_v41  ;;  %v1354_v46 = vld [vmem:[%s1823_s3 + $0x80] ss:$12 sps:$4 sm:$0xff]   ;;  %v1358_v51 = vld [vmem:[%s1823_s3 + $0x98] ss:$12 sps:$4 sm:$0xff]  }
  0xae   : > { %677 = vmatprep.subr.bf16.mxu0 %v1340_v28  ;;  %1295 = vmatprep.subr.bf16.mxu1 %v1350_v43  ;;  %v1356_v50 = vld [vmem:[%s1823_s3 + $0xac] ss:$12 sps:$4 sm:$0xff]  }
  0xaf   : > { %v1536_v55 = vsub.f32 %v1246_v10, %v302_v52  ;;  %350 = vadd.xlane.f32.xlu1 %v331_v49  ;;  %352 = vadd.xlane.f32.xlu0 %v332_v53  ;;  %v1540_v56 = vsub.f32 %v1247_v11, %v303_v54  ;;  %v1355_v49 = vld [vmem:[%s1823_s3 + $0x90] ss:$12 sps:$4 sm:$0xff]   ;;  %v1359_v52 = vld [vmem:[%s1823_s3 + $0xa8] ss:$12 sps:$4 sm:$0xff]   ;;  %v1401_v54 = vmov 0  }
  0xb0   : > { %v280_v58 = vpop.xlane.xlu0 %279  ;;  %v282_v59 = vpop.xlane.xlu1 %281  ;;  %v1360_v53 = vld [vmem:[%s1823_s3 + $0xb0] ss:$12 sps:$4 sm:$0xff]   ;;  %703 = vmatprep.mubr.bf16.mxu0 %v1401_v54 }
  0xb1   : > { %v304_v60 = vmul.f32 0.0078125, %v280_v58  ;;  %v334_v61 = vmul.f32 %v1536_v55, %v1536_v55  ;;  %v305_v62 = vmul.f32 0.0078125, %v282_v59  ;;  %v335_v1 = vmul.f32 %v1540_v56, %v1540_v56  ;;  %678 = vmatpush1.bf16.msra.mxu0 %v1343_v31  ;;  %1296 = vmatpush3.bf16.msra.mxu1 %v1350_v43  ;;  %v1661_v31 = vld [vmem:[%s1821_s1] ss:$0 sm:$0xff] }
  0xb2   : > { %679 = vmatprep.subr.bf16.mxu0 %v1344_v38  ;;  %1297 = vmatprep.subr.bf16.mxu1 %v1354_v46 }
  0xb3   : > { %v1548_v63 = vsub.f32 %v1250_v13, %v304_v60  ;;  %354 = vadd.xlane.f32.xlu1 %v333_v57  ;;  %356 = vadd.xlane.f32.xlu0 %v334_v61  ;;  %v1552_v0 = vsub.f32 %v1251_v14, %v305_v62 }
  0xb4   : > { %v284_v3 = vpop.xlane.xlu0 %283  ;;  %v286_v4 = vpop.xlane.xlu1 %285 }
  0xb5   : > { %v306_v5 = vmul.f32 0.0078125, %v284_v3  ;;  %v336_v6 = vmul.f32 %v1548_v63, %v1548_v63  ;;  %v307_v7 = vmul.f32 0.0078125, %v286_v4  ;;  %v337_v12 = vmul.f32 %v1552_v0, %v1552_v0  ;;  %1298 = vmatpush3.bf16.msra.mxu1 %v1354_v46 }
  0xb6   : > { %1299 = vmatprep.subr.bf16.mxu1 %v1358_v51 }
  0xb7   : > { %v1569_v10 = vsub.f32 %v1254_v16, %v306_v5  ;;  %358 = vadd.xlane.f32.xlu1 %v335_v1  ;;  %360 = vadd.xlane.f32.xlu0 %v336_v6  ;;  %v1573_v11 = vsub.f32 %v1255_v17, %v307_v7 }
  0xb8   : > { %v288_v13 = vpop.xlane.xlu0 %287  ;;  %v290_v14 = vpop.xlane.xlu1 %289 }
  0xb9   : > { %v308_v25 = vmul.f32 0.0078125, %v288_v13  ;;  %v338_v16 = vmul.f32 %v1569_v10, %v1569_v10  ;;  %v309_v26 = vmul.f32 0.0078125, %v290_v14  ;;  %v339_v27 = vmul.f32 %v1573_v11, %v1573_v11  ;;  %1300 = vmatpush3.bf16.msra.mxu1 %v1358_v51 }
  0xba   : > { %1301 = vmatprep.subr.bf16.mxu1 %v1360_v53 }
  0xbb   : > { %v1584_v15 = vsub.f32 %v1258_v19, %v308_v25  ;;  %362 = vadd.xlane.f32.xlu1 %v337_v12  ;;  %364 = vadd.xlane.f32.xlu0 %v338_v16  ;;  %v1588_v17 = vsub.f32 %v1259_v20, %v309_v26 }
  0xbc   : > { %v292_v30 = vpop.xlane.xlu0 %291  ;;  %v294_v19 = vpop.xlane.xlu1 %293 }
  0xbd   : > { %v310_v18 = vmul.f32 0.0078125, %v292_v30  ;;  %v340_v20 = vmul.f32 %v1584_v15, %v1584_v15  ;;  %v311_v34 = vmul.f32 0.0078125, %v294_v19  ;;  %v341_v37 = vmul.f32 %v1588_v17, %v1588_v17  ;;  %1302 = vmatpush3.bf16.msra.mxu1 %v1360_v53 }
  0xbf   : > { %v1605_v35 = vsub.f32 %v1262_v22, %v310_v18  ;;  %366 = vadd.xlane.f32.xlu1 %v339_v27  ;;  %368 = vadd.xlane.f32.xlu0 %v340_v20  ;;  %v1609_v36 = vsub.f32 %v1263_v23, %v311_v34  ;;  %v1347_v22 = vld [vmem:[%s1823_s3 + $0x60] ss:$12 sps:$4 sm:$0xff]  }
  0xc0   : > { %680 = vmatpush1.bf16.msra.mxu0 %v1347_v22 }
  0xc1   : > { %v342_v21 = vmul.f32 %v1605_v35, %v1605_v35  ;;  %v343_v23 = vmul.f32 %v1609_v36, %v1609_v36  ;;  %681 = vmatprep.subr.bf16.mxu0 %v1348_v42  ;;  %v1668_v42 = vld [vmem:[%s1822_s2] ss:$0 sm:$0xff] }
  0xc3   : > { %370 = vadd.xlane.f32.xlu1 %v341_v37  ;;  %372 = vadd.xlane.f32.xlu0 %v342_v21 }
  0xc4   : > { %682 = vmatpush1.bf16.msra.mxu0 %v1351_v44 }
  0xc5   : > { %683 = vmatprep.subr.bf16.mxu0 %v1352_v45 }
  0xc7   : > { %374 = vadd.xlane.f32.xlu1 %v343_v23 }
  0xc8   : > { %684 = vmatpush1.bf16.msra.mxu0 %v1355_v49 }
  0xc9   : > { %685 = vmatprep.subr.bf16.mxu0 %v1356_v50 }
  0xcc   : > { %686 = vmatpush1.bf16.msra.mxu0 %v1359_v52 }
 0x134   : > { %v345_v57 = vpop.xlane.xlu0 %344 }
 0x135   : > { %v376_v58 = vmul.f32 0.0078125, %v345_v57 }
 0x137   : > { %v392_v59 = vadd.f32 1e-06, %v376_v58 }
 0x138   : > { %v347_v60 = vpop.xlane.xlu1 %346  ;;  %v349_v61 = vpop.xlane.xlu0 %348 }
 0x139   : > { %1361 = vrsqrt.f32 %v392_v59  ;;  %v377_v62 = vmul.f32 0.0078125, %v347_v60  ;;  %v378_v1 = vmul.f32 0.0078125, %v349_v61 }
 0x13b   : > { %v393_v2 = vadd.f32 1e-06, %v377_v62  ;;  %v394_v3 = vadd.f32 1e-06, %v378_v1 }
 0x13c   : > { %v351_v4 = vpop.xlane.xlu1 %350  ;;  %v353_v5 = vpop.xlane.xlu0 %352 }
 0x13d   : > { %1363 = vrsqrt.f32 %v393_v2  ;;  %v379_v6 = vmul.f32 0.0078125, %v351_v4  ;;  %v380_v7 = vmul.f32 0.0078125, %v353_v5 }
 0x13e   : > { %1365 = vrsqrt.f32 %v394_v3 }
 0x13f   : > { %v395_v8 = vadd.f32 1e-06, %v379_v6  ;;  %v396_v9 = vadd.f32 1e-06, %v380_v7 }
 0x140   : > { %v355_v12 = vpop.xlane.xlu1 %354  ;;  %v357_v13 = vpop.xlane.xlu0 %356 }
 0x141   : > { %1367 = vrsqrt.f32 %v395_v8  ;;  %v381_v14 = vmul.f32 0.0078125, %v355_v12  ;;  %v382_v24 = vmul.f32 0.0078125, %v357_v13 }
 0x142   : > { %1369 = vrsqrt.f32 %v396_v9 }
 0x143   : > { %v1362_v25 = vpop.eup %1361  ;;  %v397_v16 = vadd.f32 1e-06, %v381_v14  ;;  %v398_v26 = vadd.f32 1e-06, %v382_v24 }
 0x144   : > { %v359_v27 = vpop.xlane.xlu1 %358  ;;  %v361_v28 = vpop.xlane.xlu0 %360  ;;  %v424_v29 = vmul.f32 %v1362_v25, %v1512_v32 }
 0x145   : > { %1371 = vrsqrt.f32 %v397_v16  ;;  %v383_v30 = vmul.f32 0.0078125, %v359_v27  ;;  %v384_v19 = vmul.f32 0.0078125, %v361_v28 }
 0x146   : > { %1373 = vrsqrt.f32 %v398_v26  ;;  %v447_v21 = vmul.f32 %v1661_v31, %v424_v29 }
 0x147   : > { %v1364_v18 = vpop.eup %1363  ;;  %v399_v20 = vadd.f32 1e-06, %v383_v30  ;;  %v400_v34 = vadd.f32 1e-06, %v384_v19 }
 0x148   : > { %v1366_v37 = vpop.eup %1365  ;;  %v363_v38 = vpop.xlane.xlu1 %362  ;;  %v425_v22 = vmul.f32 %v1364_v18, %v1518_v39  ;;  %v470_v53 = vadd.f32 %v1668_v42, %v447_v21 }
 0x149   : > { %v365_v41 = vpop.xlane.xlu0 %364  ;;  %1375 = vrsqrt.f32 %v399_v20  ;;  %v385_v32 = vmul.f32 0.0078125, %v363_v38  ;;  %v426_v43 = vmul.f32 %v1366_v37, %v1514_v33 }
 0x14a   : > { %v386_v23 = vmul.f32 0.0078125, %v365_v41  ;;  %1377 = vrsqrt.f32 %v400_v34  ;;  %v448_v44 = vmul.f32 %v1661_v31, %v425_v22 }
 0x14b   : > { %v1368_v45 = vpop.eup %1367  ;;  %v401_v46 = vadd.f32 1e-06, %v385_v32  ;;  %v449_v39 = vmul.f32 %v1661_v31, %v426_v43 }
 0x14c   : > { %v402_v49 = vadd.f32 1e-06, %v386_v23  ;;  %v1370_v50 = vpop.eup %1369  ;;  %v367_v51 = vpop.xlane.xlu1 %366  ;;  %v471_v57 = vadd.f32 %v1668_v42, %v448_v44  ;;  %v427_v58 = vmul.f32 %v1368_v45, %v1520_v40 }
 0x14d   : > { %v369_v52 = vpop.xlane.xlu0 %368  ;;  %1379 = vrsqrt.f32 %v401_v46  ;;  %v387_v59 = vmul.f32 0.0078125, %v367_v51  ;;  %v428_v62 = vmul.f32 %v1370_v50, %v1526_v47  ;;  %v472_v4 = vadd.f32 %v1668_v42, %v449_v39 }
 0x14e   : > { %v388_v33 = vmul.f32 0.0078125, %v369_v52  ;;  %1381 = vrsqrt.f32 %v402_v49  ;;  %v486_v60 = vpack.c.bf16 %v471_v57, %v470_v53  ;;  %v450_v61 = vmul.f32 %v1661_v31, %v427_v58 }
 0x14f   : > { %v1372_v1 = vpop.eup %1371  ;;  %v403_v2 = vadd.f32 1e-06, %v387_v59  ;;  %v451_v9 = vmul.f32 %v1661_v31, %v428_v62 }
 0x150   : > { %v404_v3 = vadd.f32 1e-06, %v388_v33  ;;  %v1374_v5 = vpop.eup %1373  ;;  %v371_v6 = vpop.xlane.xlu1 %370  ;;  %704 = vmatmul.mubr.bf16.vlgmr.msra.gmra.mrb[0].mxu0 %v486_v60  ;;  %1303 = vmatprep.mubr.bf16.mxu1 %v486_v60  ;;  %v473_v40 = vadd.f32 %v1668_v42, %v450_v61  ;;  %v429_v8 = vmul.f32 %v1372_v1, %v1528_v48 }
 0x151   : > { %v373_v7 = vpop.xlane.xlu0 %372  ;;  %1383 = vrsqrt.f32 %v403_v2  ;;  %v389_v12 = vmul.f32 0.0078125, %v371_v6  ;;  %713 = vmatprep.mubr.bf16.mxu0 %v1401_v54  ;;  %v430_v47 = vmul.f32 %v1374_v5, %v1536_v55  ;;  %v474_v29 = vadd.f32 %v1668_v42, %v451_v9 }
 0x152   : > { %v390_v13 = vmul.f32 0.0078125, %v373_v7  ;;  %1385 = vrsqrt.f32 %v404_v3  ;;  %v487_v14 = vpack.c.bf16 %v473_v40, %v472_v4  ;;  %v452_v24 = vmul.f32 %v1661_v31, %v429_v8 }
 0x153   : > { %v1376_v25 = vpop.eup %1375  ;;  %v405_v16 = vadd.f32 1e-06, %v389_v12  ;;  %v453_v27 = vmul.f32 %v1661_v31, %v430_v47 }
 0x154   : > { %v406_v26 = vadd.f32 1e-06, %v390_v13  ;;  %v1378_v28 = vpop.eup %1377  ;;  %v375_v48 = vpop.xlane.xlu1 %374  ;;  %1304 = vmatmul.mubr.bf16.vlgmr.msra.gmra.mrb[0].mxu1 %v487_v14  ;;  %v475_v30 = vadd.f32 %v1668_v42, %v452_v24  ;;  %v431_v19 = vmul.f32 %v1376_v25, %v1540_v56 }
 0x155   : > { %1387 = vrsqrt.f32 %v405_v16  ;;  %v391_v55 = vmul.f32 0.0078125, %v375_v48  ;;  %v432_v18 = vmul.f32 %v1378_v28, %v1548_v63  ;;  %v476_v41 = vadd.f32 %v1668_v42, %v453_v27 }
 0x156   : > { %1389 = vrsqrt.f32 %v406_v26  ;;  %v488_v20 = vpack.c.bf16 %v475_v30, %v474_v29  ;;  %v454_v34 = vmul.f32 %v1661_v31, %v431_v19 }
 0x157   : > { %v1380_v37 = vpop.eup %1379  ;;  %v407_v38 = vadd.f32 1e-06, %v391_v55  ;;  %v455_v56 = vmul.f32 %v1661_v31, %v432_v18 }
 0x158   : > { %v1382_v22 = vpop.eup %1381  ;;  %714 = vmatmul.mubr.bf16.gmra.mrb[4].mxu0 %v487_v14  ;;  %1307 = vmatprep.mubr.bf16.mxu1 %v488_v20  ;;  %v477_v21 = vadd.f32 %v1668_v42, %v454_v34  ;;  %v433_v32 = vmul.f32 %v1380_v37, %v1552_v0 }
 0x159   : > { %1391 = vrsqrt.f32 %v407_v38  ;;  %723 = vmatprep.mubr.bf16.mxu0 %v1401_v54  ;;  %v434_v63 = vmul.f32 %v1382_v22, %v1569_v10  ;;  %v478_v49 = vadd.f32 %v1668_v42, %v455_v56 }
 0x15a   : > { %v489_v23 = vpack.c.bf16 %v477_v21, %v476_v41  ;;  %v456_v43 = vmul.f32 %v1661_v31, %v433_v32 }
 0x15b   : > { %v1384_v44 = vpop.eup %1383  ;;  %v457_v45 = vmul.f32 %v1661_v31, %v434_v63 }
 0x15c   : > { %v1386_v46 = vpop.eup %1385  ;;  %1308 = vmatmul.mubr.bf16.gmra.mrb[4].mxu1 %v489_v23  ;;  %v479_v39 = vadd.f32 %v1668_v42, %v456_v43  ;;  %v435_v0 = vmul.f32 %v1384_v44, %v1573_v11 }
 0x15d   : > { %v436_v50 = vmul.f32 %v1386_v46, %v1584_v15  ;;  %v480_v53 = vadd.f32 %v1668_v42, %v457_v45 }
 0x15e   : > { %v490_v51 = vpack.c.bf16 %v479_v39, %v478_v49  ;;  %v458_v52 = vmul.f32 %v1661_v31, %v435_v0 }
 0x15f   : > { %v1388_v10 = vpop.eup %1387  ;;  %v459_v33 = vmul.f32 %v1661_v31, %v436_v50 }
 0x160   : > { %v1390_v57 = vpop.eup %1389  ;;  %724 = vmatmul.mubr.bf16.gmra.mrb[8].mxu0 %v488_v20  ;;  %1311 = vmatprep.mubr.bf16.mxu1 %v490_v51  ;;  %v481_v58 = vadd.f32 %v1668_v42, %v458_v52  ;;  %v437_v59 = vmul.f32 %v1388_v10, %v1588_v17 }
 0x161   : > { %733 = vmatprep.mubr.bf16.mxu0 %v1401_v54  ;;  %v438_v11 = vmul.f32 %v1390_v57, %v1605_v35  ;;  %v482_v62 = vadd.f32 %v1668_v42, %v459_v33 }
 0x162   : > { %v491_v15 = vpack.c.bf16 %v481_v58, %v480_v53  ;;  %v460_v60 = vmul.f32 %v1661_v31, %v437_v59 }
 0x163   : > { %v1392_v61 = vpop.eup %1391  ;;  %v461_v3 = vmul.f32 %v1661_v31, %v438_v11 }
 0x164   : > { %1312 = vmatmul.mubr.bf16.gmra.mrb[8].mxu1 %v491_v15  ;;  %v483_v1 = vadd.f32 %v1668_v42, %v460_v60  ;;  %v439_v2 = vmul.f32 %v1392_v61, %v1609_v36  ;;  %v528_v36 = vlaneseq }
 0x165   : > { %v484_v35 = vadd.f32 %v1668_v42, %v461_v3 }
 0x166   : > { %v492_v17 = vpack.c.bf16 %v483_v1, %v482_v62  ;;  %v462_v4 = vmul.f32 %v1661_v31, %v439_v2  ;;  %v529_v31 = vshrl.u32 %v528_v36, 7 }
 0x168   : > { %734 = vmatmul.mubr.bf16.gmra.mrb[12].mxu0 %v489_v23  ;;  %1315 = vmatprep.mubr.bf16.mxu1 %v492_v17  ;;  %v485_v5 = vadd.f32 %v1668_v42, %v462_v4  ;;  %v530_v7 = vsub.s32 0, %v529_v31  ;;  %v526_v42 = vld [vmem:[%s1824_s4] sm:$0x7]  ;;  %v534_v40 = vsub.s32 1, %v529_v31  ;;  %v538_v9 = vsub.s32 2, %v529_v31 }
 0x169   : > { %743 = vmatprep.mubr.bf16.mxu0 %v1401_v54 }
 0x16a   : > { %v493_v6 = vpack.c.bf16 %v485_v5, %v484_v35  ;;  %v1725_v8 = vrot.slane %v526_v42, %v530_v7  ;;  %v1727_v12 = vrot.slane %v526_v42, %v534_v40 }
 0x16c   : > { %1316 = vmatmul.mubr.bf16.gmra.mrb[12].mxu1 %v493_v6 }
 0x170   : > { %744 = vmatmul.mubr.bf16.gmra.mrb[16].mxu0 %v490_v51 }
 0x171   : > { %753 = vmatprep.mubr.bf16.mxu0 %v1401_v54 }
 0x178   : > { %754 = vmatmul.mubr.bf16.gmra.mrb[20].mxu0 %v491_v15 }
 0x179   : > { %763 = vmatprep.mubr.bf16.mxu0 %v1401_v54 }
 0x180   : > { %764 = vmatmul.mubr.bf16.gmra.mrb[24].mxu0 %v492_v17 }
 0x181   : > { %773 = vmatprep.mubr.bf16.mxu0 %v1401_v54  ;;  %v1731_v54 = vrot.slane %v526_v42, %v538_v9 }
 0x188   : > { %774 = vmatmul.mubr.bf16.gmra.mrb[28].mxu0 %v493_v6 }
 0x223   : > { %v705_v13 = vpop.f32.mrb[0].mxu0 }
 0x224   : > { %v706_v47 = vadd.f32 %v705_v13, %v1725_v8  ;;  %v707_v14 = vpop.f32.mrb[1].mxu0 }
 0x225   : > { %v708_v24 = vadd.f32 %v707_v14, %v1727_v12  ;;  %v709_v25 = vpop.f32.mrb[2].mxu0 }
 0x226   : > { %v710_v16 = vadd.f32 %v709_v25, %v1725_v8  ;;  %v711_v26 = vpop.f32.mrb[3].mxu0 }
 0x227   : > { %v1200_v27 = vpack.c.bf16 %v708_v24, %v706_v47  ;;  %v712_v28 = vadd.f32 %v711_v26, %v1727_v12  ;;  %v1305_v48 = vpop.f32.mrb[0].mxu1 }
 0x228   : > { %v827_v29 = vadd.f32 %v1305_v48, %v1731_v54  ;;  %v818_v30 = vpop.f32.mrb[1].mxu1 }
 0x229   : > { %1041 = vst [vmem:[%s1737_s11] sm:$0xff] %v1200_v27  ;;  %v1202_v19 = vpack.c.bf16 %v712_v28, %v710_v16  ;;  %v819_v55 = vadd.f32 %v818_v30, %v1731_v54  ;;  %v1306_v18 = vpop.f32.mrb[2].mxu1 }
 0x22a   : > { %v1205_v20 = vpack.c.bf16 %v827_v29, %v827_v29  ;;  %v830_v34 = vadd.f32 %v1306_v18, %v1731_v54  ;;  %v821_v37 = vpop.f32.mrb[3].mxu1 }
 0x22b   : > { %1043 = vst [vmem:[%s1737_s11 + $0xc] sm:$0xff] %v1202_v19  ;;  %v1201_v38 = vpack.c.bf16 %v819_v55, %v819_v55  ;;  %v822_v41 = vadd.f32 %v821_v37, %v1731_v54  ;;  %v715_v22 = vpop.f32.mrb[4].mxu0 }
 0x22c   : > { %1046 = vst [vmem:[%s1737_s11 + $0x20] sm:$0xf] %v1205_v20  ;;  %v1207_v21 = vpack.c.bf16 %v830_v34, %v830_v34  ;;  %v716_v32 = vadd.f32 %v715_v22, %v1725_v8  ;;  %v717_v56 = vpop.f32.mrb[5].mxu0 }
 0x22d   : > { %1042 = vst [vmem:[%s1737_s11 + $0x8] sm:$0xf] %v1201_v38  ;;  %v1203_v63 = vpack.c.bf16 %v822_v41, %v822_v41  ;;  %v718_v23 = vadd.f32 %v717_v56, %v1727_v12  ;;  %v719_v43 = vpop.f32.mrb[6].mxu0 }
 0x22e   : > { %1048 = vst [vmem:[%s1737_s11 + $0x2c] sm:$0xf] %v1207_v21  ;;  %v720_v44 = vadd.f32 %v719_v43, %v1725_v8  ;;  %v721_v45 = vpop.f32.mrb[7].mxu0 }
 0x22f   : > { %1044 = vst [vmem:[%s1737_s11 + $0x14] sm:$0xf] %v1203_v63  ;;  %v1204_v46 = vpack.c.bf16 %v718_v23, %v716_v32  ;;  %v722_v49 = vadd.f32 %v721_v45, %v1727_v12  ;;  %v1309_v39 = vpop.f32.mrb[4].mxu1 }
 0x230   : > { %v843_v0 = vadd.f32 %v1309_v39, %v1731_v54  ;;  %v834_v50 = vpop.f32.mrb[5].mxu1 }
 0x231   : > { %1045 = vst [vmem:[%s1737_s11 + $0x18] sm:$0xff] %v1204_v46  ;;  %v1206_v51 = vpack.c.bf16 %v722_v49, %v720_v44  ;;  %v835_v52 = vadd.f32 %v834_v50, %v1731_v54  ;;  %v1310_v10 = vpop.f32.mrb[6].mxu1 }
 0x232   : > { %v1213_v53 = vpack.c.bf16 %v843_v0, %v843_v0  ;;  %v846_v57 = vadd.f32 %v1310_v10, %v1731_v54  ;;  %v837_v58 = vpop.f32.mrb[7].mxu1 }
 0x233   : > { %1047 = vst [vmem:[%s1737_s11 + $0x24] sm:$0xff] %v1206_v51  ;;  %v1209_v59 = vpack.c.bf16 %v835_v52, %v835_v52  ;;  %v838_v33 = vadd.f32 %v837_v58, %v1731_v54  ;;  %v725_v11 = vpop.f32.mrb[8].mxu0 }
 0x234   : > { %1054 = vst [vmem:[%s1737_s11 + $0x50] sm:$0xf] %v1213_v53  ;;  %v1215_v15 = vpack.c.bf16 %v846_v57, %v846_v57  ;;  %v726_v60 = vadd.f32 %v725_v11, %v1725_v8  ;;  %v727_v61 = vpop.f32.mrb[9].mxu0 }
 0x235   : > { %1050 = vst [vmem:[%s1737_s11 + $0x38] sm:$0xf] %v1209_v59  ;;  %v1211_v62 = vpack.c.bf16 %v838_v33, %v838_v33  ;;  %v728_v1 = vadd.f32 %v727_v61, %v1727_v12  ;;  %v729_v2 = vpop.f32.mrb[10].mxu0 }
 0x236   : > { %1056 = vst [vmem:[%s1737_s11 + $0x5c] sm:$0xf] %v1215_v15  ;;  %v730_v3 = vadd.f32 %v729_v2, %v1725_v8  ;;  %v731_v17 = vpop.f32.mrb[11].mxu0 }
 0x237   : > { %1052 = vst [vmem:[%s1737_s11 + $0x44] sm:$0xf] %v1211_v62  ;;  %v1208_v4 = vpack.c.bf16 %v728_v1, %v726_v60  ;;  %v732_v35 = vadd.f32 %v731_v17, %v1727_v12  ;;  %v1313_v5 = vpop.f32.mrb[8].mxu1 }
 0x238   : > { %v859_v6 = vadd.f32 %v1313_v5, %v1731_v54  ;;  %v850_v36 = vpop.f32.mrb[9].mxu1 }
 0x239   : > { %1049 = vst [vmem:[%s1737_s11 + $0x30] sm:$0xff] %v1208_v4  ;;  %v1210_v31 = vpack.c.bf16 %v732_v35, %v730_v3  ;;  %v851_v7 = vadd.f32 %v850_v36, %v1731_v54  ;;  %v1314_v42 = vpop.f32.mrb[10].mxu1 }
 0x23a   : > { %v1221_v40 = vpack.c.bf16 %v859_v6, %v859_v6  ;;  %v862_v9 = vadd.f32 %v1314_v42, %v1731_v54  ;;  %v853_v13 = vpop.f32.mrb[11].mxu1 }
 0x23b   : > { %1051 = vst [vmem:[%s1737_s11 + $0x3c] sm:$0xff] %v1210_v31  ;;  %v1217_v47 = vpack.c.bf16 %v851_v7, %v851_v7  ;;  %v854_v14 = vadd.f32 %v853_v13, %v1731_v54  ;;  %v735_v24 = vpop.f32.mrb[12].mxu0 }
 0x23c   : > { %1062 = vst [vmem:[%s1737_s11 + $0x80] sm:$0xf] %v1221_v40  ;;  %v1223_v25 = vpack.c.bf16 %v862_v9, %v862_v9  ;;  %v736_v16 = vadd.f32 %v735_v24, %v1725_v8  ;;  %v737_v26 = vpop.f32.mrb[13].mxu0 }
 0x23d   : > { %1058 = vst [vmem:[%s1737_s11 + $0x68] sm:$0xf] %v1217_v47  ;;  %v1219_v27 = vpack.c.bf16 %v854_v14, %v854_v14  ;;  %v738_v28 = vadd.f32 %v737_v26, %v1727_v12  ;;  %v739_v48 = vpop.f32.mrb[14].mxu0 }
 0x23e   : > { %1064 = vst [vmem:[%s1737_s11 + $0x8c] sm:$0xf] %v1223_v25  ;;  %v740_v29 = vadd.f32 %v739_v48, %v1725_v8  ;;  %v741_v30 = vpop.f32.mrb[15].mxu0 }
 0x23f   : > { %1060 = vst [vmem:[%s1737_s11 + $0x74] sm:$0xf] %v1219_v27  ;;  %v1212_v19 = vpack.c.bf16 %v738_v28, %v736_v16  ;;  %v742_v55 = vadd.f32 %v741_v30, %v1727_v12  ;;  %v1317_v18 = vpop.f32.mrb[12].mxu1 }
 0x240   : > { %v875_v20 = vadd.f32 %v1317_v18, %v1731_v54  ;;  %v866_v34 = vpop.f32.mrb[13].mxu1 }
 0x241   : > { %1053 = vst [vmem:[%s1737_s11 + $0x48] sm:$0xff] %v1212_v19  ;;  %v1214_v37 = vpack.c.bf16 %v742_v55, %v740_v29  ;;  %v867_v38 = vadd.f32 %v866_v34, %v1731_v54  ;;  %v1318_v41 = vpop.f32.mrb[14].mxu1 }
 0x242   : > { %v1229_v22 = vpack.c.bf16 %v875_v20, %v875_v20  ;;  %v878_v21 = vadd.f32 %v1318_v41, %v1731_v54  ;;  %v869_v32 = vpop.f32.mrb[15].mxu1 }
 0x243   : > { %1055 = vst [vmem:[%s1737_s11 + $0x54] sm:$0xff] %v1214_v37  ;;  %v1225_v56 = vpack.c.bf16 %v867_v38, %v867_v38  ;;  %v870_v63 = vadd.f32 %v869_v32, %v1731_v54  ;;  %v745_v23 = vpop.f32.mrb[16].mxu0 }
 0x244   : > { %1070 = vst [vmem:[%s1737_s11 + $0xb0] sm:$0xf] %v1229_v22  ;;  %v1231_v43 = vpack.c.bf16 %v878_v21, %v878_v21  ;;  %v746_v44 = vadd.f32 %v745_v23, %v1725_v8  ;;  %v747_v45 = vpop.f32.mrb[17].mxu0 }
 0x245   : > { %1066 = vst [vmem:[%s1737_s11 + $0x98] sm:$0xf] %v1225_v56  ;;  %v1227_v46 = vpack.c.bf16 %v870_v63, %v870_v63  ;;  %v748_v49 = vadd.f32 %v747_v45, %v1727_v12  ;;  %v749_v39 = vpop.f32.mrb[18].mxu0 }
 0x246   : > { %1072 = vst [vmem:[%s1737_s11 + $0xbc] sm:$0xf] %v1231_v43  ;;  %v750_v0 = vadd.f32 %v749_v39, %v1725_v8  ;;  %v751_v50 = vpop.f32.mrb[19].mxu0 }
 0x247   : > { %1068 = vst [vmem:[%s1737_s11 + $0xa4] sm:$0xf] %v1227_v46  ;;  %v1216_v54 = vpack.c.bf16 %v748_v49, %v746_v44  ;;  %v752_v51 = vadd.f32 %v751_v50, %v1727_v12 }
 0x249   : > { %1057 = vst [vmem:[%s1737_s11 + $0x60] sm:$0xff] %v1216_v54  ;;  %v1218_v52 = vpack.c.bf16 %v752_v51, %v750_v0 }
 0x24b   : > { %1059 = vst [vmem:[%s1737_s11 + $0x6c] sm:$0xff] %v1218_v52  ;;  %v755_v10 = vpop.f32.mrb[20].mxu0 }
 0x24c   : > { %v756_v53 = vadd.f32 %v755_v10, %v1725_v8  ;;  %v757_v57 = vpop.f32.mrb[21].mxu0 }
 0x24d   : > { %v758_v58 = vadd.f32 %v757_v57, %v1727_v12  ;;  %v759_v59 = vpop.f32.mrb[22].mxu0 }
 0x24e   : > { %v760_v33 = vadd.f32 %v759_v59, %v1725_v8  ;;  %v761_v11 = vpop.f32.mrb[23].mxu0 }
 0x24f   : > { %v1220_v15 = vpack.c.bf16 %v758_v58, %v756_v53  ;;  %v762_v60 = vadd.f32 %v761_v11, %v1727_v12 }
 0x251   : > { %1061 = vst [vmem:[%s1737_s11 + $0x78] sm:$0xff] %v1220_v15  ;;  %v1222_v61 = vpack.c.bf16 %v762_v60, %v760_v33 }
 0x253   : > { %1063 = vst [vmem:[%s1737_s11 + $0x84] sm:$0xff] %v1222_v61  ;;  %v765_v62 = vpop.f32.mrb[24].mxu0 }
 0x254   : > { %v766_v1 = vadd.f32 %v765_v62, %v1725_v8  ;;  %v767_v2 = vpop.f32.mrb[25].mxu0 }
 0x255   : > { %v768_v3 = vadd.f32 %v767_v2, %v1727_v12  ;;  %v769_v17 = vpop.f32.mrb[26].mxu0 }
 0x256   : > { %v770_v4 = vadd.f32 %v769_v17, %v1725_v8  ;;  %v771_v35 = vpop.f32.mrb[27].mxu0 }
 0x257   : > { %v1224_v5 = vpack.c.bf16 %v768_v3, %v766_v1  ;;  %v772_v6 = vadd.f32 %v771_v35, %v1727_v12 }
 0x259   : > { %1065 = vst [vmem:[%s1737_s11 + $0x90] sm:$0xff] %v1224_v5  ;;  %v1226_v36 = vpack.c.bf16 %v772_v6, %v770_v4 }
 0x25b   : > { %1067 = vst [vmem:[%s1737_s11 + $0x9c] sm:$0xff] %v1226_v36  ;;  %v775_v31 = vpop.f32.mrb[28].mxu0 }
 0x25c   : > { %v776_v7 = vadd.f32 %v775_v31, %v1725_v8  ;;  %v777_v42 = vpop.f32.mrb[29].mxu0 }
 0x25d   : > { %v778_v40 = vadd.f32 %v777_v42, %v1727_v12  ;;  %v779_v9 = vpop.f32.mrb[30].mxu0 }
 0x25e   : > { %v780_v13 = vadd.f32 %v779_v9, %v1725_v8  ;;  %v781_v47 = vpop.f32.mrb[31].mxu0 }
 0x25f   : > { %v1228_v14 = vpack.c.bf16 %v778_v40, %v776_v7  ;;  %v782_v24 = vadd.f32 %v781_v47, %v1727_v12 }
 0x261   : > { %1069 = vst [vmem:[%s1737_s11 + $0xa8] sm:$0xff] %v1228_v14  ;;  %v1230_v25 = vpack.c.bf16 %v782_v24, %v780_v13 }
 0x263   : > { %1071 = vst [vmem:[%s1737_s11 + $0xb4] sm:$0xff] %v1230_v25 }
 0x264 PF: > { %s15_s18 = sadd.s32 1, %s1399_s18  }
 0x265   : > { %p12_p4 = scmp.ge.s32.totalorder %s15_s18, 4  }
 0x267   :  { %14 = sbr.rel (!%p12_p4) target bundleno = 1 (0x1), region = 70 }

// kernel: siglip_text_model.8
= control target key start
LH: loop header
LB: loop body
LE: loop exit
PB: predicated region body
PF: predicated region fallthrough
CT: control target
= control target key end

     0   :  { %s1449_s21 = smov 0   ;;  %s1451_s22 = smov 0   ;;  %s1589_s0 = inlined_call_operand.vmem [shape: bf16[12,4,64,32], index: 0, kind: input, shape index: {}, may-alias: {0,1,2}]   ;;  %s1590_s1 = inlined_call_operand.vmem [shape: bf16[12,4,64,32], index: 1, kind: input, shape index: {}, may-alias: {0,1,2}]   ;;  %s1591_s2 = inlined_call_operand.vmem [shape: bf16[12,4,64,32], index: 2, kind: input, shape index: {}, may-alias: {0,1,2}]   ;;  %s1592_s3 = inlined_call_operand.vmem [shape: bf16[4,64,128], index: 3, kind: input, shape index: {}]   ;;  %s1593_s4 = inlined_call_operand.vmem [shape: bf16[4,32,128], index: 4, kind: input, shape index: {}]   ;;  %s1594_s5 = inlined_call_operand.vmem [shape: f32[1,128], index: 5, kind: input, shape index: {}]   ;;  %s1595_s6 = inlined_call_operand.vmem [shape: bf16[4,64,128], index: 6, kind: output, shape index: {}]  }
   0x1   :  { %1596 = sst [smem:[#allocation5_spill]] %s1589_s0  ;;  %s1453_s23 = smov 0  }
   0x2   :  { %1597 = sst [smem:[#allocation6_spill]] %s1592_s3  ;;  %s1455_s24 = smov 0  }
   0x3   :  { %s1457_s25 = smov 0  }
   0x4 LB: > { %s25_s26 = sadd.s32 1, %s1404_s23  ;;  %s28_s27 = sadd.s32 1, %s1408_s24  ;;  %s1412_s25 = sphi %s1457_s25, %s16_s25   ;;  %s1408_s24 = sphi %s1455_s24, %s1607_s24   ;;  %s1404_s23 = sphi %s1453_s23, %s1606_s23   ;;  %s1400_s22 = sphi %s1451_s22, %s1605_s22   ;;  %s1396_s21 = sphi %s1449_s21, %s1604_s21  }
   0x5   : > { %p26_p0 = scmp.ge.s32.totalorder %s25_s26, 4  ;;  %p1110_p1 = scmp.ge.s32.totalorder %s1412_s25, 1 }
   0x6   : > { %p290_p2 = scmp.lt.s32.totalorder %s1412_s25, 17 }
   0x7   : > { %s1609_s26 = smov (%p26_p0, %s25_s26), 0  ;;  %s1611_s27 = smov (!%p26_p0, %s28_s27), %s1408_s24 }
   0x8   : > { %1598 = sst [smem:[#allocation3_spill]] %s1609_s26  ;;  %p291_p3 = pnand %p1110_p1, %p290_p2 }
   0x9   : > { %p30_p4 = scmp.ge.s32.totalorder %s1611_s27, 4  ;;  %p354_p5 = scmp.lt.s32.totalorder (!%p291_p3), %s1396_s21, 11 }
   0xa   : > { %294 = sbr.rel (%p291_p3) target bundleno = 902 (0x386), region = 44  ;;  %p356_p6 = scmp.lt.s32.totalorder (!%p291_p3), %s1400_s22, 3 }
   0xb   : > { %s1613_s27 = smov (%p30_p4, %s1611_s27), 0  ;;  %s363_s28 = sadd.s32 (!%p291_p3), 4, %s1396_s21 }
   0xc   : > { %1599 = sst [smem:[#allocation4_spill]] %s1613_s27  ;;  %s374_s29 = sadd.s32 (!%p291_p3), 8, %s1396_s21 }
   0xd   : > { %p364_p7 = scmp.lt.s32.totalorder (!%p291_p3), %s363_s28, 11  ;;  %p375_p8 = scmp.lt.s32.totalorder (!%p291_p3), %s374_s29, 11 }
   0xe   : > { %s1600_s3 = sld [smem:[#allocation6_spill]] (!%p291_p3)  ;;  %s1601_s0 = sld [smem:[#allocation5_spill]] (!%p291_p3) }
   0xf   : > { %p390_p9 = scmp.lt.s32.totalorder (!%p291_p3), %s1396_s21, 3  ;;  %p1126_p10 = scmp.ne.s32.totalorder (!%p291_p3), %s1396_s21, 0 }
  0x11   : > { %s355_s30 = scalar_select %p354_p5, %s1396_s21, 11 }
  0x12   : > { %s1615_s22 = smov (!%p356_p6, %s1400_s22), 3  ;;  %s1617_s28 = smov (!%p364_p7, %s363_s28), 11 }
  0x13   : > { %s1112_s7 = sshll.u32 %s355_s30, 5  ;;  %s1111_s8 = sshll.u32 %s1615_s22, 3  ;;  %v1127_v1 = vld [vmem:[%s1594_s5] ss:$0 sm:$0xff] (!%p1126_p10) }
  0x14   : > { %s360_s9 = sadd.s32 %s1112_s7, %s1111_s8  ;;  %s1165_s10 = sshll.u32 %s1615_s22, 5 }
  0x15   : > { %s1113_s11 = sshll.u32 %s360_s9, 2  ;;  %s389_s14 = scalar_lea.vmem %s1600_s3, %s1165_s10 }
  0x16   : > { %s1491_s17 = scalar_lea.vmem %s1601_s0, %s1113_s11  ;;  %s1619_s29 = smov (!%p375_p8, %s374_s29), 11  ;;  %v1177_v0 = vld [vmem:[%s389_s14] sm:$0xff] (!%p1126_p10)   ;;  %v1212_v2 = vld [vmem:[%s389_s14 + $0x8] sm:$0xff] (!%p1126_p10)   ;;  %v1213_v7 = vld [vmem:[%s389_s14 + $0x10] sm:$0xff] (!%p1126_p10)  }
  0x17   : > { %s1115_s18 = sshll.u32 %s1617_s28, 5  ;;  %s1497_s30 = scalar_lea.vmem %s1595_s6, %s1165_s10  ;;  %v1178_v3 = vunpack.c.l.bf16 (!%p1126_p10), %v1177_v0  ;;  %v1179_v4 = vunpack.c.h.bf16 (!%p1126_p10), %v1177_v0  ;;  %v1182_v5 = vunpack.c.l.bf16 (!%p1126_p10), %v1212_v2  ;;  %v1183_v6 = vunpack.c.h.bf16 (!%p1126_p10), %v1212_v2  ;;  %v1214_v8 = vld [vmem:[%s389_s14 + $0x18] sm:$0xff] (!%p1126_p10)  }
  0x18   : > { %s370_s22 = sadd.s32 %s1115_s18, %s1111_s8  ;;  %s1118_s7 = sshll.u32 %s1619_s29, 5  ;;  %v1186_v9 = vunpack.c.l.bf16 (!%p1126_p10), %v1213_v7  ;;  %v1187_v10 = vunpack.c.h.bf16 (!%p1126_p10), %v1213_v7  ;;  %v1190_v11 = vunpack.c.l.bf16 (!%p1126_p10), %v1214_v8  ;;  %v1191_v12 = vunpack.c.h.bf16 (!%p1126_p10), %v1214_v8 }
  0x19   : > { %s1116_s9 = sshll.u32 %s370_s22, 2  ;;  %s381_s27 = sadd.s32 %s1118_s7, %s1111_s8  ;;  %v428_v13 = vadd.f32 (!%p1126_p10), %v1178_v3, %v1127_v1  ;;  %v429_v14 = vadd.f32 (!%p1126_p10), %v1179_v4, %v1127_v1  ;;  %v430_v15 = vadd.f32 (!%p1126_p10), %v1182_v5, %v1127_v1  ;;  %v431_v16 = vadd.f32 (!%p1126_p10), %v1183_v6, %v1127_v1 }
  0x1a   : > { %s1502_s3 = scalar_lea.vmem %s1590_s1, %s1116_s9  ;;  %s1119_s11 = sshll.u32 %s381_s27, 2  ;;  %v432_v17 = vadd.f32 (!%p1126_p10), %v1186_v9, %v1127_v1  ;;  %v433_v18 = vadd.f32 (!%p1126_p10), %v1187_v10, %v1127_v1  ;;  %v434_v19 = vadd.f32 (!%p1126_p10), %v1190_v11, %v1127_v1  ;;  %v435_v20 = vadd.f32 (!%p1126_p10), %v1191_v12, %v1127_v1 }
  0x1b   : > { %s1507_s0 = scalar_lea.vmem %s1591_s2, %s1119_s11  ;;  %404 = sbr.rel (%p1126_p10) target bundleno = 34 (0x22), region = 48  ;;  %436 = vst [vmem:[#allocation2] sm:$0xff] (!%p1126_p10), %v428_v13  ;;  %437 = vst [vmem:[#allocation2 + $0x8] sm:$0xff] (!%p1126_p10), %v429_v14 }
  0x1c   : > { %s391_s28 = scalar_select %p390_p9, %s1396_s21, 3 }
  0x1d   : > { %438 = vst [vmem:[#allocation2 + $0x10] sm:$0xff] (!%p1126_p10), %v430_v15  ;;  %439 = vst [vmem:[#allocation2 + $0x18] sm:$0xff] (!%p1126_p10), %v431_v16 }
  0x1e   : > { %s1166_s26 = sshll.u32 %s391_s28, 4  ;;  %440 = vst [vmem:[#allocation2 + $0x20] sm:$0xff] (!%p1126_p10), %v432_v17  ;;  %441 = vst [vmem:[#allocation2 + $0x28] sm:$0xff] (!%p1126_p10), %v433_v18 }
  0x1f   : > { %s1513_s18 = scalar_lea.vmem %s1593_s4, %s1166_s26  ;;  %442 = vst [vmem:[#allocation2 + $0x30] sm:$0xff] (!%p1126_p10), %v434_v19  ;;  %443 = vst [vmem:[#allocation2 + $0x38] sm:$0xff] (!%p1126_p10), %v435_v20 }
  0x22 PF: > { %v1328_v21 = vld [vmem:[%s1502_s3] sm:$0xff]   ;;  %vm508_vm0 = vcmask 261120   ;;  %v1329_v22 = vld [vmem:[%s1502_s3 + $0x8] sm:$0xff]   ;;  %v1330_v26 = vld [vmem:[%s1502_s3 + $0x10] sm:$0xff]   ;;  %vm598_vm1 = vcmask 523264   ;;  %p1154_p11 = scmp.ne.s32.totalorder %s1396_s21, 3 }
  0x23   : > { %1284 = vmatprep.subr.msk.bf16.mxu0 %vm508_vm0, %v1328_v21  ;;  %v522_v23 = vsel %vm508_vm0, %v1328_v21, 0  ;;  %v1332_v24 = vld [vmem:[%s1491_s17] sm:$0xff]   ;;  %v525_v25 = vsel %vm508_vm0, %v1329_v22, 0  ;;  %v528_v27 = vsel %vm508_vm0, %v1330_v26, 0  ;;  %v1331_v28 = vld [vmem:[%s1502_s3 + $0x18] sm:$0xff]   ;;  %v1333_v30 = vld [vmem:[%s1491_s17 + $0x8] sm:$0xff]  }
  0x24   : > { %1241 = vmatpush3.bf16.xpose.msra.mxu0 %v522_v23  ;;  %1248 = vmatprep.mubr.msk.bf16.mxu0 %vm508_vm0, %v1332_v24  ;;  %v531_v29 = vsel %vm508_vm0, %v1331_v28, 0  ;;  %v1334_v31 = vld [vmem:[%s1491_s17 + $0x10] sm:$0xff]   ;;  %v1335_v32 = vld [vmem:[%s1491_s17 + $0x18] sm:$0xff]   ;;  %v1336_v49 = vld [vmem:[%s1507_s0] sm:$0xff]  }
  0x25   : > { %1285 = vmatprep.subr.msk.bf16.mxu0 %vm508_vm0, %v1329_v22  ;;  %1256 = vmatprep.subr.bf16.mxu1 %v1336_v49  ;;  %v1337_v50 = vld [vmem:[%s1507_s0 + $0x8] sm:$0xff]   ;;  %v1338_v51 = vld [vmem:[%s1507_s0 + $0x10] sm:$0xff]   ;;  %v1339_v52 = vld [vmem:[%s1507_s0 + $0x18] sm:$0xff]  }
  0x26   : > { %1257 = vmatpush3.bf16.msra.mxu1 %v1336_v49 }
  0x27   : > { %1258 = vmatprep.subr.bf16.mxu1 %v1337_v50 }
  0x2a   : > { %1259 = vmatpush3.bf16.msra.mxu1 %v1337_v50 }
  0x2b   : > { %1260 = vmatprep.subr.bf16.mxu1 %v1338_v51 }
  0x2c   : > { %1243 = vmatpush3.bf16.xpose.msra.mxu0 %v525_v25 }
  0x2d   : > { %1286 = vmatprep.subr.msk.bf16.mxu0 %vm508_vm0, %v1330_v26 }
  0x2e   : > { %1261 = vmatpush3.bf16.msra.mxu1 %v1338_v51 }
  0x2f   : > { %1262 = vmatprep.subr.bf16.mxu1 %v1339_v52 }
  0x32   : > { %1263 = vmatpush3.bf16.msra.mxu1 %v1339_v52 }
  0x34   : > { %1245 = vmatpush3.bf16.xpose.msra.mxu0 %v528_v27 }
  0x35   : > { %1287 = vmatprep.subr.msk.bf16.mxu0 %vm508_vm0, %v1331_v28 }
  0x3c   : > { %1247 = vmatpush3.bf16.xpose.msra.mxu0 %v531_v29 }
  0x43   : > { %1249 = vmatmul.mubr.msk.bf16.vlgmr.msra.gmra.mrb[0].mxu0 %vm508_vm0, %v1333_v30 }
  0x44   : > { %1252 = vmatprep.mubr.msk.bf16.mxu0 %vm508_vm0, %v1334_v31 }
  0x4b   : > { %1253 = vmatmul.mubr.msk.bf16.gmra.mrb[4].mxu0 %vm508_vm0, %v1335_v32 }
 0x116   : > { %v1250_v33 = vpop.f32.mrb[0].mxu0 }
 0x117   : > { %v567_v34 = vpop.f32.mrb[1].mxu0  ;;  %v605_v35 = vsel %vm598_vm1, %v1250_v33, -inf }
 0x118   : > { %606 = vmax.xlane.f32.xlu1 %v605_v35  ;;  %v1251_v36 = vpop.f32.mrb[2].mxu0  ;;  %v599_v37 = vsel %vm598_vm1, %v567_v34, -inf }
 0x119   : > { %600 = vmax.xlane.f32.xlu0 %v599_v37  ;;  %v570_v38 = vpop.f32.mrb[3].mxu0  ;;  %v608_v39 = vsel %vm598_vm1, %v1251_v36, -inf }
 0x11a   : > { %v602_v40 = vsel %vm598_vm1, %v570_v38, -inf }
 0x11c   : > { %609 = vmax.xlane.f32.xlu1 %v608_v39 }
 0x11d   : > { %603 = vmax.xlane.f32.xlu0 %v602_v40 }
 0x11e   : > { %v1254_v41 = vpop.f32.mrb[4].mxu0 }
 0x11f   : > { %v583_v42 = vpop.f32.mrb[5].mxu0  ;;  %v617_v47 = vsel %vm598_vm1, %v1254_v41, -inf }
 0x120   : > { %v1255_v43 = vpop.f32.mrb[6].mxu0  ;;  %v611_v44 = vsel %vm598_vm1, %v583_v42, -inf }
 0x121   : > { %612 = vmax.xlane.f32.xlu0 %v611_v44  ;;  %v586_v45 = vpop.f32.mrb[7].mxu0  ;;  %v620_v48 = vsel %vm598_vm1, %v1255_v43, -inf }
 0x122   : > { %v614_v46 = vsel %vm598_vm1, %v586_v45, -inf }
 0x123   : > { %615 = vmax.xlane.f32.xlu1 %v614_v46 }
 0x125   : > { %618 = vmax.xlane.f32.xlu0 %v617_v47 }
 0x127   : > { %621 = vmax.xlane.f32.xlu1 %v620_v48 }
 0x1a5   : > { %v607_v53 = vpop.xlane.xlu1 %606 }
 0x1a6   : > { %v625_v54 = vsub.f32 %v1250_v33, %v607_v53  ;;  %v601_v55 = vpop.xlane.xlu0 %600  ;;  %v1340_v33 = vld [vmem:[%s1513_s18] sm:$0xff]  }
 0x1a7   : > { %v623_v56 = vsub.f32 %v567_v34, %v601_v55  ;;  %1272 = vmatprep.subr.bf16.mxu1 %v1340_v33  ;;  %v1341_v34 = vld [vmem:[%s1513_s18 + $0x8] sm:$0xff]  }
 0x1a8   : > { %v635_v57 = vmul.f32 1.442695, %v625_v54 }
 0x1a9   : > { %v631_v58 = vmul.f32 1.442695, %v623_v56  ;;  %v610_v59 = vpop.xlane.xlu1 %609 }
 0x1aa   : > { %v626_v60 = vsub.f32 %v1251_v36, %v610_v59  ;;  %v604_v61 = vpop.xlane.xlu0 %603 }
 0x1ab   : > { %1342 = vpow2.f32 %v631_v58  ;;  %v624_v62 = vsub.f32 %v570_v38, %v604_v61 }
 0x1ac   : > { %v637_v63 = vmul.f32 1.442695, %v626_v60  ;;  %1344 = vpow2.f32 %v635_v57 }
 0x1ad   : > { %v633_v0 = vmul.f32 1.442695, %v624_v62 }
 0x1ae   : > { %1346 = vpow2.f32 %v637_v63  ;;  %v613_v1 = vpop.xlane.xlu0 %612 }
 0x1af   : > { %1348 = vpow2.f32 %v633_v0  ;;  %v627_v2 = vsub.f32 %v583_v42, %v613_v1 }
 0x1b0   : > { %v616_v3 = vpop.xlane.xlu1 %615 }
 0x1b1   : > { %v639_v4 = vmul.f32 1.442695, %v627_v2  ;;  %v628_v5 = vsub.f32 %v586_v45, %v616_v3 }
 0x1b2   : > { %v619_v6 = vpop.xlane.xlu0 %618 }
 0x1b3   : > { %1350 = vpow2.f32 %v639_v4  ;;  %v641_v7 = vmul.f32 1.442695, %v628_v5  ;;  %v629_v8 = vsub.f32 %v1254_v41, %v619_v6 }
 0x1b4   : > { %v622_v9 = vpop.xlane.xlu1 %621 }
 0x1b5   : > { %v1343_v10 = vpop.eup %1342  ;;  %1352 = vpow2.f32 %v641_v7  ;;  %v643_v11 = vmul.f32 1.442695, %v629_v8  ;;  %v630_v12 = vsub.f32 %v1255_v43, %v622_v9  ;;  %v794_v7 = vld [vmem:[#allocation2 + $0x10] sm:$0xff]  ;;  %v792_v8 = vld [vmem:[#allocation2] sm:$0xff] }
 0x1b6   : > { %v647_v13 = vsel %vm598_vm1, %v1343_v10, 0.0  ;;  %v1345_v14 = vpop.eup %1344 }
 0x1b7   : > { %1354 = vpow2.f32 %v643_v11  ;;  %v645_v15 = vmul.f32 1.442695, %v630_v12  ;;  %648 = vadd.xlane.f32.xlu0 %v647_v13  ;;  %v653_v19 = vsel %vm598_vm1, %v1345_v14, 0.0  ;;  %v793_v13 = vld [vmem:[#allocation2 + $0x8] sm:$0xff] }
 0x1b8   : > { %v1347_v16 = vpop.eup %1346 }
 0x1b9   : > { %v1349_v17 = vpop.eup %1348  ;;  %1356 = vpow2.f32 %v645_v15  ;;  %v672_v18 = vpack.c.bf16 %v1347_v16, %v1345_v14  ;;  %v656_v24 = vsel %vm598_vm1, %v1347_v16, 0.0 }
 0x1ba   : > { %v650_v20 = vsel %vm598_vm1, %v1349_v17, 0.0  ;;  %v671_v21 = vpack.c.bf16 %v1349_v17, %v1343_v10  ;;  %v795_v10 = vld [vmem:[#allocation2 + $0x18] sm:$0xff] }
 0x1bb   : > { %654 = vadd.xlane.f32.xlu0 %v653_v19  ;;  %651 = vadd.xlane.f32.xlu1 %v650_v20  ;;  %v798_v19 = vld [vmem:[#allocation2 + $0x30] sm:$0xff]  ;;  %v796_v20 = vld [vmem:[#allocation2 + $0x20] sm:$0xff] }
 0x1bc   : > { %1264 = vmatprep.mubr.msk.bf16.mxu1 %vm598_vm1, %v671_v21 }
 0x1bd   : > { %v1351_v22 = vpop.eup %1350  ;;  %1265 = vmatmul.mubr.msk.bf16.vlgmr.msra.gmra.mrb[0].mxu1 %vm598_vm1, %v672_v18 }
 0x1be   : > { %v659_v23 = vsel %vm598_vm1, %v1351_v22, 0.0  ;;  %1273 = vmatpush3.bf16.msra.mxu1 %v1340_v33 }
 0x1bf   : > { %v1353_v25 = vpop.eup %1352  ;;  %660 = vadd.xlane.f32.xlu0 %v659_v23  ;;  %657 = vadd.xlane.f32.xlu1 %v656_v24 }
 0x1c0   : > { %v673_v26 = vpack.c.bf16 %v1353_v25, %v1351_v22  ;;  %v662_v29 = vsel %vm598_vm1, %v1353_v25, 0.0  ;;  %1274 = vmatprep.subr.bf16.mxu1 %v1341_v34  ;;  %v799_v22 = vld [vmem:[#allocation2 + $0x38] sm:$0xff]  ;;  %v797_v25 = vld [vmem:[#allocation2 + $0x28] sm:$0xff] }
 0x1c1   : > { %v1355_v27 = vpop.eup %1354 }
 0x1c2   : > { %1268 = vmatprep.mubr.msk.bf16.mxu1 %vm598_vm1, %v673_v26  ;;  %v665_v28 = vsel %vm598_vm1, %v1355_v27, 0.0  ;;  %1275 = vmatpush3.bf16.msra.mxu1 %v1341_v34 }
 0x1c3   : > { %v1357_v30 = vpop.eup %1356  ;;  %666 = vadd.xlane.f32.xlu0 %v665_v28  ;;  %663 = vadd.xlane.f32.xlu1 %v662_v29 }
 0x1c4   : > { %v674_v31 = vpack.c.bf16 %v1357_v30, %v1355_v27  ;;  %v668_v32 = vsel %vm598_vm1, %v1357_v30, 0.0 }
 0x1c6   : > { %1269 = vmatmul.mubr.msk.bf16.gmra.mrb[4].mxu1 %vm598_vm1, %v674_v31 }
 0x1c7   : > { %669 = vadd.xlane.f32.xlu1 %v668_v32 }
 0x244   : > { %v649_v35 = vpop.xlane.xlu0 %648 }
 0x245   : > { %1358 = vrcp.f32 %v649_v35 }
 0x248   : > { %v652_v36 = vpop.xlane.xlu1 %651  ;;  %v655_v37 = vpop.xlane.xlu0 %654 }
 0x249   : > { %1360 = vrcp.f32 %v655_v37 }
 0x24c   : > { %v658_v38 = vpop.xlane.xlu1 %657  ;;  %v661_v39 = vpop.xlane.xlu0 %660 }
 0x24d   : > { %1362 = vrcp.f32 %v658_v38 }
 0x24e   : > { %1364 = vrcp.f32 %v652_v36 }
 0x24f   : > { %1366 = vrcp.f32 %v661_v39  ;;  %v1359_v43 = vpop.eup %1358 }
 0x250   : > { %v664_v40 = vpop.xlane.xlu1 %663  ;;  %v667_v41 = vpop.xlane.xlu0 %666 }
 0x251   : > { %1368 = vrcp.f32 %v667_v41 }
 0x253   : > { %v1361_v45 = vpop.eup %1360 }
 0x254   : > { %v670_v42 = vpop.xlane.xlu1 %669 }
 0x255   : > { %1370 = vrcp.f32 %v670_v42 }
 0x256   : > { %1372 = vrcp.f32 %v664_v40 }
 0x257   : > { %v1363_v47 = vpop.eup %1362 }
 0x258   : > { %v1365_v49 = vpop.eup %1364 }
 0x259   : > { %v1367_v57 = vpop.eup %1366 }
 0x25b   : > { %v1369_v59 = vpop.eup %1368 }
 0x25f   : > { %v1371_v61 = vpop.eup %1370 }
 0x260   : > { %v1373_v63 = vpop.eup %1372 }
 0x290   : > { %v1266_v44 = vpop.f32.mrb[0].mxu1 }
 0x291   : > { %v745_v46 = vpop.f32.mrb[1].mxu1  ;;  %v786_v50 = vmul.f32 %v1361_v45, %v1266_v44 }
 0x292   : > { %v1267_v48 = vpop.f32.mrb[2].mxu1  ;;  %v784_v53 = vmul.f32 %v1359_v43, %v745_v46 }
 0x293   : > { %v787_v51 = vmul.f32 %v1363_v47, %v1267_v48  ;;  %v748_v52 = vpop.f32.mrb[3].mxu1 }
 0x294   : > { %v785_v54 = vmul.f32 %v1365_v49, %v748_v52 }
 0x295   : > { %v801_v55 = vpack.c.bf16 %v787_v51, %v786_v50 }
 0x296   : > { %v800_v56 = vpack.c.bf16 %v785_v54, %v784_v53 }
 0x298   : > { %1276 = vmatprep.mubr.msk.bf16.mxu1 %vm508_vm0, %v800_v56 }
 0x299   : > { %v1270_v58 = vpop.f32.mrb[4].mxu1  ;;  %1277 = vmatmul.mubr.msk.bf16.vlgmr.msra.gmra.mrb[8].mxu1 %vm508_vm0, %v801_v55 }
 0x29a   : > { %v761_v60 = vpop.f32.mrb[5].mxu1  ;;  %v790_v0 = vmul.f32 %v1369_v59, %v1270_v58 }
 0x29b   : > { %v1271_v62 = vpop.f32.mrb[6].mxu1  ;;  %v788_v3 = vmul.f32 %v1367_v57, %v761_v60 }
 0x29c   : > { %v791_v1 = vmul.f32 %v1371_v61, %v1271_v62  ;;  %v764_v2 = vpop.f32.mrb[7].mxu1 }
 0x29d   : > { %v789_v4 = vmul.f32 %v1373_v63, %v764_v2 }
 0x29e   : > { %v803_v5 = vpack.c.bf16 %v791_v1, %v790_v0 }
 0x29f   : > { %v802_v6 = vpack.c.bf16 %v789_v4, %v788_v3 }
 0x2a1   : > { %1280 = vmatprep.mubr.msk.bf16.mxu1 %vm508_vm0, %v802_v6 }
 0x2a2   : > { %1281 = vmatmul.mubr.msk.bf16.gmra.mrb[12].mxu1 %vm508_vm0, %v803_v5 }
 0x36c   : > { %v1278_v9 = vpop.f32.mrb[8].mxu1 }
 0x36d   : > { %v899_v11 = vadd.f32 %v1278_v9, %v794_v7  ;;  %v866_v12 = vpop.f32.mrb[9].mxu1 }
 0x36e   : > { %v897_v14 = vadd.f32 %v866_v12, %v792_v8  ;;  %v1279_v15 = vpop.f32.mrb[10].mxu1 }
 0x36f   : > { %907 = vst [vmem:[#allocation2 + $0x10] sm:$0xff] %v899_v11  ;;  %v900_v16 = vadd.f32 %v1279_v15, %v795_v10  ;;  %v869_v17 = vpop.f32.mrb[11].mxu1 }
 0x370   : > { %905 = vst [vmem:[#allocation2] sm:$0xff] %v897_v14  ;;  %v898_v18 = vadd.f32 %v869_v17, %v793_v13 }
 0x371   : > { %908 = vst [vmem:[#allocation2 + $0x18] sm:$0xff] %v900_v16 }
 0x372   : > { %906 = vst [vmem:[#allocation2 + $0x8] sm:$0xff] %v898_v18 }
 0x375   : > { %v1282_v21 = vpop.f32.mrb[12].mxu1  ;;  %916 = sbr.rel (%p1154_p11) target bundleno = 902 (0x386), region = 52 }
 0x376   : > { %v903_v23 = vadd.f32 %v1282_v21, %v798_v19  ;;  %v882_v24 = vpop.f32.mrb[13].mxu1  ;;  %v919_v33 = vld [vmem:[#allocation2 + $0x10] sm:$0xff] (!%p1154_p11) }
 0x377   : > { %v901_v26 = vadd.f32 %v882_v24, %v796_v20  ;;  %v1283_v27 = vpop.f32.mrb[14].mxu1  ;;  %v917_v31 = vld [vmem:[#allocation2] sm:$0xff] (!%p1154_p11) }
 0x378   : > { %911 = vst [vmem:[#allocation2 + $0x30] sm:$0xff] %v903_v23  ;;  %v904_v28 = vadd.f32 %v1283_v27, %v799_v22  ;;  %v885_v29 = vpop.f32.mrb[15].mxu1  ;;  %v920_v35 = vld [vmem:[#allocation2 + $0x18] sm:$0xff] (!%p1154_p11) }
 0x379   : > { %909 = vst [vmem:[#allocation2 + $0x20] sm:$0xff] %v901_v26  ;;  %v902_v30 = vadd.f32 %v885_v29, %v797_v25  ;;  %v918_v32 = vld [vmem:[#allocation2 + $0x8] sm:$0xff] (!%p1154_p11)  ;;  %v1200_v38 = vpack.c.bf16 (!%p1154_p11), %v920_v35, %v919_v33 }
 0x37a   : > { %912 = vst [vmem:[#allocation2 + $0x38] sm:$0xff] %v904_v28  ;;  %v1195_v34 = vpack.c.bf16 (!%p1154_p11), %v918_v32, %v917_v31 }
 0x37b   : > { %910 = vst [vmem:[#allocation2 + $0x28] sm:$0xff] %v902_v30  ;;  %1215 = vst [vmem:[%s1497_s30 + $0x8] sm:$0xff] (!%p1154_p11), %v1200_v38  }
 0x37c   : > { %1196 = vst [vmem:[%s1497_s30] sm:$0xff] %v1195_v34  }
 0x37f   : > { %v923_v40 = vld [vmem:[#allocation2 + $0x30] sm:$0xff] }
 0x380   : > { %v921_v36 = vld [vmem:[#allocation2 + $0x20] sm:$0xff] }
 0x381   : > { %v924_v41 = vld [vmem:[#allocation2 + $0x38] sm:$0xff] }
 0x382   : > { %v922_v37 = vld [vmem:[#allocation2 + $0x28] sm:$0xff]  ;;  %v1210_v42 = vpack.c.bf16 %v924_v41, %v923_v40 }
 0x383   : > { %v1205_v39 = vpack.c.bf16 %v922_v37, %v921_v36 }
 0x384   : > { %1217 = vst [vmem:[%s1497_s30 + $0x18] sm:$0xff] %v1210_v42  }
 0x385   : > { %1216 = vst [vmem:[%s1497_s30 + $0x10] sm:$0xff] %v1205_v39  }
 0x386 PF: > { %s16_s25 = sadd.s32 1, %s1412_s25   ;;  %s1602_s0 = sld [smem:[#allocation3_spill]] }
 0x387   : > { %p13_p12 = scmp.ge.s32.totalorder %s16_s25, 18   ;;  %s1603_s3 = sld [smem:[#allocation4_spill]] }
 0x388   : > { %s1604_s21 = smov %s1404_s23  ;;  %s1605_s22 = smov %s1408_s24 }
 0x389   :  { %15 = sbr.rel (!%p13_p12) target bundleno = 4 (0x4), region = 94 }
 0x38c   : > { %s1606_s23 = smov %s1602_s0 }
 0x38d   : > { %s1607_s24 = smov %s1603_s3 }

// kernel: siglip_text_model.13
= control target key start
LH: loop header
LB: loop body
LE: loop exit
PB: predicated region body
PF: predicated region fallthrough
CT: control target
= control target key end

     0   :  { %s621_s12 = smov 0   ;;  %s832_s0 = inlined_call_operand.vmem [shape: bf16[256,128], index: 0, kind: input, shape index: {}]   ;;  %s833_s1 = inlined_call_operand.vmem [shape: f32[1,128], index: 1, kind: input, shape index: {}]   ;;  %s834_s2 = inlined_call_operand.vmem [shape: f32[1,128], index: 2, kind: input, shape index: {}]   ;;  %s835_s3 = inlined_call_operand.vmem [shape: f32[256,128], index: 3, kind: output, shape index: {}]  }
   0x1 LB: > { %s501_s13 = sadd.s32 4294967295, %s599_s12   ;;  %p505_p0 = scmp.ge.s32.totalorder %s599_s12, 1  ;;  %s599_s12 = sphi %s621_s12, %s13_s12  }
   0x2   : > { %p138_p1 = scmp.lt.s32.totalorder %s599_s12, 3 }
   0x4   : > { %p139_p2 = pnand %p505_p0, %p138_p1 }
   0x5   : > { %s506_s14 = sshll.u32 (!%p139_p2), %s501_s13, 4 }
   0x6   : > { %142 = sbr.rel (%p139_p2) target bundleno = 363 (0x16b), region = 32  ;;  %p163_p3 = scmp.lt.s32.totalorder (!%p139_p2), %s506_s14, 31 }
   0xd   : > { %s837_s14 = smov (!%p163_p3, %s506_s14), 31 }
   0xe   : > { %s507_s15 = sshll.u32 %s837_s14, 2  ;;  %s509_s21 = sshll.u32 %s837_s14, 3 }
   0xf   : > { %s635_s18 = scalar_lea.vmem %s832_s0, %s507_s15  ;;  %s765_s26 = scalar_lea.vmem %s835_s3, %s509_s21 }
  0x10   : > { %v515_v0 = vld [vmem:[%s635_s18] sm:$0xff]   ;;  %v546_v1 = vld [vmem:[%s635_s18 + $0x8] sm:$0xff]   ;;  %v547_v6 = vld [vmem:[%s635_s18 + $0x10] sm:$0xff]  }
  0x11   : > { %v516_v2 = vunpack.c.l.bf16 %v515_v0  ;;  %v520_v3 = vunpack.c.l.bf16 %v546_v1  ;;  %v517_v4 = vunpack.c.h.bf16 %v515_v0  ;;  %v521_v5 = vunpack.c.h.bf16 %v546_v1  ;;  %v548_v9 = vld [vmem:[%s635_s18 + $0x18] sm:$0xff]   ;;  %v642_v12 = vld [vmem:[%s635_s18 + $0x20] sm:$0xff]   ;;  %v647_v15 = vld [vmem:[%s635_s18 + $0x28] sm:$0xff]  }
  0x12   : > { %v524_v7 = vunpack.c.l.bf16 %v547_v6  ;;  %v525_v8 = vunpack.c.h.bf16 %v547_v6  ;;  %v528_v10 = vunpack.c.l.bf16 %v548_v9  ;;  %v529_v11 = vunpack.c.h.bf16 %v548_v9  ;;  %v652_v18 = vld [vmem:[%s635_s18 + $0x30] sm:$0xff]   ;;  %v661_v21 = vld [vmem:[%s635_s18 + $0x38] sm:$0xff]  }
  0x13   : > { %206 = vadd.xlane.f32.xlu0 %v516_v2  ;;  %210 = vadd.xlane.f32.xlu1 %v520_v3  ;;  %v532_v13 = vunpack.c.l.bf16 %v642_v12  ;;  %v533_v14 = vunpack.c.h.bf16 %v642_v12  ;;  %v536_v16 = vunpack.c.l.bf16 %v647_v15  ;;  %v537_v17 = vunpack.c.h.bf16 %v647_v15 }
  0x14   : > { %v540_v19 = vunpack.c.l.bf16 %v652_v18  ;;  %v541_v20 = vunpack.c.h.bf16 %v652_v18  ;;  %v544_v22 = vunpack.c.l.bf16 %v661_v21  ;;  %v545_v23 = vunpack.c.h.bf16 %v661_v21 }
  0x17   : > { %208 = vadd.xlane.f32.xlu0 %v517_v4  ;;  %212 = vadd.xlane.f32.xlu1 %v521_v5 }
  0x1b   : > { %214 = vadd.xlane.f32.xlu0 %v524_v7  ;;  %216 = vadd.xlane.f32.xlu1 %v525_v8 }
  0x1f   : > { %218 = vadd.xlane.f32.xlu0 %v528_v10  ;;  %220 = vadd.xlane.f32.xlu1 %v529_v11 }
  0x23   : > { %222 = vadd.xlane.f32.xlu0 %v532_v13  ;;  %224 = vadd.xlane.f32.xlu1 %v533_v14 }
  0x27   : > { %226 = vadd.xlane.f32.xlu0 %v536_v16  ;;  %228 = vadd.xlane.f32.xlu1 %v537_v17 }
  0x2b   : > { %230 = vadd.xlane.f32.xlu0 %v540_v19  ;;  %232 = vadd.xlane.f32.xlu1 %v541_v20 }
  0x2f   : > { %234 = vadd.xlane.f32.xlu0 %v544_v22  ;;  %236 = vadd.xlane.f32.xlu1 %v545_v23 }
  0xa0   : > { %v207_v24 = vpop.xlane.xlu0 %206  ;;  %v211_v25 = vpop.xlane.xlu1 %210 }
  0xa1   : > { %v239_v26 = vmul.f32 0.0078125, %v207_v24  ;;  %v241_v27 = vmul.f32 0.0078125, %v211_v25 }
  0xa3   : > { %v673_v28 = vsub.f32 %v516_v2, %v239_v26  ;;  %v675_v29 = vsub.f32 %v520_v3, %v241_v27 }
  0xa4   : > { %v209_v30 = vpop.xlane.xlu0 %208  ;;  %v213_v31 = vpop.xlane.xlu1 %212 }
  0xa5   : > { %v240_v32 = vmul.f32 0.0078125, %v209_v30  ;;  %v271_v33 = vmul.f32 %v673_v28, %v673_v28  ;;  %v242_v34 = vmul.f32 0.0078125, %v213_v31  ;;  %v273_v37 = vmul.f32 %v675_v29, %v675_v29 }
  0xa7   : > { %v679_v35 = vsub.f32 %v517_v4, %v240_v32  ;;  %287 = vadd.xlane.f32.xlu0 %v271_v33  ;;  %v681_v36 = vsub.f32 %v521_v5, %v242_v34 }
  0xa8   : > { %v215_v38 = vpop.xlane.xlu0 %214  ;;  %v217_v39 = vpop.xlane.xlu1 %216 }
  0xa9   : > { %v243_v40 = vmul.f32 0.0078125, %v215_v38  ;;  %v272_v41 = vmul.f32 %v679_v35, %v679_v35  ;;  %v244_v42 = vmul.f32 0.0078125, %v217_v39  ;;  %v274_v45 = vmul.f32 %v681_v36, %v681_v36 }
  0xab   : > { %v687_v43 = vsub.f32 %v524_v7, %v243_v40  ;;  %291 = vadd.xlane.f32.xlu0 %v273_v37  ;;  %289 = vadd.xlane.f32.xlu1 %v272_v41  ;;  %v689_v44 = vsub.f32 %v525_v8, %v244_v42 }
  0xac   : > { %v219_v46 = vpop.xlane.xlu0 %218  ;;  %v221_v47 = vpop.xlane.xlu1 %220 }
  0xad   : > { %v245_v48 = vmul.f32 0.0078125, %v219_v46  ;;  %v275_v49 = vmul.f32 %v687_v43, %v687_v43  ;;  %v246_v50 = vmul.f32 0.0078125, %v221_v47  ;;  %v276_v53 = vmul.f32 %v689_v44, %v689_v44 }
  0xaf   : > { %v695_v51 = vsub.f32 %v528_v10, %v245_v48  ;;  %293 = vadd.xlane.f32.xlu1 %v274_v45  ;;  %295 = vadd.xlane.f32.xlu0 %v275_v49  ;;  %v697_v52 = vsub.f32 %v529_v11, %v246_v50  ;;  %v752_v50 = vld [vmem:[%s833_s1] ss:$0 sm:$0xff] }
  0xb0   : > { %v223_v54 = vpop.xlane.xlu0 %222  ;;  %v225_v55 = vpop.xlane.xlu1 %224 }
  0xb1   : > { %v247_v56 = vmul.f32 0.0078125, %v223_v54  ;;  %v277_v57 = vmul.f32 %v695_v51, %v695_v51  ;;  %v248_v58 = vmul.f32 0.0078125, %v225_v55  ;;  %v278_v61 = vmul.f32 %v697_v52, %v697_v52 }
  0xb3   : > { %v703_v59 = vsub.f32 %v532_v13, %v247_v56  ;;  %297 = vadd.xlane.f32.xlu1 %v276_v53  ;;  %299 = vadd.xlane.f32.xlu0 %v277_v57  ;;  %v705_v60 = vsub.f32 %v533_v14, %v248_v58  ;;  %v759_v58 = vld [vmem:[%s834_s2] ss:$0 sm:$0xff] }
  0xb4   : > { %v227_v62 = vpop.xlane.xlu0 %226  ;;  %v229_v63 = vpop.xlane.xlu1 %228 }
  0xb5   : > { %v249_v0 = vmul.f32 0.0078125, %v227_v62  ;;  %v279_v1 = vmul.f32 %v703_v59, %v703_v59  ;;  %v250_v2 = vmul.f32 0.0078125, %v229_v63  ;;  %v280_v5 = vmul.f32 %v705_v60, %v705_v60 }
  0xb7   : > { %v713_v3 = vsub.f32 %v536_v16, %v249_v0  ;;  %301 = vadd.xlane.f32.xlu1 %v278_v61  ;;  %303 = vadd.xlane.f32.xlu0 %v279_v1  ;;  %v717_v4 = vsub.f32 %v537_v17, %v250_v2 }
  0xb8   : > { %v231_v6 = vpop.xlane.xlu0 %230  ;;  %v233_v7 = vpop.xlane.xlu1 %232 }
  0xb9   : > { %v251_v8 = vmul.f32 0.0078125, %v231_v6  ;;  %v281_v9 = vmul.f32 %v713_v3, %v713_v3  ;;  %v252_v10 = vmul.f32 0.0078125, %v233_v7  ;;  %v282_v13 = vmul.f32 %v717_v4, %v717_v4 }
  0xbb   : > { %v725_v11 = vsub.f32 %v540_v19, %v251_v8  ;;  %305 = vadd.xlane.f32.xlu1 %v280_v5  ;;  %307 = vadd.xlane.f32.xlu0 %v281_v9  ;;  %v729_v12 = vsub.f32 %v541_v20, %v252_v10 }
  0xbc   : > { %v235_v14 = vpop.xlane.xlu0 %234  ;;  %v237_v15 = vpop.xlane.xlu1 %236 }
  0xbd   : > { %v253_v16 = vmul.f32 0.0078125, %v235_v14  ;;  %v283_v17 = vmul.f32 %v725_v11, %v725_v11  ;;  %v254_v24 = vmul.f32 0.0078125, %v237_v15  ;;  %v284_v20 = vmul.f32 %v729_v12, %v729_v12 }
  0xbf   : > { %v737_v19 = vsub.f32 %v544_v22, %v253_v16  ;;  %309 = vadd.xlane.f32.xlu1 %v282_v13  ;;  %311 = vadd.xlane.f32.xlu0 %v283_v17  ;;  %v741_v18 = vsub.f32 %v545_v23, %v254_v24 }
  0xc1   : > { %v285_v25 = vmul.f32 %v737_v19, %v737_v19  ;;  %v286_v26 = vmul.f32 %v741_v18, %v741_v18 }
  0xc3   : > { %313 = vadd.xlane.f32.xlu1 %v284_v20  ;;  %315 = vadd.xlane.f32.xlu0 %v285_v25 }
  0xc7   : > { %317 = vadd.xlane.f32.xlu1 %v286_v26 }
 0x134   : > { %v288_v22 = vpop.xlane.xlu0 %287 }
 0x135   : > { %v319_v27 = vmul.f32 0.0078125, %v288_v22 }
 0x137   : > { %v335_v30 = vadd.f32 1e-06, %v319_v27 }
 0x138   : > { %v290_v31 = vpop.xlane.xlu1 %289  ;;  %v292_v32 = vpop.xlane.xlu0 %291 }
 0x139   : > { %561 = vrsqrt.f32 %v335_v30  ;;  %v320_v21 = vmul.f32 0.0078125, %v290_v31  ;;  %v321_v23 = vmul.f32 0.0078125, %v292_v32 }
 0x13b   : > { %v336_v33 = vadd.f32 1e-06, %v320_v21  ;;  %v337_v34 = vadd.f32 1e-06, %v321_v23 }
 0x13c   : > { %v294_v37 = vpop.xlane.xlu1 %293  ;;  %v296_v38 = vpop.xlane.xlu0 %295 }
 0x13d   : > { %563 = vrsqrt.f32 %v336_v33  ;;  %v322_v39 = vmul.f32 0.0078125, %v294_v37  ;;  %v323_v40 = vmul.f32 0.0078125, %v296_v38 }
 0x13e   : > { %565 = vrsqrt.f32 %v337_v34 }
 0x13f   : > { %v338_v41 = vadd.f32 1e-06, %v322_v39  ;;  %v339_v42 = vadd.f32 1e-06, %v323_v40 }
 0x140   : > { %v298_v45 = vpop.xlane.xlu1 %297  ;;  %v300_v46 = vpop.xlane.xlu0 %299 }
 0x141   : > { %567 = vrsqrt.f32 %v338_v41  ;;  %v324_v47 = vmul.f32 0.0078125, %v298_v45  ;;  %v325_v48 = vmul.f32 0.0078125, %v300_v46 }
 0x142   : > { %569 = vrsqrt.f32 %v339_v42 }
 0x143   : > { %v562_v49 = vpop.eup %561  ;;  %v340_v53 = vadd.f32 1e-06, %v324_v47  ;;  %v341_v54 = vadd.f32 1e-06, %v325_v48 }
 0x144   : > { %v367_v55 = vmul.f32 %v562_v49, %v673_v28  ;;  %v302_v56 = vpop.xlane.xlu1 %301  ;;  %v304_v57 = vpop.xlane.xlu0 %303 }
 0x145   : > { %571 = vrsqrt.f32 %v340_v53  ;;  %v326_v61 = vmul.f32 0.0078125, %v302_v56  ;;  %v327_v62 = vmul.f32 0.0078125, %v304_v57 }
 0x146   : > { %v390_v63 = vmul.f32 %v752_v50, %v367_v55  ;;  %573 = vrsqrt.f32 %v341_v54 }
 0x147   : > { %v564_v0 = vpop.eup %563  ;;  %v342_v28 = vadd.f32 1e-06, %v326_v61  ;;  %v343_v1 = vadd.f32 1e-06, %v327_v62 }
 0x148   : > { %v566_v2 = vpop.eup %565  ;;  %v413_v5 = vadd.f32 %v759_v58, %v390_v63  ;;  %v368_v6 = vmul.f32 %v564_v0, %v679_v35  ;;  %v306_v7 = vpop.xlane.xlu1 %305 }
 0x149   : > { %v308_v8 = vpop.xlane.xlu0 %307  ;;  %v369_v9 = vmul.f32 %v566_v2, %v675_v29  ;;  %575 = vrsqrt.f32 %v342_v28  ;;  %v328_v10 = vmul.f32 0.0078125, %v306_v7 }
 0x14a   : > { %v329_v13 = vmul.f32 0.0078125, %v308_v8  ;;  %429 = vst [vmem:[%s765_s26] sm:$0xff] %v413_v5  ;;  %v391_v14 = vmul.f32 %v752_v50, %v368_v6  ;;  %577 = vrsqrt.f32 %v343_v1 }
 0x14b   : > { %v568_v15 = vpop.eup %567  ;;  %v392_v16 = vmul.f32 %v752_v50, %v369_v9  ;;  %v344_v17 = vadd.f32 1e-06, %v328_v10 }
 0x14c   : > { %v345_v24 = vadd.f32 1e-06, %v329_v13  ;;  %v570_v20 = vpop.eup %569  ;;  %v414_v35 = vadd.f32 %v759_v58, %v391_v14  ;;  %v370_v25 = vmul.f32 %v568_v15, %v681_v36  ;;  %v310_v29 = vpop.xlane.xlu1 %309 }
 0x14d   : > { %v312_v26 = vpop.xlane.xlu0 %311  ;;  %v415_v22 = vadd.f32 %v759_v58, %v392_v16  ;;  %v371_v27 = vmul.f32 %v570_v20, %v687_v43  ;;  %579 = vrsqrt.f32 %v344_v17  ;;  %v330_v30 = vmul.f32 0.0078125, %v310_v29 }
 0x14e   : > { %430 = vst [vmem:[%s765_s26 + $0x8] sm:$0xff] %v414_v35  ;;  %v393_v31 = vmul.f32 %v752_v50, %v370_v25  ;;  %581 = vrsqrt.f32 %v345_v24  ;;  %v331_v32 = vmul.f32 0.0078125, %v312_v26 }
 0x14f   : > { %v572_v21 = vpop.eup %571  ;;  %431 = vst [vmem:[%s765_s26 + $0x10] sm:$0xff] %v415_v22  ;;  %v394_v23 = vmul.f32 %v752_v50, %v371_v27  ;;  %v346_v33 = vadd.f32 1e-06, %v330_v30 }
 0x150   : > { %v574_v36 = vpop.eup %573  ;;  %v416_v34 = vadd.f32 %v759_v58, %v393_v31  ;;  %v372_v37 = vmul.f32 %v572_v21, %v689_v44  ;;  %v347_v43 = vadd.f32 1e-06, %v331_v32  ;;  %v314_v38 = vpop.xlane.xlu1 %313 }
 0x151   : > { %v316_v39 = vpop.xlane.xlu0 %315  ;;  %v417_v40 = vadd.f32 %v759_v58, %v394_v23  ;;  %v373_v41 = vmul.f32 %v574_v36, %v695_v51  ;;  %583 = vrsqrt.f32 %v346_v33  ;;  %v332_v42 = vmul.f32 0.0078125, %v314_v38 }
 0x152   : > { %432 = vst [vmem:[%s765_s26 + $0x18] sm:$0xff] %v416_v34  ;;  %v395_v45 = vmul.f32 %v752_v50, %v372_v37  ;;  %585 = vrsqrt.f32 %v347_v43  ;;  %v333_v46 = vmul.f32 0.0078125, %v316_v39 }
 0x153   : > { %v576_v47 = vpop.eup %575  ;;  %433 = vst [vmem:[%s765_s26 + $0x20] sm:$0xff] %v417_v40  ;;  %v396_v44 = vmul.f32 %v752_v50, %v373_v41  ;;  %v348_v48 = vadd.f32 1e-06, %v332_v42 }
 0x154   : > { %v578_v49 = vpop.eup %577  ;;  %v418_v53 = vadd.f32 %v759_v58, %v395_v45  ;;  %v374_v54 = vmul.f32 %v576_v47, %v697_v52  ;;  %v349_v51 = vadd.f32 1e-06, %v333_v46  ;;  %v318_v55 = vpop.xlane.xlu1 %317 }
 0x155   : > { %v419_v56 = vadd.f32 %v759_v58, %v396_v44  ;;  %v375_v57 = vmul.f32 %v578_v49, %v703_v59  ;;  %587 = vrsqrt.f32 %v348_v48  ;;  %v334_v61 = vmul.f32 0.0078125, %v318_v55 }
 0x156   : > { %434 = vst [vmem:[%s765_s26 + $0x28] sm:$0xff] %v418_v53  ;;  %v397_v62 = vmul.f32 %v752_v50, %v374_v54  ;;  %589 = vrsqrt.f32 %v349_v51 }
 0x157   : > { %v580_v63 = vpop.eup %579  ;;  %435 = vst [vmem:[%s765_s26 + $0x30] sm:$0xff] %v419_v56  ;;  %v398_v0 = vmul.f32 %v752_v50, %v375_v57  ;;  %v350_v28 = vadd.f32 1e-06, %v334_v61 }
 0x158   : > { %v582_v52 = vpop.eup %581  ;;  %v420_v1 = vadd.f32 %v759_v58, %v397_v62  ;;  %v376_v2 = vmul.f32 %v580_v63, %v705_v60 }
 0x159   : > { %v421_v59 = vadd.f32 %v759_v58, %v398_v0  ;;  %v377_v5 = vmul.f32 %v582_v52, %v713_v3  ;;  %591 = vrsqrt.f32 %v350_v28 }
 0x15a   : > { %436 = vst [vmem:[%s765_s26 + $0x38] sm:$0xff] %v420_v1  ;;  %v399_v6 = vmul.f32 %v752_v50, %v376_v2 }
 0x15b   : > { %v584_v7 = vpop.eup %583  ;;  %437 = vst [vmem:[%s765_s26 + $0x40] sm:$0xff] %v421_v59  ;;  %v400_v8 = vmul.f32 %v752_v50, %v377_v5 }
 0x15c   : > { %v586_v9 = vpop.eup %585  ;;  %v422_v10 = vadd.f32 %v759_v58, %v399_v6  ;;  %v378_v13 = vmul.f32 %v584_v7, %v717_v4 }
 0x15d   : > { %v423_v60 = vadd.f32 %v759_v58, %v400_v8  ;;  %v379_v14 = vmul.f32 %v586_v9, %v725_v11 }
 0x15e   : > { %438 = vst [vmem:[%s765_s26 + $0x48] sm:$0xff] %v422_v10  ;;  %v401_v3 = vmul.f32 %v752_v50, %v378_v13 }
 0x15f   : > { %v588_v15 = vpop.eup %587  ;;  %439 = vst [vmem:[%s765_s26 + $0x50] sm:$0xff] %v423_v60  ;;  %v402_v16 = vmul.f32 %v752_v50, %v379_v14 }
 0x160   : > { %v590_v17 = vpop.eup %589  ;;  %v424_v24 = vadd.f32 %v759_v58, %v401_v3  ;;  %v380_v4 = vmul.f32 %v588_v15, %v729_v12 }
 0x161   : > { %v425_v20 = vadd.f32 %v759_v58, %v402_v16  ;;  %v381_v35 = vmul.f32 %v590_v17, %v737_v19 }
 0x162   : > { %440 = vst [vmem:[%s765_s26 + $0x58] sm:$0xff] %v424_v24  ;;  %v403_v11 = vmul.f32 %v752_v50, %v380_v4 }
 0x163   : > { %v592_v25 = vpop.eup %591  ;;  %441 = vst [vmem:[%s765_s26 + $0x60] sm:$0xff] %v425_v20  ;;  %v404_v29 = vmul.f32 %v752_v50, %v381_v35 }
 0x164   : > { %v426_v26 = vadd.f32 %v759_v58, %v403_v11  ;;  %v382_v22 = vmul.f32 %v592_v25, %v741_v18 }
 0x165   : > { %v427_v27 = vadd.f32 %v759_v58, %v404_v29 }
 0x166   : > { %442 = vst [vmem:[%s765_s26 + $0x68] sm:$0xff] %v426_v26  ;;  %v405_v12 = vmul.f32 %v752_v50, %v382_v22 }
 0x167   : > { %443 = vst [vmem:[%s765_s26 + $0x70] sm:$0xff] %v427_v27 }
 0x168   : > { %v428_v30 = vadd.f32 %v759_v58, %v405_v12 }
 0x16a   : > { %444 = vst [vmem:[%s765_s26 + $0x78] sm:$0xff] %v428_v30 }
 0x16b PF: > { %s13_s12 = sadd.s32 1, %s599_s12  }
 0x16c   : > { %p10_p4 = scmp.ge.s32.totalorder %s13_s12, 4  }
 0x16e   :  { %12 = sbr.rel (!%p10_p4) target bundleno = 1 (0x1), region = 62 }

// kernel: siglip_text_model.9
= control target key start
LH: loop header
LB: loop body
LE: loop exit
PB: predicated region body
PF: predicated region fallthrough
CT: control target
= control target key end

     0   :  { %s4523_s0 = inlined_call_operand.vmem [shape: bf16[256,128], index: 0, kind: input, shape index: {}]   ;;  %s4524_s1 = inlined_call_operand.vmem [shape: f32[1,128], index: 1, kind: input, shape index: {}]   ;;  %s4525_s2 = inlined_call_operand.vmem [shape: f32[1,128], index: 2, kind: input, shape index: {}]   ;;  %s4526_s3 = inlined_call_operand.vmem [shape: bf16[128,1024], index: 3, kind: input, shape index: {}]   ;;  %s4527_s4 = inlined_call_operand.vmem [shape: f32[1,1024], index: 4, kind: input, shape index: {}]   ;;  %s4528_s5 = inlined_call_operand.vmem [shape: bf16[1024,128], index: 5, kind: input, shape index: {}]   ;;  %s4529_s6 = inlined_call_operand.vmem [shape: f32[1,128], index: 6, kind: input, shape index: {}]   ;;  %s4530_s7 = inlined_call_operand.vmem [shape: bf16[256,128], index: 7, kind: output, shape index: {}]  }
   0x1   :  { %4593 = sst [smem:[#allocation61_spill]] %s4526_s3 }
   0x2   :  { %s3242_s24 = smov 0   ;;  %s3244_s25 = smov 0  }
   0x3   :  { %s3246_s26 = smov 0   ;;  %s3248_s27 = smov 0  }
   0x4   :  { %s3250_s28 = smov 0   ;;  %s3252_s29 = smov 0  }
   0x5   :  { %s3254_s30 = smov 0  }
   0x6 LB: > { %s26_s8 = sadd.s32 1, %s3191_s28  ;;  %s29_s9 = sadd.s32 1, %s3195_s29  ;;  %s3199_s30 = sphi %s3254_s30, %s17_s30   ;;  %s3195_s29 = sphi %s3252_s29, %s4744_s29   ;;  %s3191_s28 = sphi %s3250_s28, %s4743_s28   ;;  %s3187_s27 = sphi %s3248_s27, %s4742_s27   ;;  %s3183_s26 = sphi %s3246_s26, %s4741_s26   ;;  %s3179_s25 = sphi %s3244_s25, %s4740_s25   ;;  %s3175_s24 = sphi %s3242_s24, %s4739_s24  }
   0x7   : > { %p27_p0 = scmp.ge.s32.totalorder %s26_s8, 2  ;;  %s104_s10 = sadd.s32 1, %s3179_s25 }
   0x8   : > { %p111_p1 = scmp.ne.s32.totalorder %s3179_s25, %s3175_s24  ;;  %p112_p2 = scmp.eq.s32.totalorder %s3199_s30, 0 }
   0x9   : > { %s4746_s8 = smov (%p27_p0, %s26_s8), 0  ;;  %s4748_s9 = smov (!%p27_p0, %s29_s9), %s3195_s29 }
   0xa   : > { %s101_s11 = ssub.s32 %s3191_s28, %s4746_s8  ;;  %p113_p3 = por %p112_p2, %p111_p1 }
   0xb   : > { %p31_p4 = scmp.ge.s32.totalorder %s4748_s9, 2  ;;  %p102_p5 = scmp.eq.s32.totalorder %s101_s11, 0 }
   0xc   : > { %p2517_p6 = scmp.ge.s32.totalorder %s3199_s30, 4 }
   0xd   : > { %s4750_s9 = smov (%p31_p4, %s4748_s9), 0 }
   0xe   : > { %s3291_s12 = scalar_select %p102_p5, %s3179_s25, %s104_s10  }
   0xf   : > { %245 = sbr.rel (%p2517_p6) target bundleno = 48 (0x30), region = 28 }
  0x16   : > { %257 = sbr.rel (!%p113_p3) target bundleno = 48 (0x30), region = 36  ;;  %s259_s13 = sand.u32 (%p113_p3), 1, %s3179_s25  }
  0x17   : > { %s2617_s14 = sshll.u32 (%p113_p3), %s3191_s28, 4  ;;  %s2518_s15 = sshll.u32 (%p113_p3), %s259_s13, 8 }
  0x18   : > { %s4594_s3 = sld [smem:[#allocation61_spill]] (%p113_p3)  ;;  %s3304_s19 = scalar_lea.vmem (%p113_p3), [#allocation4], %s2518_s15 }
  0x1e   : > { %s3299_s18 = scalar_lea.vmem %s4594_s3, %s2617_s14 }
  0x1f   : > { %v277_v0 = vld [vmem:[%s3299_s18] sm:$0xff]  ;;  %v279_v1 = vld [vmem:[%s3299_s18 + $0x8] sm:$0xff] }
  0x20   : > { %v281_v2 = vld [vmem:[%s3299_s18 + $0x20] sm:$0xff]  ;;  %278 = vst [vmem:[%s3304_s19] sm:$0xff] %v277_v0  ;;  %280 = vst [vmem:[%s3304_s19 + $0x8] sm:$0xff] %v279_v1  ;;  %v283_v3 = vld [vmem:[%s3299_s18 + $0x28] sm:$0xff] }
  0x21   : > { %282 = vst [vmem:[%s3304_s19 + $0x10] sm:$0xff] %v281_v2  ;;  %v285_v4 = vld [vmem:[%s3299_s18 + $0x40] sm:$0xff]  ;;  %v287_v5 = vld [vmem:[%s3299_s18 + $0x48] sm:$0xff]  ;;  %284 = vst [vmem:[%s3304_s19 + $0x18] sm:$0xff] %v283_v3 }
  0x22   : > { %286 = vst [vmem:[%s3304_s19 + $0x20] sm:$0xff] %v285_v4  ;;  %288 = vst [vmem:[%s3304_s19 + $0x28] sm:$0xff] %v287_v5  ;;  %v289_v6 = vld [vmem:[%s3299_s18 + $0x60] sm:$0xff]  ;;  %v291_v7 = vld [vmem:[%s3299_s18 + $0x68] sm:$0xff] }
  0x23   : > { %v293_v8 = vld [vmem:[%s3299_s18 + $0x80] sm:$0xff]  ;;  %290 = vst [vmem:[%s3304_s19 + $0x30] sm:$0xff] %v289_v6  ;;  %292 = vst [vmem:[%s3304_s19 + $0x38] sm:$0xff] %v291_v7  ;;  %v295_v9 = vld [vmem:[%s3299_s18 + $0x88] sm:$0xff] }
  0x24   : > { %294 = vst [vmem:[%s3304_s19 + $0x40] sm:$0xff] %v293_v8  ;;  %v297_v10 = vld [vmem:[%s3299_s18 + $0xa0] sm:$0xff]  ;;  %v299_v11 = vld [vmem:[%s3299_s18 + $0xa8] sm:$0xff]  ;;  %296 = vst [vmem:[%s3304_s19 + $0x48] sm:$0xff] %v295_v9 }
  0x25   : > { %298 = vst [vmem:[%s3304_s19 + $0x50] sm:$0xff] %v297_v10  ;;  %300 = vst [vmem:[%s3304_s19 + $0x58] sm:$0xff] %v299_v11  ;;  %v301_v12 = vld [vmem:[%s3299_s18 + $0xc0] sm:$0xff]  ;;  %v303_v13 = vld [vmem:[%s3299_s18 + $0xc8] sm:$0xff] }
  0x26   : > { %v305_v14 = vld [vmem:[%s3299_s18 + $0xe0] sm:$0xff]  ;;  %302 = vst [vmem:[%s3304_s19 + $0x60] sm:$0xff] %v301_v12  ;;  %304 = vst [vmem:[%s3304_s19 + $0x68] sm:$0xff] %v303_v13  ;;  %v307_v15 = vld [vmem:[%s3299_s18 + $0xe8] sm:$0xff] }
  0x27   : > { %306 = vst [vmem:[%s3304_s19 + $0x70] sm:$0xff] %v305_v14  ;;  %v309_v16 = vld [vmem:[%s3299_s18 + $0x100] sm:$0xff]  ;;  %v311_v17 = vld [vmem:[%s3299_s18 + $0x108] sm:$0xff]  ;;  %308 = vst [vmem:[%s3304_s19 + $0x78] sm:$0xff] %v307_v15 }
  0x28   : > { %310 = vst [vmem:[%s3304_s19 + $0x80] sm:$0xff] %v309_v16  ;;  %312 = vst [vmem:[%s3304_s19 + $0x88] sm:$0xff] %v311_v17  ;;  %v313_v18 = vld [vmem:[%s3299_s18 + $0x120] sm:$0xff]  ;;  %v315_v19 = vld [vmem:[%s3299_s18 + $0x128] sm:$0xff] }
  0x29   : > { %v317_v20 = vld [vmem:[%s3299_s18 + $0x140] sm:$0xff]  ;;  %314 = vst [vmem:[%s3304_s19 + $0x90] sm:$0xff] %v313_v18  ;;  %316 = vst [vmem:[%s3304_s19 + $0x98] sm:$0xff] %v315_v19  ;;  %v319_v21 = vld [vmem:[%s3299_s18 + $0x148] sm:$0xff] }
  0x2a   : > { %318 = vst [vmem:[%s3304_s19 + $0xa0] sm:$0xff] %v317_v20  ;;  %v321_v22 = vld [vmem:[%s3299_s18 + $0x160] sm:$0xff]  ;;  %v323_v23 = vld [vmem:[%s3299_s18 + $0x168] sm:$0xff]  ;;  %320 = vst [vmem:[%s3304_s19 + $0xa8] sm:$0xff] %v319_v21 }
  0x2b   : > { %322 = vst [vmem:[%s3304_s19 + $0xb0] sm:$0xff] %v321_v22  ;;  %324 = vst [vmem:[%s3304_s19 + $0xb8] sm:$0xff] %v323_v23  ;;  %v325_v24 = vld [vmem:[%s3299_s18 + $0x180] sm:$0xff]  ;;  %v327_v25 = vld [vmem:[%s3299_s18 + $0x188] sm:$0xff] }
  0x2c   : > { %v329_v26 = vld [vmem:[%s3299_s18 + $0x1a0] sm:$0xff]  ;;  %326 = vst [vmem:[%s3304_s19 + $0xc0] sm:$0xff] %v325_v24  ;;  %328 = vst [vmem:[%s3304_s19 + $0xc8] sm:$0xff] %v327_v25  ;;  %v331_v27 = vld [vmem:[%s3299_s18 + $0x1a8] sm:$0xff] }
  0x2d   : > { %330 = vst [vmem:[%s3304_s19 + $0xd0] sm:$0xff] %v329_v26  ;;  %v333_v28 = vld [vmem:[%s3299_s18 + $0x1c0] sm:$0xff]  ;;  %v335_v29 = vld [vmem:[%s3299_s18 + $0x1c8] sm:$0xff]  ;;  %332 = vst [vmem:[%s3304_s19 + $0xd8] sm:$0xff] %v331_v27 }
  0x2e   : > { %334 = vst [vmem:[%s3304_s19 + $0xe0] sm:$0xff] %v333_v28  ;;  %336 = vst [vmem:[%s3304_s19 + $0xe8] sm:$0xff] %v335_v29  ;;  %v337_v30 = vld [vmem:[%s3299_s18 + $0x1e0] sm:$0xff]  ;;  %v339_v31 = vld [vmem:[%s3299_s18 + $0x1e8] sm:$0xff] }
  0x2f   : > { %338 = vst [vmem:[%s3304_s19 + $0xf0] sm:$0xff] %v337_v30  ;;  %340 = vst [vmem:[%s3304_s19 + $0xf8] sm:$0xff] %v339_v31 }
  0x30 PF: > { %p2521_p7 = scmp.ge.s32.totalorder %s3199_s30, 1  ;;  %p362_p8 = scmp.lt.s32.totalorder %s3199_s30, 5 }
  0x32   : > { %p363_p9 = pnand %p2521_p7, %p362_p8 }
  0x34   : > { %366 = sbr.rel (%p363_p9) target bundleno = 1076 (0x434), region = 67 }
  0x3b   : > { %s369_s20 = sand.u32 1, %s3175_s24   ;;  %s2523_s21 = sshll.u32 %s3187_s27, 4 }
  0x3c   : > { %s2522_s22 = sshll.u32 %s369_s20, 8  ;;  %p415_p10 = scmp.lt.s32.totalorder %s2523_s21, 31 }
  0x3d   : > { %s2525_s23 = sshll.u32 %s3183_s26, 2  ;;  %s2526_s10 = sshll.u32 %s3183_s26, 6 }
  0x3e   : > { %s4752_s21 = smov (!%p415_p10, %s2523_s21), 31  ;;  %p422_p11 = scmp.lt.s32.totalorder %s2525_s23, 7 }
  0x3f   : > { %s2524_s11 = sshll.u32 %s4752_s21, 2  ;;  %p427_p12 = scmp.lt.s32.totalorder %s2526_s10, 127 }
  0x40   : > { %s3376_s15 = scalar_lea.vmem %s4523_s0, %s2524_s11  ;;  %s3381_s18 = scalar_lea.vmem %s4530_s7, %s2524_s11 }
  0x41   : > { %s4754_s23 = smov (!%p422_p11, %s2525_s23), 7  ;;  %s4756_s10 = smov (!%p427_p12, %s2526_s10), 127 }
  0x42   : > { %s424_s19 = scalar_lea.vmem %s4527_s4, %s4754_s23  ;;  %s2527_s20 = sshll.u32 %s4756_s10, 2 }
  0x43   : > { %s3392_s13 = scalar_lea.vmem %s4528_s5, %s2527_s20  ;;  %s3394_s14 = scalar_lea.vmem [#allocation4], %s2522_s22 }
  0x44   : > { %p2530_p13 = scmp.ne.s32.totalorder %s3183_s26, 0 }
  0x45   : > { %v2635_v32 = vld [vmem:[%s3376_s15] sm:$0xff] (!%p2530_p13)   ;;  %v2706_v34 = vld [vmem:[%s3376_s15 + $0x8] sm:$0xff] (!%p2530_p13)   ;;  %v2707_v39 = vld [vmem:[%s3376_s15 + $0x10] sm:$0xff] (!%p2530_p13)  }
  0x46   : > { %442 = sbr.rel (%p2530_p13) target bundleno = 418 (0x1a2), region = 75  ;;  %v2533_v33 = vld [vmem:[%s4529_s6] ss:$0 sm:$0xff] (!%p2530_p13)  ;;  %v3402_v35 = vunpack.c.l.bf16 (!%p2530_p13), %v2635_v32  ;;  %v3404_v36 = vunpack.c.l.bf16 (!%p2530_p13), %v2706_v34  ;;  %v3406_v37 = vunpack.c.h.bf16 (!%p2530_p13), %v2635_v32  ;;  %v3408_v38 = vunpack.c.h.bf16 (!%p2530_p13), %v2706_v34  ;;  %v2708_v40 = vld [vmem:[%s3376_s15 + $0x18] sm:$0xff] (!%p2530_p13)   ;;  %v2710_v46 = vld [vmem:[%s3376_s15 + $0x28] sm:$0xff] (!%p2530_p13)  }
  0x47   : > { %v2709_v41 = vld [vmem:[%s3376_s15 + $0x20] sm:$0xff] (!%p2530_p13)   ;;  %v3413_v42 = vunpack.c.l.bf16 (!%p2530_p13), %v2707_v39  ;;  %v3415_v43 = vunpack.c.h.bf16 (!%p2530_p13), %v2707_v39  ;;  %v3417_v44 = vunpack.c.l.bf16 (!%p2530_p13), %v2708_v40  ;;  %v3419_v45 = vunpack.c.h.bf16 (!%p2530_p13), %v2708_v40  ;;  %v2711_v51 = vld [vmem:[%s3376_s15 + $0x30] sm:$0xff] (!%p2530_p13)   ;;  %v2712_v52 = vld [vmem:[%s3376_s15 + $0x38] sm:$0xff] (!%p2530_p13)  }
  0x48   : > { %475 = vadd.xlane.f32.xlu0 (!%p2530_p13), %v3402_v35  ;;  %v721_v47 = vadd.f32 (!%p2530_p13), %v3402_v35, %v2533_v33  ;;  %479 = vadd.xlane.f32.xlu1 (!%p2530_p13), %v3404_v36  ;;  %v723_v48 = vadd.f32 (!%p2530_p13), %v3404_v36, %v2533_v33  ;;  %v722_v49 = vadd.f32 (!%p2530_p13), %v3406_v37, %v2533_v33  ;;  %v3427_v50 = vunpack.c.l.bf16 (!%p2530_p13), %v2709_v41 }
  0x49   : > { %v724_v53 = vadd.f32 (!%p2530_p13), %v3408_v38, %v2533_v33  ;;  %v725_v54 = vadd.f32 (!%p2530_p13), %v3413_v42, %v2533_v33  ;;  %v726_v55 = vadd.f32 (!%p2530_p13), %v3415_v43, %v2533_v33  ;;  %v727_v56 = vadd.f32 (!%p2530_p13), %v3417_v44, %v2533_v33 }
  0x4a   : > { %737 = vst [vmem:[#allocation2] sm:$0xff] (!%p2530_p13), %v721_v47  ;;  %739 = vst [vmem:[#allocation2 + $0x10] sm:$0xff] (!%p2530_p13), %v723_v48  ;;  %v728_v57 = vadd.f32 (!%p2530_p13), %v3419_v45, %v2533_v33  ;;  %v729_v58 = vadd.f32 (!%p2530_p13), %v3427_v50, %v2533_v33  ;;  %v3437_v59 = vunpack.c.h.bf16 (!%p2530_p13), %v2709_v41  ;;  %v3439_v60 = vunpack.c.l.bf16 (!%p2530_p13), %v2710_v46 }
  0x4b   : > { %738 = vst [vmem:[#allocation2 + $0x8] sm:$0xff] (!%p2530_p13), %v722_v49  ;;  %740 = vst [vmem:[#allocation2 + $0x18] sm:$0xff] (!%p2530_p13), %v724_v53  ;;  %v3441_v61 = vunpack.c.h.bf16 (!%p2530_p13), %v2710_v46  ;;  %v3443_v62 = vunpack.c.l.bf16 (!%p2530_p13), %v2711_v51  ;;  %v3445_v63 = vunpack.c.h.bf16 (!%p2530_p13), %v2711_v51  ;;  %v3447_v0 = vunpack.c.l.bf16 (!%p2530_p13), %v2712_v52 }
  0x4c   : > { %741 = vst [vmem:[#allocation2 + $0x20] sm:$0xff] (!%p2530_p13), %v725_v54  ;;  %742 = vst [vmem:[#allocation2 + $0x28] sm:$0xff] (!%p2530_p13), %v726_v55  ;;  %477 = vadd.xlane.f32.xlu0 (!%p2530_p13), %v3406_v37  ;;  %481 = vadd.xlane.f32.xlu1 (!%p2530_p13), %v3408_v38  ;;  %v730_v1 = vadd.f32 (!%p2530_p13), %v3437_v59, %v2533_v33  ;;  %v731_v2 = vadd.f32 (!%p2530_p13), %v3439_v60, %v2533_v33  ;;  %v3453_v3 = vunpack.c.h.bf16 (!%p2530_p13), %v2712_v52 }
  0x4d   : > { %743 = vst [vmem:[#allocation2 + $0x30] sm:$0xff] %v727_v56  ;;  %744 = vst [vmem:[#allocation2 + $0x38] sm:$0xff] %v728_v57  ;;  %v732_v4 = vadd.f32 %v3441_v61, %v2533_v33  ;;  %v733_v5 = vadd.f32 %v3443_v62, %v2533_v33  ;;  %v734_v6 = vadd.f32 %v3445_v63, %v2533_v33 }
  0x4e   : > { %745 = vst [vmem:[#allocation2 + $0x40] sm:$0xff] %v729_v58  ;;  %v735_v7 = vadd.f32 %v3447_v0, %v2533_v33  ;;  %746 = vst [vmem:[#allocation2 + $0x48] sm:$0xff] %v730_v1  ;;  %v736_v8 = vadd.f32 %v3453_v3, %v2533_v33 }
  0x4f   : > { %747 = vst [vmem:[#allocation2 + $0x50] sm:$0xff] %v731_v2  ;;  %748 = vst [vmem:[#allocation2 + $0x58] sm:$0xff] %v732_v4 }
  0x50   : > { %749 = vst [vmem:[#allocation2 + $0x60] sm:$0xff] %v733_v5  ;;  %750 = vst [vmem:[#allocation2 + $0x68] sm:$0xff] %v734_v6  ;;  %483 = vadd.xlane.f32.xlu0 %v3413_v42  ;;  %485 = vadd.xlane.f32.xlu1 %v3415_v43 }
  0x51   : > { %751 = vst [vmem:[#allocation2 + $0x70] sm:$0xff] %v735_v7  ;;  %752 = vst [vmem:[#allocation2 + $0x78] sm:$0xff] %v736_v8 }
  0x54   : > { %487 = vadd.xlane.f32.xlu0 %v3417_v44  ;;  %489 = vadd.xlane.f32.xlu1 %v3419_v45 }
  0x58   : > { %491 = vadd.xlane.f32.xlu0 %v3427_v50  ;;  %493 = vadd.xlane.f32.xlu1 %v3437_v59 }
  0x5c   : > { %495 = vadd.xlane.f32.xlu0 %v3439_v60  ;;  %497 = vadd.xlane.f32.xlu1 %v3441_v61 }
  0x60   : > { %499 = vadd.xlane.f32.xlu0 %v3443_v62  ;;  %501 = vadd.xlane.f32.xlu1 %v3445_v63 }
  0x64   : > { %503 = vadd.xlane.f32.xlu0 %v3447_v0  ;;  %505 = vadd.xlane.f32.xlu1 %v3453_v3 }
  0xd5   : > { %v476_v9 = vpop.xlane.xlu0 %475  ;;  %v480_v10 = vpop.xlane.xlu1 %479 }
  0xd6   : > { %v508_v11 = vmul.f32 0.0078125, %v476_v9  ;;  %v510_v12 = vmul.f32 0.0078125, %v480_v10 }
  0xd8   : > { %v3473_v13 = vsub.f32 %v3402_v35, %v508_v11  ;;  %v3476_v14 = vsub.f32 %v3404_v36, %v510_v12 }
  0xd9   : > { %v478_v15 = vpop.xlane.xlu0 %477  ;;  %v482_v16 = vpop.xlane.xlu1 %481 }
  0xda   : > { %v509_v17 = vmul.f32 0.0078125, %v478_v15  ;;  %v540_v18 = vmul.f32 %v3473_v13, %v3473_v13  ;;  %v511_v19 = vmul.f32 0.0078125, %v482_v16  ;;  %v542_v22 = vmul.f32 %v3476_v14, %v3476_v14 }
  0xdc   : > { %v3481_v20 = vsub.f32 %v3406_v37, %v509_v17  ;;  %556 = vadd.xlane.f32.xlu0 %v540_v18  ;;  %v3484_v21 = vsub.f32 %v3408_v38, %v511_v19 }
  0xdd   : > { %v484_v23 = vpop.xlane.xlu0 %483  ;;  %v486_v24 = vpop.xlane.xlu1 %485 }
  0xde   : > { %v512_v25 = vmul.f32 0.0078125, %v484_v23  ;;  %v541_v26 = vmul.f32 %v3481_v20, %v3481_v20  ;;  %v513_v27 = vmul.f32 0.0078125, %v486_v24  ;;  %v543_v30 = vmul.f32 %v3484_v21, %v3484_v21 }
  0xe0   : > { %v3491_v28 = vsub.f32 %v3413_v42, %v512_v25  ;;  %560 = vadd.xlane.f32.xlu0 %v542_v22  ;;  %558 = vadd.xlane.f32.xlu1 %v541_v26  ;;  %v3494_v29 = vsub.f32 %v3415_v43, %v513_v27 }
  0xe1   : > { %v488_v31 = vpop.xlane.xlu0 %487  ;;  %v490_v32 = vpop.xlane.xlu1 %489 }
  0xe2   : > { %v514_v33 = vmul.f32 0.0078125, %v488_v31  ;;  %v544_v34 = vmul.f32 %v3491_v28, %v3491_v28  ;;  %v515_v35 = vmul.f32 0.0078125, %v490_v32  ;;  %v545_v38 = vmul.f32 %v3494_v29, %v3494_v29 }
  0xe4   : > { %v3501_v36 = vsub.f32 %v3417_v44, %v514_v33  ;;  %562 = vadd.xlane.f32.xlu1 %v543_v30  ;;  %564 = vadd.xlane.f32.xlu0 %v544_v34  ;;  %v3504_v37 = vsub.f32 %v3419_v45, %v515_v35 }
  0xe5   : > { %v492_v39 = vpop.xlane.xlu0 %491  ;;  %v494_v40 = vpop.xlane.xlu1 %493 }
  0xe6   : > { %v516_v41 = vmul.f32 0.0078125, %v492_v39  ;;  %v546_v42 = vmul.f32 %v3501_v36, %v3501_v36  ;;  %v517_v43 = vmul.f32 0.0078125, %v494_v40  ;;  %v547_v45 = vmul.f32 %v3504_v37, %v3504_v37 }
  0xe8   : > { %v3511_v46 = vsub.f32 %v3427_v50, %v516_v41  ;;  %566 = vadd.xlane.f32.xlu1 %v545_v38  ;;  %568 = vadd.xlane.f32.xlu0 %v546_v42  ;;  %v3514_v44 = vsub.f32 %v3437_v59, %v517_v43  ;;  %v3556_v42 = vld [vmem:[%s4524_s1] ss:$0 sm:$0xff] }
  0xe9   : > { %v496_v47 = vpop.xlane.xlu0 %495  ;;  %v498_v48 = vpop.xlane.xlu1 %497 }
  0xea   : > { %v518_v49 = vmul.f32 0.0078125, %v496_v47  ;;  %v548_v51 = vmul.f32 %v3511_v46, %v3511_v46  ;;  %v519_v52 = vmul.f32 0.0078125, %v498_v48  ;;  %v549_v54 = vmul.f32 %v3514_v44, %v3514_v44 }
  0xec   : > { %v3521_v53 = vsub.f32 %v3439_v60, %v518_v49  ;;  %570 = vadd.xlane.f32.xlu1 %v547_v45  ;;  %572 = vadd.xlane.f32.xlu0 %v548_v51  ;;  %v3524_v50 = vsub.f32 %v3441_v61, %v519_v52 }
  0xed   : > { %v500_v55 = vpop.xlane.xlu0 %499  ;;  %v502_v56 = vpop.xlane.xlu1 %501 }
  0xee   : > { %v520_v57 = vmul.f32 0.0078125, %v500_v55  ;;  %v550_v58 = vmul.f32 %v3521_v53, %v3521_v53  ;;  %v521_v59 = vmul.f32 0.0078125, %v502_v56  ;;  %v551_v61 = vmul.f32 %v3524_v50, %v3524_v50  ;;  %v3563_v56 = vld [vmem:[%s4525_s2] ss:$0 sm:$0xff] }
  0xf0   : > { %v3531_v1 = vsub.f32 %v3443_v62, %v520_v57  ;;  %574 = vadd.xlane.f32.xlu1 %v549_v54  ;;  %576 = vadd.xlane.f32.xlu0 %v550_v58  ;;  %v3534_v60 = vsub.f32 %v3445_v63, %v521_v59 }
  0xf1   : > { %v504_v2 = vpop.xlane.xlu0 %503  ;;  %v506_v4 = vpop.xlane.xlu1 %505 }
  0xf2   : > { %v522_v5 = vmul.f32 0.0078125, %v504_v2  ;;  %v552_v6 = vmul.f32 %v3531_v1, %v3531_v1  ;;  %v523_v7 = vmul.f32 0.0078125, %v506_v4  ;;  %v553_v63 = vmul.f32 %v3534_v60, %v3534_v60 }
  0xf4   : > { %v3541_v8 = vsub.f32 %v3447_v0, %v522_v5  ;;  %578 = vadd.xlane.f32.xlu1 %v551_v61  ;;  %580 = vadd.xlane.f32.xlu0 %v552_v6  ;;  %v3544_v62 = vsub.f32 %v3453_v3, %v523_v7 }
  0xf6   : > { %v554_v9 = vmul.f32 %v3541_v8, %v3541_v8  ;;  %v555_v10 = vmul.f32 %v3544_v62, %v3544_v62 }
  0xf8   : > { %582 = vadd.xlane.f32.xlu1 %v553_v63  ;;  %584 = vadd.xlane.f32.xlu0 %v554_v9 }
  0xfc   : > { %586 = vadd.xlane.f32.xlu1 %v555_v10 }
 0x169   : > { %v557_v11 = vpop.xlane.xlu0 %556 }
 0x16a   : > { %v588_v0 = vmul.f32 0.0078125, %v557_v11 }
 0x16c   : > { %v604_v12 = vadd.f32 1e-06, %v588_v0 }
 0x16d   : > { %v559_v15 = vpop.xlane.xlu1 %558  ;;  %v561_v16 = vpop.xlane.xlu0 %560 }
 0x16e   : > { %2905 = vrsqrt.f32 %v604_v12  ;;  %v589_v3 = vmul.f32 0.0078125, %v559_v15  ;;  %v590_v17 = vmul.f32 0.0078125, %v561_v16 }
 0x170   : > { %v605_v18 = vadd.f32 1e-06, %v589_v3  ;;  %v606_v19 = vadd.f32 1e-06, %v590_v17 }
 0x171   : > { %v563_v22 = vpop.xlane.xlu1 %562  ;;  %v565_v23 = vpop.xlane.xlu0 %564 }
 0x172   : > { %2907 = vrsqrt.f32 %v605_v18  ;;  %v591_v24 = vmul.f32 0.0078125, %v563_v22  ;;  %v592_v25 = vmul.f32 0.0078125, %v565_v23 }
 0x173   : > { %2909 = vrsqrt.f32 %v606_v19 }
 0x174   : > { %v607_v26 = vadd.f32 1e-06, %v591_v24  ;;  %v608_v27 = vadd.f32 1e-06, %v592_v25 }
 0x175   : > { %v567_v30 = vpop.xlane.xlu1 %566  ;;  %v569_v31 = vpop.xlane.xlu0 %568 }
 0x176   : > { %2911 = vrsqrt.f32 %v607_v26  ;;  %v593_v32 = vmul.f32 0.0078125, %v567_v30  ;;  %v594_v33 = vmul.f32 0.0078125, %v569_v31 }
 0x177   : > { %2913 = vrsqrt.f32 %v608_v27 }
 0x178   : > { %v2906_v34 = vpop.eup %2905  ;;  %v609_v35 = vadd.f32 1e-06, %v593_v32  ;;  %v610_v38 = vadd.f32 1e-06, %v594_v33 }
 0x179   : > { %v636_v39 = vmul.f32 %v2906_v34, %v3473_v13  ;;  %v571_v40 = vpop.xlane.xlu1 %570  ;;  %v573_v41 = vpop.xlane.xlu0 %572 }
 0x17a   : > { %2915 = vrsqrt.f32 %v609_v35  ;;  %v595_v43 = vmul.f32 0.0078125, %v571_v40  ;;  %v596_v45 = vmul.f32 0.0078125, %v573_v41 }
 0x17b   : > { %2917 = vrsqrt.f32 %v610_v38  ;;  %v659_v52 = vmul.f32 %v3556_v42, %v636_v39 }
 0x17c   : > { %v2908_v47 = vpop.eup %2907  ;;  %v611_v48 = vadd.f32 1e-06, %v595_v43  ;;  %v612_v49 = vadd.f32 1e-06, %v596_v45 }
 0x17d   : > { %v2910_v51 = vpop.eup %2909  ;;  %v637_v54 = vmul.f32 %v2908_v47, %v3481_v20  ;;  %v575_v13 = vpop.xlane.xlu1 %574  ;;  %v682_v20 = vadd.f32 %v3563_v56, %v659_v52 }
 0x17e   : > { %v577_v55 = vpop.xlane.xlu0 %576  ;;  %v638_v57 = vmul.f32 %v2910_v51, %v3476_v14  ;;  %2919 = vrsqrt.f32 %v611_v48  ;;  %v597_v58 = vmul.f32 0.0078125, %v575_v13 }
 0x17f   : > { %v598_v59 = vmul.f32 0.0078125, %v577_v55  ;;  %v660_v61 = vmul.f32 %v3556_v42, %v637_v54  ;;  %2921 = vrsqrt.f32 %v612_v49 }
 0x180   : > { %v2912_v2 = vpop.eup %2911  ;;  %v613_v4 = vadd.f32 1e-06, %v597_v58  ;;  %v661_v63 = vmul.f32 %v3556_v42, %v638_v57 }
 0x181   : > { %v614_v5 = vadd.f32 1e-06, %v598_v59  ;;  %v2914_v6 = vpop.eup %2913  ;;  %v683_v7 = vadd.f32 %v3563_v56, %v660_v61  ;;  %v639_v9 = vmul.f32 %v2912_v2, %v3484_v21  ;;  %v579_v10 = vpop.xlane.xlu1 %578 }
 0x182   : > { %v581_v14 = vpop.xlane.xlu0 %580  ;;  %v640_v11 = vmul.f32 %v2914_v6, %v3491_v28  ;;  %2923 = vrsqrt.f32 %v613_v4  ;;  %v599_v0 = vmul.f32 0.0078125, %v579_v10  ;;  %v684_v22 = vadd.f32 %v3563_v56, %v661_v63 }
 0x183   : > { %v698_v12 = vpack.c.bf16 %v683_v7, %v682_v20  ;;  %v662_v15 = vmul.f32 %v3556_v42, %v639_v9  ;;  %2925 = vrsqrt.f32 %v614_v5  ;;  %v600_v16 = vmul.f32 0.0078125, %v581_v14 }
 0x184   : > { %v2916_v3 = vpop.eup %2915  ;;  %v663_v17 = vmul.f32 %v3556_v42, %v640_v11  ;;  %v615_v18 = vadd.f32 1e-06, %v599_v0 }
 0x185   : > { %v2918_v19 = vpop.eup %2917  ;;  %706 = vst [vmem:[#allocation3] sm:$0xff] %v698_v12  ;;  %v685_v21 = vadd.f32 %v3563_v56, %v662_v15  ;;  %v641_v23 = vmul.f32 %v2916_v3, %v3494_v29  ;;  %v616_v28 = vadd.f32 1e-06, %v600_v16  ;;  %v583_v24 = vpop.xlane.xlu1 %582 }
 0x186   : > { %v585_v25 = vpop.xlane.xlu0 %584  ;;  %v642_v26 = vmul.f32 %v2918_v19, %v3501_v36  ;;  %2927 = vrsqrt.f32 %v615_v18  ;;  %v601_v27 = vmul.f32 0.0078125, %v583_v24  ;;  %v686_v34 = vadd.f32 %v3563_v56, %v663_v17 }
 0x187   : > { %v699_v30 = vpack.c.bf16 %v685_v21, %v684_v22  ;;  %v664_v31 = vmul.f32 %v3556_v42, %v641_v23  ;;  %2929 = vrsqrt.f32 %v616_v28  ;;  %v602_v32 = vmul.f32 0.0078125, %v585_v25 }
 0x188   : > { %v2920_v33 = vpop.eup %2919  ;;  %v617_v35 = vadd.f32 1e-06, %v601_v27  ;;  %v665_v39 = vmul.f32 %v3556_v42, %v642_v26 }
 0x189   : > { %v2922_v38 = vpop.eup %2921  ;;  %707 = vst [vmem:[#allocation3 + $0x8] sm:$0xff] %v699_v30  ;;  %v687_v29 = vadd.f32 %v3563_v56, %v664_v31  ;;  %v643_v40 = vmul.f32 %v2920_v33, %v3504_v37  ;;  %v618_v36 = vadd.f32 1e-06, %v602_v32  ;;  %v587_v41 = vpop.xlane.xlu1 %586 }
 0x18a   : > { %v644_v43 = vmul.f32 %v2922_v38, %v3511_v46  ;;  %2931 = vrsqrt.f32 %v617_v35  ;;  %v603_v45 = vmul.f32 0.0078125, %v587_v41  ;;  %v688_v54 = vadd.f32 %v3563_v56, %v665_v39 }
 0x18b   : > { %v700_v47 = vpack.c.bf16 %v687_v29, %v686_v34  ;;  %v666_v48 = vmul.f32 %v3556_v42, %v643_v40  ;;  %2933 = vrsqrt.f32 %v618_v36 }
 0x18c   : > { %v2924_v49 = vpop.eup %2923  ;;  %v619_v51 = vadd.f32 1e-06, %v603_v45  ;;  %v667_v37 = vmul.f32 %v3556_v42, %v644_v43 }
 0x18d   : > { %v2926_v52 = vpop.eup %2925  ;;  %708 = vst [vmem:[#allocation3 + $0x10] sm:$0xff] %v700_v47  ;;  %v689_v13 = vadd.f32 %v3563_v56, %v666_v48  ;;  %v645_v55 = vmul.f32 %v2924_v49, %v3514_v44 }
 0x18e   : > { %v646_v46 = vmul.f32 %v2926_v52, %v3521_v53  ;;  %2935 = vrsqrt.f32 %v619_v51  ;;  %v690_v2 = vadd.f32 %v3563_v56, %v667_v37 }
 0x18f   : > { %v701_v57 = vpack.c.bf16 %v689_v13, %v688_v54  ;;  %v668_v58 = vmul.f32 %v3556_v42, %v645_v55 }
 0x190   : > { %v2928_v59 = vpop.eup %2927  ;;  %v669_v5 = vmul.f32 %v3556_v42, %v646_v46 }
 0x191   : > { %v2930_v61 = vpop.eup %2929  ;;  %709 = vst [vmem:[#allocation3 + $0x18] sm:$0xff] %v701_v57  ;;  %v691_v4 = vadd.f32 %v3563_v56, %v668_v58  ;;  %v647_v6 = vmul.f32 %v2928_v59, %v3524_v50 }
 0x192   : > { %v648_v20 = vmul.f32 %v2930_v61, %v3531_v1  ;;  %v692_v9 = vadd.f32 %v3563_v56, %v669_v5 }
 0x193   : > { %v702_v44 = vpack.c.bf16 %v691_v4, %v690_v2  ;;  %v670_v53 = vmul.f32 %v3556_v42, %v647_v6 }
 0x194   : > { %v2932_v7 = vpop.eup %2931  ;;  %v671_v14 = vmul.f32 %v3556_v42, %v648_v20 }
 0x195   : > { %v2934_v63 = vpop.eup %2933  ;;  %710 = vst [vmem:[#allocation3 + $0x20] sm:$0xff] %v702_v44  ;;  %v693_v10 = vadd.f32 %v3563_v56, %v670_v53  ;;  %v649_v11 = vmul.f32 %v2932_v7, %v3534_v60 }
 0x196   : > { %v650_v0 = vmul.f32 %v2934_v63, %v3541_v8  ;;  %v694_v15 = vadd.f32 %v3563_v56, %v671_v14 }
 0x197   : > { %v703_v12 = vpack.c.bf16 %v693_v10, %v692_v9  ;;  %v672_v50 = vmul.f32 %v3556_v42, %v649_v11 }
 0x198   : > { %v2936_v1 = vpop.eup %2935  ;;  %v673_v3 = vmul.f32 %v3556_v42, %v650_v0 }
 0x199   : > { %711 = vst [vmem:[#allocation3 + $0x28] sm:$0xff] %v703_v12  ;;  %v695_v16 = vadd.f32 %v3563_v56, %v672_v50  ;;  %v651_v17 = vmul.f32 %v2936_v1, %v3544_v62 }
 0x19a   : > { %v696_v60 = vadd.f32 %v3563_v56, %v673_v3 }
 0x19b   : > { %v704_v18 = vpack.c.bf16 %v695_v16, %v694_v15  ;;  %v674_v19 = vmul.f32 %v3556_v42, %v651_v17 }
 0x19d   : > { %712 = vst [vmem:[#allocation3 + $0x30] sm:$0xff] %v704_v18  ;;  %v697_v8 = vadd.f32 %v3563_v56, %v674_v19 }
 0x19f   : > { %v705_v22 = vpack.c.bf16 %v697_v8, %v696_v60 }
 0x1a1   : > { %713 = vst [vmem:[#allocation3 + $0x38] sm:$0xff] %v705_v22 }
 0x1a2 PF: > { %v2937_v62 = vld [vmem:[%s3394_s14 + $0x4] ss:$16 sps:$4 sm:$0xff]   ;;  %v2939_v21 = vld [vmem:[%s3394_s14 + $0xc] ss:$16 sps:$4 sm:$0xff]   ;;  %v3201_v42 = vmov 0   ;;  %p2598_p0 = scmp.ne.s32.totalorder %s3183_s26, 1 }
 0x1a3   : > { %1007 = vmatprep.mubr.bf16.mxu0 %v3201_v42  ;;  %1120 = vmatprep.mubr.bf16.mxu1 %v3201_v42  ;;  %v2941_v56 = vld [vmem:[%s3394_s14] ss:$16 sps:$4 sm:$0xff]   ;;  %v2942_v23 = vld [vmem:[%s3394_s14 + $0x8] ss:$16 sps:$4 sm:$0xff]   ;;  %v2943_v28 = vld [vmem:[%s3394_s14 + $0x24] ss:$16 sps:$4 sm:$0xff]  }
 0x1a4   : > { %975 = vmatprep.subr.bf16.mxu0 %v2937_v62  ;;  %1088 = vmatprep.subr.bf16.mxu1 %v2939_v21  ;;  %v2945_v24 = vld [vmem:[%s3394_s14 + $0x2c] ss:$16 sps:$4 sm:$0xff]   ;;  %v2947_v25 = vld [vmem:[%s3394_s14 + $0x20] ss:$16 sps:$4 sm:$0xff]   ;;  %v2948_v26 = vld [vmem:[%s3394_s14 + $0x28] ss:$16 sps:$4 sm:$0xff]  }
 0x1a5   : > { %976 = vmatpush1.bf16.msra.mxu0 %v2941_v56  ;;  %1089 = vmatpush1.bf16.msra.mxu1 %v2942_v23  ;;  %v2949_v27 = vld [vmem:[%s3394_s14 + $0x44] ss:$16 sps:$4 sm:$0xff]   ;;  %v2951_v30 = vld [vmem:[%s3394_s14 + $0x4c] ss:$16 sps:$4 sm:$0xff]   ;;  %v2953_v31 = vld [vmem:[%s3394_s14 + $0x40] ss:$16 sps:$4 sm:$0xff]  }
 0x1a6   : > { %977 = vmatprep.subr.bf16.mxu0 %v2943_v28  ;;  %1090 = vmatprep.subr.bf16.mxu1 %v2945_v24  ;;  %v2954_v32 = vld [vmem:[%s3394_s14 + $0x48] ss:$16 sps:$4 sm:$0xff]   ;;  %v2955_v33 = vld [vmem:[%s3394_s14 + $0x64] ss:$16 sps:$4 sm:$0xff]   ;;  %v2957_v34 = vld [vmem:[%s3394_s14 + $0x6c] ss:$16 sps:$4 sm:$0xff]  }
 0x1a7   : > { %v2959_v35 = vld [vmem:[%s3394_s14 + $0x60] ss:$16 sps:$4 sm:$0xff]   ;;  %v2960_v38 = vld [vmem:[%s3394_s14 + $0x68] ss:$16 sps:$4 sm:$0xff]   ;;  %v2961_v29 = vld [vmem:[%s3394_s14 + $0x84] ss:$16 sps:$4 sm:$0xff]  }
 0x1a8   : > { %v2963_v39 = vld [vmem:[%s3394_s14 + $0x8c] ss:$16 sps:$4 sm:$0xff]   ;;  %v2965_v40 = vld [vmem:[%s3394_s14 + $0x80] ss:$16 sps:$4 sm:$0xff]   ;;  %v2966_v36 = vld [vmem:[%s3394_s14 + $0x88] ss:$16 sps:$4 sm:$0xff]  }
 0x1a9   : > { %978 = vmatpush1.bf16.msra.mxu0 %v2947_v25  ;;  %1091 = vmatpush1.bf16.msra.mxu1 %v2948_v26  ;;  %v2967_v41 = vld [vmem:[%s3394_s14 + $0xa4] ss:$16 sps:$4 sm:$0xff]   ;;  %v2969_v43 = vld [vmem:[%s3394_s14 + $0xac] ss:$16 sps:$4 sm:$0xff]   ;;  %v2971_v45 = vld [vmem:[%s3394_s14 + $0xa0] ss:$16 sps:$4 sm:$0xff]  }
 0x1aa   : > { %979 = vmatprep.subr.bf16.mxu0 %v2949_v27  ;;  %1092 = vmatprep.subr.bf16.mxu1 %v2951_v30  ;;  %v2972_v47 = vld [vmem:[%s3394_s14 + $0xa8] ss:$16 sps:$4 sm:$0xff]   ;;  %v2973_v48 = vld [vmem:[%s3394_s14 + $0xc4] ss:$16 sps:$4 sm:$0xff]   ;;  %v2975_v49 = vld [vmem:[%s3394_s14 + $0xcc] ss:$16 sps:$4 sm:$0xff]   ;;  %v795_v27 = vlaneseq }
 0x1ab   : > { %v2977_v51 = vld [vmem:[%s3394_s14 + $0xc0] ss:$16 sps:$4 sm:$0xff]   ;;  %v2978_v52 = vld [vmem:[%s3394_s14 + $0xc8] ss:$16 sps:$4 sm:$0xff]   ;;  %v2979_v54 = vld [vmem:[%s3394_s14 + $0xe4] ss:$16 sps:$4 sm:$0xff]  }
 0x1ac   : > { %v2981_v13 = vld [vmem:[%s3394_s14 + $0xec] ss:$16 sps:$4 sm:$0xff]   ;;  %v2983_v37 = vld [vmem:[%s3394_s14 + $0xe0] ss:$16 sps:$4 sm:$0xff]   ;;  %v2984_v55 = vld [vmem:[%s3394_s14 + $0xe8] ss:$16 sps:$4 sm:$0xff]  }
 0x1ad   : > { %980 = vmatpush1.bf16.msra.mxu0 %v2953_v31  ;;  %1093 = vmatpush1.bf16.msra.mxu1 %v2954_v32  ;;  %v2985_v46 = vld [vmem:[%s3392_s13 + $0x40] sm:$0xff]   ;;  %v2989_v2 = vld [vmem:[%s3392_s13 + $0x48] sm:$0xff]   ;;  %v2993_v20 = vld [vmem:[%s3392_s13 + $0x50] sm:$0xff]   ;;  %v796_v30 = vshrl.u32 %v795_v27, 7 }
 0x1ae   : > { %981 = vmatprep.subr.bf16.mxu0 %v2955_v33  ;;  %1094 = vmatprep.subr.bf16.mxu1 %v2957_v34  ;;  %v2986_v57 = vld [vmem:[%s3392_s13 + $0xc0] sm:$0xff]   ;;  %v2990_v4 = vld [vmem:[%s3392_s13 + $0xc8] sm:$0xff]   ;;  %v2994_v53 = vld [vmem:[%s3392_s13 + $0xd0] sm:$0xff]  }
 0x1af   : > { %v753_v58 = vld [vmem:[#allocation3] sm:$0xff]  ;;  %v2991_v5 = vld [vmem:[%s3392_s13 + $0x8] sm:$0xff]   ;;  %v2995_v7 = vld [vmem:[%s3392_s13 + $0x10] sm:$0xff]   ;;  %v797_v31 = vsub.s32 0, %v796_v30  ;;  %v805_v32 = vsub.s32 2, %v796_v30  ;;  %v801_v34 = vsub.s32 1, %v796_v30 }
 0x1b0   : > { %v2987_v59 = vld [vmem:[%s3392_s13] sm:$0xff]   ;;  %v2992_v6 = vld [vmem:[%s3392_s13 + $0x88] sm:$0xff]   ;;  %v2996_v63 = vld [vmem:[%s3392_s13 + $0x90] sm:$0xff]  }
 0x1b1   : > { %982 = vmatpush1.bf16.msra.mxu0 %v2959_v35  ;;  %1095 = vmatpush1.bf16.msra.mxu1 %v2960_v38  ;;  %v2988_v61 = vld [vmem:[%s3392_s13 + $0x80] sm:$0xff]   ;;  %v754_v44 = vld [vmem:[#allocation3 + $0x8] sm:$0xff]  ;;  %v2997_v9 = vld [vmem:[%s3392_s13 + $0x58] sm:$0xff]   ;;  %v809_v35 = vsub.s32 3, %v796_v30 }
 0x1b2   : > { %983 = vmatprep.subr.bf16.mxu0 %v2961_v29  ;;  %1096 = vmatprep.subr.bf16.mxu1 %v2963_v39  ;;  %v2998_v10 = vld [vmem:[%s3392_s13 + $0xd8] sm:$0xff]   ;;  %v755_v0 = vld [vmem:[#allocation3 + $0x10] sm:$0xff]  ;;  %v757_v50 = vld [vmem:[#allocation3 + $0x20] sm:$0xff] }
 0x1b3   : > { %v2999_v14 = vld [vmem:[%s3392_s13 + $0x18] sm:$0xff]   ;;  %v758_v1 = vld [vmem:[#allocation3 + $0x28] sm:$0xff]  ;;  %v759_v15 = vld [vmem:[#allocation3 + $0x30] sm:$0xff] }
 0x1b4   : > { %v3000_v11 = vld [vmem:[%s3392_s13 + $0x98] sm:$0xff]   ;;  %v3001_v3 = vld [vmem:[%s3392_s13 + $0x60] sm:$0xff]   ;;  %v3005_v60 = vld [vmem:[%s3392_s13 + $0x68] sm:$0xff]  }
 0x1b5   : > { %984 = vmatpush1.bf16.msra.mxu0 %v2965_v40  ;;  %1097 = vmatpush1.bf16.msra.mxu1 %v2966_v36  ;;  %v756_v12 = vld [vmem:[#allocation3 + $0x18] sm:$0xff]  ;;  %v3002_v17 = vld [vmem:[%s3392_s13 + $0xe0] sm:$0xff]   ;;  %v3006_v8 = vld [vmem:[%s3392_s13 + $0xe8] sm:$0xff]  }
 0x1b6   : > { %985 = vmatprep.subr.bf16.mxu0 %v2967_v41  ;;  %1098 = vmatprep.subr.bf16.mxu1 %v2969_v43  ;;  %v760_v16 = vld [vmem:[#allocation3 + $0x38] sm:$0xff]  ;;  %v3003_v18 = vld [vmem:[%s3392_s13 + $0x20] sm:$0xff]   ;;  %v3007_v22 = vld [vmem:[%s3392_s13 + $0x28] sm:$0xff]  }
 0x1b7   : > { %v3004_v19 = vld [vmem:[%s3392_s13 + $0xa0] sm:$0xff]   ;;  %v3008_v62 = vld [vmem:[%s3392_s13 + $0xa8] sm:$0xff]   ;;  %v3009_v21 = vld [vmem:[%s3392_s13 + $0x70] sm:$0xff]  }
 0x1b8   : > { %v3011_v56 = vld [vmem:[%s3392_s13 + $0x30] sm:$0xff]   ;;  %v3013_v28 = vld [vmem:[%s3392_s13 + $0x78] sm:$0xff]   ;;  %v793_v33 = vld [vmem:[%s424_s19] sm:$0xf] }
 0x1b9   : > { %986 = vmatpush1.bf16.msra.mxu0 %v2971_v45  ;;  %1099 = vmatpush1.bf16.msra.mxu1 %v2972_v47  ;;  %v3012_v23 = vld [vmem:[%s3392_s13 + $0xb0] sm:$0xff]   ;;  %v3014_v24 = vld [vmem:[%s3392_s13 + $0xf8] sm:$0xff]   ;;  %v3695_v38 = vrot.slane %v793_v33, %v797_v31  ;;  %v3697_v29 = vrot.slane %v793_v33, %v805_v32  ;;  %v3699_v39 = vrot.slane %v793_v33, %v801_v34 }
 0x1ba   : > { %987 = vmatprep.subr.bf16.mxu0 %v2973_v48  ;;  %1100 = vmatprep.subr.bf16.mxu1 %v2975_v49  ;;  %v3015_v25 = vld [vmem:[%s3392_s13 + $0x38] sm:$0xff]   ;;  %v3701_v40 = vrot.slane %v793_v33, %v809_v35 }
 0x1bb   : > { %v3016_v26 = vld [vmem:[%s3392_s13 + $0xb8] sm:$0xff]  }
 0x1bd   : > { %988 = vmatpush1.bf16.msra.mxu0 %v2977_v51  ;;  %1101 = vmatpush1.bf16.msra.mxu1 %v2978_v52 }
 0x1be   : > { %989 = vmatprep.subr.bf16.mxu0 %v2979_v54  ;;  %1102 = vmatprep.subr.bf16.mxu1 %v2981_v13 }
 0x1c1   : > { %990 = vmatpush1.bf16.msra.mxu0 %v2983_v37  ;;  %1103 = vmatpush1.bf16.msra.mxu1 %v2984_v55 }
 0x1c2   : > { %2720 = vmatprep.subr.bf16.mxu0 %v2985_v46  ;;  %2784 = vmatprep.subr.bf16.mxu1 %v2986_v57 }
 0x1c4   : > { %1008 = vmatmul.mubr.bf16.vlgmr.msra.gmra.mrb[0].mxu0 %v753_v58  ;;  %1121 = vmatmul.mubr.bf16.vlgmr.msra.gmra.mrb[0].mxu1 %v753_v58 }
 0x1c5   : > { %1017 = vmatprep.mubr.bf16.mxu0 %v3201_v42  ;;  %1130 = vmatprep.mubr.bf16.mxu1 %v3201_v42 }
 0x1c6   : > { %2721 = vmatpush3.bf16.msra.mxu0 %v2987_v59  ;;  %2785 = vmatpush3.bf16.msra.mxu1 %v2988_v61 }
 0x1c7   : > { %2722 = vmatprep.subr.bf16.mxu0 %v2989_v2  ;;  %2786 = vmatprep.subr.bf16.mxu1 %v2990_v4 }
 0x1ca   : > { %2723 = vmatpush3.bf16.msra.mxu0 %v2991_v5  ;;  %2787 = vmatpush3.bf16.msra.mxu1 %v2992_v6 }
 0x1cb   : > { %2724 = vmatprep.subr.bf16.mxu0 %v2993_v20  ;;  %2788 = vmatprep.subr.bf16.mxu1 %v2994_v53 }
 0x1cc   : > { %1018 = vmatmul.mubr.bf16.gmra.mrb[4].mxu0 %v754_v44  ;;  %1131 = vmatmul.mubr.bf16.gmra.mrb[4].mxu1 %v754_v44 }
 0x1cd   : > { %1027 = vmatprep.mubr.bf16.mxu0 %v3201_v42  ;;  %1140 = vmatprep.mubr.bf16.mxu1 %v3201_v42 }
 0x1ce   : > { %2725 = vmatpush3.bf16.msra.mxu0 %v2995_v7  ;;  %2789 = vmatpush3.bf16.msra.mxu1 %v2996_v63 }
 0x1cf   : > { %2726 = vmatprep.subr.bf16.mxu0 %v2997_v9  ;;  %2790 = vmatprep.subr.bf16.mxu1 %v2998_v10 }
 0x1d2   : > { %2727 = vmatpush3.bf16.msra.mxu0 %v2999_v14  ;;  %2791 = vmatpush3.bf16.msra.mxu1 %v3000_v11 }
 0x1d3   : > { %2728 = vmatprep.subr.bf16.mxu0 %v3001_v3  ;;  %2792 = vmatprep.subr.bf16.mxu1 %v3002_v17 }
 0x1d4   : > { %1028 = vmatmul.mubr.bf16.gmra.mrb[8].mxu0 %v755_v0  ;;  %1141 = vmatmul.mubr.bf16.gmra.mrb[8].mxu1 %v755_v0 }
 0x1d5   : > { %1037 = vmatprep.mubr.bf16.mxu0 %v3201_v42  ;;  %1150 = vmatprep.mubr.bf16.mxu1 %v3201_v42 }
 0x1d6   : > { %2729 = vmatpush3.bf16.msra.mxu0 %v3003_v18  ;;  %2793 = vmatpush3.bf16.msra.mxu1 %v3004_v19 }
 0x1d7   : > { %2730 = vmatprep.subr.bf16.mxu0 %v3005_v60  ;;  %2794 = vmatprep.subr.bf16.mxu1 %v3006_v8 }
 0x1da   : > { %2731 = vmatpush3.bf16.msra.mxu0 %v3007_v22  ;;  %2795 = vmatpush3.bf16.msra.mxu1 %v3008_v62 }
 0x1db   : > { %2732 = vmatprep.subr.bf16.mxu0 %v3009_v21 }
 0x1dc   : > { %1038 = vmatmul.mubr.bf16.gmra.mrb[12].mxu0 %v756_v12  ;;  %1151 = vmatmul.mubr.bf16.gmra.mrb[12].mxu1 %v756_v12 }
 0x1dd   : > { %1047 = vmatprep.mubr.bf16.mxu0 %v3201_v42  ;;  %1160 = vmatprep.mubr.bf16.mxu1 %v3201_v42 }
 0x1de   : > { %2733 = vmatpush3.bf16.msra.mxu0 %v3011_v56 }
 0x1df   : > { %2734 = vmatprep.subr.bf16.mxu0 %v3013_v28 }
 0x1e2   : > { %2735 = vmatpush3.bf16.msra.mxu0 %v3015_v25 }
 0x1e4   : > { %1048 = vmatmul.mubr.bf16.gmra.mrb[16].mxu0 %v757_v50  ;;  %1161 = vmatmul.mubr.bf16.gmra.mrb[16].mxu1 %v757_v50 }
 0x1e5   : > { %1057 = vmatprep.mubr.bf16.mxu0 %v3201_v42  ;;  %1170 = vmatprep.mubr.bf16.mxu1 %v3201_v42 }
 0x1ec   : > { %1058 = vmatmul.mubr.bf16.gmra.mrb[20].mxu0 %v758_v1  ;;  %1171 = vmatmul.mubr.bf16.gmra.mrb[20].mxu1 %v758_v1 }
 0x1ed   : > { %1067 = vmatprep.mubr.bf16.mxu0 %v3201_v42  ;;  %1180 = vmatprep.mubr.bf16.mxu1 %v3201_v42 }
 0x1f4   : > { %1068 = vmatmul.mubr.bf16.gmra.mrb[24].mxu0 %v759_v15  ;;  %1181 = vmatmul.mubr.bf16.gmra.mrb[24].mxu1 %v759_v15 }
 0x1f5   : > { %1077 = vmatprep.mubr.bf16.mxu0 %v3201_v42  ;;  %1190 = vmatprep.mubr.bf16.mxu1 %v3201_v42  ;;  %v3010_v42 = vld [vmem:[%s3392_s13 + $0xf0] sm:$0xff]  }
 0x1f6   : > { %2796 = vmatprep.subr.bf16.mxu1 %v3010_v42 }
 0x1f7   : > { %2797 = vmatpush3.bf16.msra.mxu1 %v3012_v23 }
 0x1f8   : > { %2798 = vmatprep.subr.bf16.mxu1 %v3014_v24 }
 0x1fb   : > { %2799 = vmatpush3.bf16.msra.mxu1 %v3016_v26 }
 0x1fc   : > { %1078 = vmatmul.mubr.bf16.gmra.mrb[28].mxu0 %v760_v16  ;;  %1191 = vmatmul.mubr.bf16.gmra.mrb[28].mxu1 %v760_v16 }
 0x297   : > { %v1009_v36 = vpop.f32.mrb[0].mxu0  ;;  %v1122_v41 = vpop.f32.mrb[0].mxu1 }
 0x298   : > { %v1010_v43 = vadd.f32 %v1009_v36, %v3695_v38  ;;  %v1123_v45 = vadd.f32 %v1122_v41, %v3697_v29  ;;  %v1011_v47 = vpop.f32.mrb[1].mxu0  ;;  %v1124_v48 = vpop.f32.mrb[1].mxu1 }
 0x299   : > { %v3706_v49 = vadd.f32 %v1011_v47, %v3699_v39  ;;  %v3709_v51 = vadd.f32 %v1124_v48, %v3701_v40  ;;  %v1013_v52 = vpop.f32.mrb[2].mxu0  ;;  %v1126_v54 = vpop.f32.mrb[2].mxu1 }
 0x29a   : > { %v1265_v13 = vmul.f32 0.044715, %v1010_v43  ;;  %v1267_v37 = vmul.f32 0.044715, %v1123_v45  ;;  %v1014_v55 = vadd.f32 %v1013_v52, %v3695_v38  ;;  %v1127_v46 = vadd.f32 %v1126_v54, %v3697_v29  ;;  %v1015_v57 = vpop.f32.mrb[3].mxu0  ;;  %v1128_v58 = vpop.f32.mrb[3].mxu1 }
 0x29b   : > { %v1266_v2 = vmul.f32 0.044715, %v3706_v49  ;;  %v1268_v4 = vmul.f32 0.044715, %v3709_v51  ;;  %v3716_v53 = vadd.f32 %v1015_v57, %v3699_v39  ;;  %v3719_v63 = vadd.f32 %v1128_v58, %v3701_v40 }
 0x29c   : > { %v1329_v59 = vmul.f32 %v1265_v13, %v1010_v43  ;;  %v1331_v61 = vmul.f32 %v1267_v37, %v1123_v45  ;;  %v1269_v5 = vmul.f32 0.044715, %v1014_v55  ;;  %v1271_v44 = vmul.f32 0.044715, %v1127_v46 }
 0x29d   : > { %v1330_v11 = vmul.f32 %v1266_v2, %v3706_v49  ;;  %v1332_v1 = vmul.f32 %v1268_v4, %v3709_v51  ;;  %v3729_v19 = vmul.f32 0.5, %v1010_v43  ;;  %v1270_v22 = vmul.f32 0.044715, %v3716_v53 }
 0x29e   : > { %v1393_v6 = vmul.f32 %v1329_v59, %v1010_v43  ;;  %v1395_v20 = vmul.f32 %v1331_v61, %v1123_v45  ;;  %v1333_v7 = vmul.f32 %v1269_v5, %v1014_v55  ;;  %v1335_v0 = vmul.f32 %v1271_v44, %v1127_v46 }
 0x29f   : > { %v1019_v9 = vpop.f32.mrb[4].mxu0  ;;  %v1132_v10 = vpop.f32.mrb[4].mxu1  ;;  %v3732_v56 = vmul.f32 0.5, %v1123_v45  ;;  %v1272_v28 = vmul.f32 0.044715, %v3719_v63  ;;  %v3741_v30 = vmul.f32 %v1330_v11, %v3706_v49  ;;  %v3744_v31 = vmul.f32 %v1332_v1, %v3709_v51 }
 0x2a0   : > { %v1457_v14 = vadd.f32 %v1393_v6, %v1010_v43  ;;  %v1021_v12 = vpop.f32.mrb[5].mxu0  ;;  %v1134_v50 = vpop.f32.mrb[5].mxu1  ;;  %v1397_v15 = vmul.f32 %v1333_v7, %v1014_v55  ;;  %v3724_v16 = vadd.f32 %v1019_v9, %v3695_v38  ;;  %v3727_v3 = vadd.f32 %v1132_v10, %v3697_v29 }
 0x2a1   : > { %v1023_v17 = vpop.f32.mrb[6].mxu0  ;;  %v1136_v18 = vpop.f32.mrb[6].mxu1  ;;  %v1459_v60 = vadd.f32 %v1395_v20, %v1123_v45  ;;  %v1399_v8 = vmul.f32 %v1335_v0, %v1127_v46  ;;  %v3738_v27 = vadd.f32 %v1021_v12, %v3699_v39  ;;  %v3746_v32 = vmul.f32 0.5, %v1014_v55 }
 0x2a2   : > { %4595 = vst [vmem:[#allocation5_spill] sm:$0xff] %v3724_v16  ;;  %4596 = vst [vmem:[#allocation6_spill] sm:$0xff] %v3727_v3  ;;  %v1025_v62 = vpop.f32.mrb[7].mxu0  ;;  %v1138_v21 = vpop.f32.mrb[7].mxu1  ;;  %v1521_v42 = vmul.f32 0.7978846, %v1457_v14  ;;  %v1461_v23 = vadd.f32 %v1397_v15, %v1014_v55  ;;  %v1334_v35 = vmul.f32 %v1270_v22, %v3716_v53  ;;  %v3752_v36 = vadd.f32 %v1134_v50, %v3701_v40 }
 0x2a3   : > { %v1463_v24 = vadd.f32 %v1399_v8, %v1127_v46  ;;  %v1273_v25 = vmul.f32 0.044715, %v3724_v16  ;;  %v1275_v26 = vmul.f32 0.044715, %v3727_v3  ;;  %v3748_v33 = vmul.f32 0.5, %v1127_v46 }
 0x2a4   : > { %v1523_v34 = vmul.f32 0.7978846, %v1459_v60  ;;  %4597 = vst [vmem:[#allocation7_spill] sm:$0xff] %v3752_v36  ;;  %v3755_v41 = vadd.f32 %v1023_v17, %v3695_v38  ;;  %v1525_v43 = vmul.f32 0.7978846, %v1461_v23  ;;  %v1336_v45 = vmul.f32 %v1272_v28, %v3719_v63 }
 0x2a5   : > { %v1274_v47 = vmul.f32 0.044715, %v3738_v27  ;;  %v3760_v48 = vadd.f32 %v1136_v18, %v3697_v29  ;;  %3017 = vtanh.f32 %v1521_v42  ;;  %v1527_v13 = vmul.f32 0.7978846, %v1463_v24 }
 0x2a6   : > { %4598 = vst [vmem:[#allocation8_spill] sm:$0xff] %v3755_v41  ;;  %v1337_v37 = vmul.f32 %v1273_v25, %v3724_v16  ;;  %v1339_v55 = vmul.f32 %v1275_v26, %v3727_v3  ;;  %v1276_v58 = vmul.f32 0.044715, %v3752_v36  ;;  %v3766_v59 = vadd.f32 %v1025_v62, %v3699_v39 }
 0x2a7   : > { %4599 = vst [vmem:[#allocation9_spill] sm:$0xff] %v3760_v48  ;;  %v1029_v52 = vpop.f32.mrb[8].mxu0  ;;  %v1142_v54 = vpop.f32.mrb[8].mxu1  ;;  %v3769_v61 = vadd.f32 %v1138_v21, %v3701_v40  ;;  %3019 = vtanh.f32 %v1523_v34  ;;  %v1277_v6 = vmul.f32 0.044715, %v3755_v41  ;;  %v3780_v10 = vmul.f32 %v1334_v35, %v3716_v53 }
 0x2a8   : > { %v1031_v46 = vpop.f32.mrb[9].mxu0  ;;  %v1144_v57 = vpop.f32.mrb[9].mxu1  ;;  %v3772_v2 = vadd.f32 %v1029_v52, %v3695_v38  ;;  %v1279_v20 = vmul.f32 0.044715, %v3760_v48  ;;  %v3777_v44 = vadd.f32 %v1142_v54, %v3697_v29  ;;  %3021 = vtanh.f32 %v1525_v43 }
 0x2a9   : > { %4600 = vst [vmem:[#allocation10_spill] sm:$0xff] %v3769_v61  ;;  %v1033_v4 = vpop.f32.mrb[10].mxu0  ;;  %v1146_v5 = vpop.f32.mrb[10].mxu1  ;;  %v1338_v14 = vmul.f32 %v1274_v47, %v3738_v27  ;;  %v1278_v11 = vmul.f32 0.044715, %v3766_v59  ;;  %v3788_v1 = vadd.f32 %v1031_v46, %v3699_v39  ;;  %3023 = vtanh.f32 %v1527_v13 }
 0x2aa   : > { %4601 = vst [vmem:[#allocation11_spill] sm:$0xff] %v3772_v2  ;;  %4602 = vst [vmem:[#allocation12_spill] sm:$0xff] %v3777_v44  ;;  %v1035_v7 = vpop.f32.mrb[11].mxu0  ;;  %v1148_v9 = vpop.f32.mrb[11].mxu1  ;;  %v1280_v0 = vmul.f32 0.044715, %v3769_v61  ;;  %v3791_v15 = vmul.f32 %v1336_v45, %v3719_v63  ;;  %v3794_v17 = vmul.f32 %v1337_v37, %v3724_v16  ;;  %v3797_v18 = vmul.f32 %v1339_v55, %v3727_v3 }
 0x2ab   : > { %v1281_v12 = vmul.f32 0.044715, %v3772_v2  ;;  %v1283_v50 = vmul.f32 0.044715, %v3777_v44  ;;  %4603 = vst [vmem:[#allocation13_spill] sm:$0xff] %v3788_v1  ;;  %v1340_v60 = vmul.f32 %v1276_v58, %v3752_v36  ;;  %v1341_v8 = vmul.f32 %v1277_v6, %v3755_v41 }
 0x2ac   : > { %4604 = vst [vmem:[#allocation14_spill] sm:$0xff] %v3794_v17  ;;  %4605 = vst [vmem:[#allocation15_spill] sm:$0xff] %v3797_v18  ;;  %v1343_v22 = vmul.f32 %v1279_v20, %v3760_v48  ;;  %v1282_v62 = vmul.f32 0.044715, %v3788_v1  ;;  %v1342_v21 = vmul.f32 %v1278_v11, %v3766_v59  ;;  %v3805_v42 = vadd.f32 %v1144_v57, %v3701_v40 }
 0x2ad   : > { %v3808_v23 = vadd.f32 %v1033_v4, %v3695_v38  ;;  %v3811_v28 = vadd.f32 %v1146_v5, %v3697_v29  ;;  %v3814_v26 = vmul.f32 %v1338_v14, %v3738_v27  ;;  %v1344_v34 = vmul.f32 %v1280_v0, %v3769_v61 }
 0x2ae   : > { %4606 = vst [vmem:[#allocation16_spill] sm:$0xff] %v3805_v42  ;;  %v1345_v35 = vmul.f32 %v1281_v12, %v3772_v2  ;;  %v1347_v43 = vmul.f32 %v1283_v50, %v3777_v44  ;;  %v1346_v52 = vmul.f32 %v1282_v62, %v3788_v1  ;;  %v3821_v54 = vadd.f32 %v1035_v7, %v3699_v39 }
 0x2af   : > { %v1039_v24 = vpop.f32.mrb[12].mxu0  ;;  %v1152_v25 = vpop.f32.mrb[12].mxu1  ;;  %v3824_v13 = vadd.f32 %v1148_v9, %v3701_v40  ;;  %v3832_v58 = vmul.f32 %v1340_v60, %v3752_v36  ;;  %v3835_v4 = vmul.f32 %v1341_v8, %v3755_v41  ;;  %v3838_v5 = vmul.f32 %v1343_v22, %v3760_v48 }
 0x2b0   : > { %v1041_v45 = vpop.f32.mrb[13].mxu0  ;;  %v1154_v47 = vpop.f32.mrb[13].mxu1  ;;  %v3827_v37 = vadd.f32 %v1039_v24, %v3695_v38  ;;  %v3841_v6 = vadd.f32 %v1152_v25, %v3697_v29  ;;  %v3844_v9 = vmul.f32 %v1342_v21, %v3766_v59  ;;  %v1284_v14 = vmul.f32 0.044715, %v3805_v42 }
 0x2b1   : > { %v1043_v55 = vpop.f32.mrb[14].mxu0  ;;  %v1156_v46 = vpop.f32.mrb[14].mxu1  ;;  %4608 = vst [vmem:[#allocation18_spill] sm:$0xff] %v3832_v58  ;;  %4609 = vst [vmem:[#allocation19_spill] sm:$0xff] %v3835_v4  ;;  %v1285_v11 = vmul.f32 0.044715, %v3808_v23  ;;  %v3852_v50 = vmul.f32 %v1344_v34, %v3769_v61  ;;  %v3857_v22 = vadd.f32 %v1041_v45, %v3699_v39  ;;  %v3862_v21 = vmul.f32 %v1345_v35, %v3772_v2 }
 0x2b2   : > { %4607 = vst [vmem:[#allocation17_spill] sm:$0xff] %v3827_v37  ;;  %v3829_v57 = vpop.eup %3017  ;;  %4610 = vst [vmem:[#allocation20_spill] sm:$0xff] %v3838_v5  ;;  %v1045_v20 = vpop.f32.mrb[15].mxu0  ;;  %v1287_v0 = vmul.f32 0.044715, %v3811_v28  ;;  %v3865_v24 = vmul.f32 %v1347_v43, %v3777_v44  ;;  %v3868_v25 = vmul.f32 %v1346_v52, %v3788_v1  ;;  %v3874_v45 = vadd.f32 %v1154_v47, %v3701_v40 }
 0x2b3   : > { %4611 = vst [vmem:[#allocation21_spill] sm:$0xff] %v3841_v6  ;;  %v1158_v7 = vpop.f32.mrb[15].mxu1  ;;  %4612 = vst [vmem:[#allocation22_spill] sm:$0xff] %v3844_v9  ;;  %v3849_v12 = vpop.eup %3019  ;;  %v1286_v60 = vmul.f32 0.044715, %v3821_v54  ;;  %v3877_v18 = vadd.f32 %v1043_v55, %v3695_v38  ;;  %v1348_v43 = vmul.f32 %v1284_v14, %v3805_v42  ;;  %v3885_v44 = vadd.f32 %v1156_v46, %v3697_v29 }
 0x2b4   : > { %4613 = vst [vmem:[#allocation23_spill] sm:$0xff] %v3852_v50  ;;  %v1288_v8 = vmul.f32 0.044715, %v3824_v13  ;;  %4614 = vst [vmem:[#allocation24_spill] sm:$0xff] %v3857_v22  ;;  %v3859_v62 = vpop.eup %3021  ;;  %v1289_v34 = vmul.f32 0.044715, %v3827_v37  ;;  %v1351_v52 = vmul.f32 %v1287_v0, %v3811_v28  ;;  %v3896_v46 = vadd.f32 %v1158_v7, %v3701_v40 }
 0x2b5   : > { %4615 = vst [vmem:[#allocation25_spill] sm:$0xff] %v3862_v21  ;;  %4616 = vst [vmem:[#allocation26_spill] sm:$0xff] %v3865_v24  ;;  %v1291_v5 = vmul.f32 0.044715, %v3841_v6  ;;  %v1290_v48 = vmul.f32 0.044715, %v3857_v22  ;;  %v3879_v35 = vpop.eup %3023  ;;  %v1349_v24 = vmul.f32 %v1285_v11, %v3808_v23  ;;  %v3893_v11 = vadd.f32 %v1045_v20, %v3699_v39 }
 0x2b6   : > { %4617 = vst [vmem:[#allocation27_spill] sm:$0xff] %v3868_v25  ;;  %4618 = vst [vmem:[#allocation28_spill] sm:$0xff] %v3874_v45  ;;  %v1350_v25 = vmul.f32 %v1286_v60, %v3821_v54  ;;  %v1352_v47 = vmul.f32 %v1288_v8, %v3824_v13  ;;  %v1292_v55 = vmul.f32 0.044715, %v3874_v45  ;;  %v1293_v1 = vmul.f32 0.044715, %v3877_v18 }
 0x2b7   : > { %4619 = vst [vmem:[#allocation29_spill] sm:$0xff] %v3877_v18  ;;  %4620 = vst [vmem:[#allocation30_spill] sm:$0xff] %v3885_v44  ;;  %v1049_v21 = vpop.f32.mrb[16].mxu0  ;;  %v1162_v2 = vpop.f32.mrb[16].mxu1  ;;  %v1295_v14 = vmul.f32 0.044715, %v3885_v44  ;;  %v1353_v8 = vmul.f32 %v1289_v34, %v3827_v37  ;;  %v1355_v17 = vmul.f32 %v1291_v5, %v3841_v6  ;;  %v1354_v16 = vmul.f32 %v1290_v48, %v3857_v22 }
 0x2b8   : > { %v1051_v3 = vpop.f32.mrb[17].mxu0  ;;  %v1164_v4 = vpop.f32.mrb[17].mxu1  ;;  %4621 = vst [vmem:[#allocation31_spill] sm:$0xff] %v3893_v11  ;;  %4622 = vst [vmem:[#allocation32_spill] sm:$0xff] %v3896_v46  ;;  %v3899_v0 = vadd.f32 %v1049_v21, %v3695_v38  ;;  %v3905_v50 = vadd.f32 %v1162_v2, %v3697_v29  ;;  %v1356_v7 = vmul.f32 %v1292_v55, %v3874_v45  ;;  %v1294_v36 = vmul.f32 0.044715, %v3893_v11 }
 0x2b9   : > { %v1053_v60 = vpop.f32.mrb[18].mxu0  ;;  %v1166_v41 = vpop.f32.mrb[18].mxu1  ;;  %v1357_v21 = vmul.f32 %v1293_v1, %v3877_v18  ;;  %v1359_v58 = vmul.f32 %v1295_v14, %v3885_v44  ;;  %v3916_v34 = vmul.f32 %v1348_v43, %v3805_v42  ;;  %v1296_v48 = vmul.f32 0.044715, %v3896_v46 }
 0x2ba   : > { %4623 = vst [vmem:[#allocation33_spill] sm:$0xff] %v3899_v0  ;;  %4624 = vst [vmem:[#allocation34_spill] sm:$0xff] %v3905_v50  ;;  %v3907_v61 = vpop.f32.mrb[19].mxu0  ;;  %v3909_v20 = vpop.f32.mrb[19].mxu1  ;;  %v1297_v2 = vmul.f32 0.044715, %v3899_v0  ;;  %v3922_v9 = vmul.f32 %v1349_v24, %v3808_v23  ;;  %v3925_v55 = vmul.f32 %v1351_v52, %v3811_v28  ;;  %v3928_v1 = vmul.f32 %v1350_v25, %v3821_v54 }
 0x2bb   : > { %4625 = vst [vmem:[#allocation35_spill] sm:$0xff] %v3916_v34  ;;  %v1299_v5 = vmul.f32 0.044715, %v3905_v50  ;;  %v3931_v14 = vadd.f32 %v1051_v3, %v3699_v39  ;;  %v3934_v43 = vmul.f32 %v1352_v47, %v3824_v13  ;;  %v3937_v34 = vmul.f32 %v1353_v8, %v3827_v37 }
 0x2bc   : > { %4626 = vst [vmem:[#allocation36_spill] sm:$0xff] %v3925_v55  ;;  %v3940_v42 = vmul.f32 %v1355_v17, %v3841_v6  ;;  %v1358_v24 = vmul.f32 %v1294_v36, %v3893_v11  ;;  %v3944_v52 = vmul.f32 %v1354_v16, %v3857_v22  ;;  %v3947_v25 = vmul.f32 %v1356_v7, %v3874_v45 }
 0x2bd   : > { %4627 = vst [vmem:[#allocation37_spill] sm:$0xff] %v3931_v14  ;;  %4628 = vst [vmem:[#allocation38_spill] sm:$0xff] %v3937_v34  ;;  %v3950_v3 = vmul.f32 %v1357_v21, %v3877_v18  ;;  %v3953_v47 = vmul.f32 %v1359_v58, %v3885_v44  ;;  %v1360_v34 = vmul.f32 %v1296_v48, %v3896_v46  ;;  %v1298_v21 = vmul.f32 0.044715, %v3931_v14 }
 0x2be   : > { %4629 = vst [vmem:[#allocation39_spill] sm:$0xff] %v3940_v42  ;;  %4630 = vst [vmem:[#allocation40_spill] sm:$0xff] %v3944_v52  ;;  %v1361_v17 = vmul.f32 %v1297_v2, %v3899_v0  ;;  %v1363_v36 = vmul.f32 %v1299_v5, %v3905_v50  ;;  %v1458_v16 = vadd.f32 %v3741_v30, %v3706_v49 }
 0x2bf   : > { %4631 = vst [vmem:[#allocation41_spill] sm:$0xff] %v3947_v25  ;;  %4632 = vst [vmem:[#allocation42_spill] sm:$0xff] %v3950_v3  ;;  %v1059_v55 = vpop.f32.mrb[20].mxu0  ;;  %v1172_v8 = vpop.f32.mrb[20].mxu1  ;;  %v3964_v6 = vadd.f32 %v1164_v4, %v3701_v40  ;;  %v1462_v58 = vadd.f32 %v3780_v10, %v3716_v53  ;;  %v1460_v48 = vadd.f32 %v3744_v31, %v3709_v51 }
 0x2c0   : > { %4633 = vst [vmem:[#allocation43_spill] sm:$0xff] %v3953_v47  ;;  %v1061_v42 = vpop.f32.mrb[21].mxu0  ;;  %v3960_v7 = vpop.f32.mrb[21].mxu1  ;;  %v3975_v30 = vmul.f32 %v1358_v24, %v3893_v11  ;;  %v3978_v47 = vmul.f32 0.5, %v3706_v49  ;;  %v1522_v44 = vmul.f32 0.7978846, %v1458_v16  ;;  %v1464_v4 = vadd.f32 %v3791_v15, %v3719_v63 }
 0x2c1   : > { %4634 = vst [vmem:[#allocation44_spill] sm:$0xff] %v3964_v6  ;;  %v3970_v2 = vpop.f32.mrb[22].mxu0  ;;  %v3972_v5 = vpop.f32.mrb[22].mxu1  ;;  %v1526_v18 = vmul.f32 0.7978846, %v1462_v58  ;;  %v3987_v37 = vadd.f32 %v1053_v60, %v3695_v38  ;;  %v3990_v25 = vadd.f32 %v1166_v41, %v3697_v29  ;;  %v3993_v24 = vmul.f32 %v1360_v34, %v3896_v46 }
 0x2c2   : > { %4635 = vst [vmem:[#allocation45_spill] sm:$0xff] %v3975_v30  ;;  %v3982_v3 = vpop.f32.mrb[23].mxu0  ;;  %v3984_v10 = vpop.f32.mrb[23].mxu1  ;;  %v1524_v31 = vmul.f32 0.7978846, %v1460_v48  ;;  %3025 = vtanh.f32 %v1522_v44  ;;  %v1649_v16 = vadd.f32 1.0, %v3829_v57  ;;  %v1362_v34 = vmul.f32 %v1298_v21, %v3931_v14 }
 0x2c3   : > { %4636 = vst [vmem:[#allocation46_spill] sm:$0xff] %v3987_v37  ;;  %4637 = vst [vmem:[#allocation47_spill] sm:$0xff] %v3990_v25  ;;  %v1528_v49 = vmul.f32 0.7978846, %v1464_v4  ;;  %v1300_v15 = vmul.f32 0.044715, %v3964_v6  ;;  %3027 = vtanh.f32 %v1526_v18 }
 0x2c4   : > { %4638 = vst [vmem:[#allocation48_spill] sm:$0xff] %v3993_v24  ;;  %v1301_v45 = vmul.f32 0.044715, %v3987_v37  ;;  %v1653_v58 = vadd.f32 1.0, %v3859_v62  ;;  %3029 = vtanh.f32 %v1524_v31  ;;  %v1303_v60 = vmul.f32 0.044715, %v3990_v25 }
 0x2c5   : > { %v1651_v41 = vadd.f32 1.0, %v3849_v12  ;;  %v1655_v48 = vadd.f32 1.0, %v3879_v35  ;;  %3031 = vtanh.f32 %v1528_v49  ;;  %v4004_v44 = vmul.f32 %v1649_v16, %v3729_v19 }
 0x2c6   : > { %v4007_v57 = vmul.f32 %v1653_v58, %v3746_v32  ;;  %v4021_v35 = vadd.f32 %v3907_v61, %v3699_v39  ;;  %v4025_v19 = vadd.f32 %v3909_v20, %v3701_v40  ;;  %v4032_v31 = vmul.f32 %v1361_v17, %v3899_v0 }
 0x2c7   : > { %v4009_v18 = vpop.f32.mrb[24].mxu0  ;;  %v4011_v4 = vpop.f32.mrb[24].mxu1  ;;  %v4014_v62 = vmul.f32 %v1651_v41, %v3732_v56  ;;  %v4017_v12 = vmul.f32 %v1655_v48, %v3748_v33  ;;  %v1364_v56 = vmul.f32 %v1300_v15, %v3964_v6  ;;  %v4038_v49 = vadd.f32 %v1059_v55, %v3695_v38 }
 0x2c8   : > { %v4027_v32 = vpop.f32.mrb[25].mxu0  ;;  %v4029_v21 = vpop.f32.mrb[25].mxu1  ;;  %4639 = vst [vmem:[#allocation49_spill] sm:$0xff] %v4032_v31  ;;  %v1365_v20 = vmul.f32 %v1301_v45, %v3987_v37  ;;  %v1367_v58 = vmul.f32 %v1303_v60, %v3990_v25  ;;  %v4049_v41 = vadd.f32 %v1172_v8, %v3697_v29  ;;  %v4056_v55 = vmul.f32 %v1363_v36, %v3905_v50 }
 0x2c9   : > { %4640 = vst [vmem:[#allocation50_spill] sm:$0xff] %v4038_v49  ;;  %v4040_v61 = vpop.f32.mrb[26].mxu0  ;;  %v4042_v16 = vpop.f32.mrb[26].mxu1  ;;  %v1206_v33 = vmul.f32 0.5, %v3716_v53  ;;  %v1302_v31 = vmul.f32 0.044715, %v4021_v35  ;;  %v4061_v45 = vadd.f32 %v1061_v42, %v3699_v39  ;;  %v4064_v60 = vmul.f32 %v1362_v34, %v3931_v14 }
 0x2ca   : > { %4641 = vst [vmem:[#allocation51_spill] sm:$0xff] %v4049_v41  ;;  %v4051_v15 = vpop.f32.mrb[27].mxu0  ;;  %v4053_v48 = vpop.f32.mrb[27].mxu1  ;;  %4642 = vst [vmem:[#allocation52_spill] sm:$0xff] %v4056_v55  ;;  %v1204_v8 = vmul.f32 0.5, %v3709_v51  ;;  %v1208_v17 = vmul.f32 0.5, %v3719_v63  ;;  %v4070_v24 = vmul.f32 %v1364_v56, %v3964_v6  ;;  %v4075_v53 = vadd.f32 %v3960_v7, %v3701_v40 }
 0x2cb   : > { %4643 = vst [vmem:[#allocation53_spill] sm:$0xff] %v4064_v60  ;;  %v1304_v0 = vmul.f32 0.044715, %v4025_v19  ;;  %v1305_v36 = vmul.f32 0.044715, %v4038_v49  ;;  %v1466_v42 = vadd.f32 %v3814_v26, %v3738_v27  ;;  %v4080_v55 = vmul.f32 %v1365_v20, %v3987_v37  ;;  %v4647_v56 = vld [vmem:[#allocation22_spill] sm:$0xff] }
 0x2cc   : > { %4644 = vst [vmem:[#allocation54_spill] sm:$0xff] %v4070_v24  ;;  %v3026_v34 = vpop.eup %3025  ;;  %v4083_v51 = vmul.f32 %v1367_v58, %v3990_v25  ;;  %v1307_v63 = vmul.f32 0.044715, %v4049_v41  ;;  %v1470_v50 = vadd.f32 %v4647_v56, %v3766_v59  ;;  %v1366_v7 = vmul.f32 %v1302_v31, %v4021_v35 }
 0x2cd   : > { %4645 = vst [vmem:[#allocation55_spill] sm:$0xff] %v4080_v55  ;;  %v3028_v24 = vpop.eup %3027  ;;  %v1650_v6 = vadd.f32 1.0, %v3026_v34  ;;  %v1306_v60 = vmul.f32 0.044715, %v4061_v45  ;;  %v4091_v26 = vmul.f32 0.5, %v3738_v27  ;;  %v1368_v25 = vmul.f32 %v1304_v0, %v4025_v19 }
 0x2ce   : > { %4646 = vst [vmem:[#allocation56_spill] sm:$0xff] %v4083_v51  ;;  %v3030_v58 = vpop.eup %3029  ;;  %v1654_v51 = vadd.f32 1.0, %v3028_v24  ;;  %v1530_v55 = vmul.f32 0.7978846, %v1466_v42  ;;  %v1534_v37 = vmul.f32 0.7978846, %v1470_v50  ;;  %v1369_v31 = vmul.f32 %v1305_v36, %v4038_v49 }
 0x2cf   : > { %v4093_v14 = vpop.f32.mrb[28].mxu0  ;;  %v4095_v20 = vpop.f32.mrb[28].mxu1  ;;  %v1652_v46 = vadd.f32 1.0, %v3030_v58  ;;  %v1308_v30 = vmul.f32 0.044715, %v4075_v53  ;;  %v4103_v27 = vmul.f32 0.5, %v3766_v59  ;;  %v1714_v24 = vmul.f32 %v1650_v6, %v3978_v47 }
 0x2d0   : > { %4648 = vst [vmem:[#allocation22_spill] sm:$0xff] %v4093_v14  ;;  %4649 = vst [vmem:[#allocation57_spill] sm:$0xff] %v4095_v20  ;;  %v4098_v56 = vpop.f32.mrb[29].mxu0  ;;  %v3032_v34 = vpop.eup %3031  ;;  %v1718_v0 = vmul.f32 %v1654_v51, %v1206_v33  ;;  %3033 = vtanh.f32 %v1530_v55  ;;  %v1371_v36 = vmul.f32 %v1307_v63, %v4049_v41  ;;  %v1370_v58 = vmul.f32 %v1306_v60, %v4061_v45  ;;  %v4653_v59 = vld [vmem:[#allocation7_spill] sm:$0xff]  ;;  %v4655_v47 = vld [vmem:[#allocation10_spill] sm:$0xff] }
 0x2d1   : > { %4650 = vst [vmem:[#allocation58_spill] sm:$0xff] %v4098_v56  ;;  %v4105_v11 = vpop.f32.mrb[29].mxu1  ;;  %v4107_v52 = vpop.f32.mrb[30].mxu0  ;;  %v1656_v42 = vadd.f32 1.0, %v3032_v34  ;;  %3035 = vtanh.f32 %v1534_v37  ;;  %v4654_v56 = vld [vmem:[#allocation18_spill] sm:$0xff]  ;;  %v1716_v14 = vmul.f32 %v1652_v46, %v1204_v8  ;;  %v4656_v33 = vld [vmem:[#allocation23_spill] sm:$0xff]  ;;  %v4123_v51 = vmul.f32 %v1366_v7, %v4021_v35 }
 0x2d2   : > { %4651 = vst [vmem:[#allocation59_spill] sm:$0xff] %v4105_v11  ;;  %4652 = vst [vmem:[#allocation60_spill] sm:$0xff] %v4107_v52  ;;  %v4110_v50 = vpop.f32.mrb[30].mxu1  ;;  %v4112_v22 = vpop.f32.mrb[31].mxu0  ;;  %v1468_v20 = vadd.f32 %v4654_v56, %v4653_v59  ;;  %v1794_v52 = vpack.c.bf16 %v1718_v0, %v1714_v24  ;;  %v1472_v55 = vadd.f32 %v4656_v33, %v4655_v47  ;;  %v4660_v8 = vld [vmem:[#allocation14_spill] sm:$0xff] }
 0x2d3   : > { %v4118_v11 = vpop.f32.mrb[31].mxu1  ;;  %v1720_v6 = vmul.f32 %v1656_v42, %v1208_v17  ;;  %v4126_v34 = vmul.f32 %v1368_v25, %v4025_v19  ;;  %v4130_v37 = vadd.f32 %v3970_v2, %v3695_v38  ;;  %v4134_v46 = vadd.f32 %v3972_v5, %v3697_v29  ;;  %v4659_v17 = vld [vmem:[#allocation5_spill] sm:$0xff] }
 0x2d4   : > { %v1532_v63 = vmul.f32 0.7978846, %v1468_v20  ;;  %2113 = vmatprep.mubr.bf16.mxu0 %v1794_v52  ;;  %v1536_v56 = vmul.f32 0.7978846, %v1472_v55  ;;  %v1465_v24 = vadd.f32 %v4660_v8, %v4659_v17  ;;  %v4661_v7 = vpack.c.bf16 %v4007_v57, %v4004_v44  ;;  %v4663_v52 = vld [vmem:[#allocation8_spill] sm:$0xff]  ;;  %v4669_v55 = vld [vmem:[#allocation9_spill] sm:$0xff] }
 0x2d5   : > { %4657 = vst [vmem:[#allocation7_spill] sm:$0xff] %v4130_v37  ;;  %v1796_v60 = vpack.c.bf16 %v1720_v6, %v1716_v14  ;;  %4658 = vst [vmem:[#allocation18_spill] sm:$0xff] %v4134_v46  ;;  %v4142_v25 = vmul.f32 %v1369_v31, %v4038_v49  ;;  %v1372_v2 = vmul.f32 %v1308_v30, %v4075_v53  ;;  %v4664_v14 = vld [vmem:[#allocation19_spill] sm:$0xff]  ;;  %v1309_v57 = vmul.f32 0.044715, %v4130_v37  ;;  %v4667_v31 = vld [vmem:[#allocation6_spill] sm:$0xff] }
 0x2d6   : > { %2114 = vmatmul.mubr.bf16.vlgmr.msra.gmra.mrb[32].mxu0 %v4661_v7  ;;  %3037 = vtanh.f32 %v1532_v63  ;;  %v1469_v20 = vadd.f32 %v4664_v14, %v4663_v52  ;;  %v4148_v5 = vmul.f32 %v1371_v36, %v4049_v41  ;;  %v4151_v0 = vmul.f32 %v1370_v58, %v4061_v45  ;;  %v4668_v6 = vld [vmem:[#allocation15_spill] sm:$0xff]  ;;  %v4670_v63 = vld [vmem:[#allocation20_spill] sm:$0xff] }
 0x2d7   : > { %4662 = vst [vmem:[#allocation10_spill] sm:$0xff] %v4142_v25  ;;  %2210 = vmatprep.mubr.bf16.mxu1 %v1796_v60  ;;  %3039 = vtanh.f32 %v1536_v56  ;;  %v1529_v42 = vmul.f32 0.7978846, %v1465_v24  ;;  %v4666_v44 = vpack.c.bf16 %v4017_v12, %v4014_v62  ;;  %v1467_v33 = vadd.f32 %v4668_v6, %v4667_v31 }
 0x2d8   : > { %4665 = vst [vmem:[#allocation23_spill] sm:$0xff] %v4148_v5  ;;  %v1533_v30 = vmul.f32 0.7978846, %v1469_v20  ;;  %v1471_v60 = vadd.f32 %v4670_v63, %v4669_v55  ;;  %v1311_v36 = vmul.f32 0.044715, %v4134_v46  ;;  %v4164_v58 = vadd.f32 %v3982_v3, %v3699_v39 }
 0x2d9   : > { %2211 = vmatmul.mubr.bf16.vlgmr.msra.gmra.mrb[32].mxu1 %v4666_v44  ;;  %3041 = vtanh.f32 %v1529_v42  ;;  %v4168_v62 = vadd.f32 %v3984_v10, %v3701_v40  ;;  %v4171_v12 = vmul.f32 %v1372_v2, %v4075_v53  ;;  %v1531_v56 = vmul.f32 0.7978846, %v1467_v33 }
 0x2da   : > { %3043 = vtanh.f32 %v1533_v30  ;;  %v1535_v8 = vmul.f32 0.7978846, %v1471_v60  ;;  %v3034_v24 = vpop.eup %3033  ;;  %v1212_v7 = vmul.f32 0.5, %v4653_v59  ;;  %v1310_v14 = vmul.f32 0.044715, %v4164_v58 }
 0x2db   : > { %v1312_v20 = vmul.f32 0.044715, %v4168_v62  ;;  %v4178_v3 = vadd.f32 %v4009_v18, %v3695_v38  ;;  %v3036_v42 = vpop.eup %3035  ;;  %v1658_v10 = vadd.f32 1.0, %v3034_v24  ;;  %v1216_v44 = vmul.f32 0.5, %v4655_v47 }
 0x2dc   : > { %3045 = vtanh.f32 %v1531_v56  ;;  %v4183_v2 = vadd.f32 %v4011_v4, %v3697_v29  ;;  %v1662_v30 = vadd.f32 1.0, %v3036_v42  ;;  %v1373_v59 = vmul.f32 %v1309_v57, %v4130_v37 }
 0x2dd   : > { %v1375_v6 = vmul.f32 %v1311_v36, %v4134_v46  ;;  %3047 = vtanh.f32 %v1535_v8  ;;  %v1209_v33 = vmul.f32 0.5, %v4659_v17  ;;  %v1374_v18 = vmul.f32 %v1310_v14, %v4164_v58 }
 0x2de   : > { %4671 = vst [vmem:[#allocation5_spill] sm:$0xff] %v4183_v2  ;;  %v1376_v63 = vmul.f32 %v1312_v20, %v4168_v62  ;;  %v4192_v47 = vadd.f32 %v4027_v32, %v3699_v39  ;;  %v1722_v60 = vmul.f32 %v1658_v10, %v4091_v26  ;;  %v1726_v4 = vmul.f32 %v1662_v30, %v4103_v27 }
 0x2df   : > { %v1313_v56 = vmul.f32 0.044715, %v4178_v3  ;;  %v4199_v57 = vadd.f32 %v4029_v21, %v3701_v40  ;;  %v1213_v17 = vmul.f32 0.5, %v4663_v52  ;;  %v1211_v8 = vmul.f32 0.5, %v4667_v31 }
 0x2e0   : > { %v3038_v36 = vpop.eup %3037  ;;  %v1215_v24 = vmul.f32 0.5, %v4669_v55  ;;  %v1315_v32 = vmul.f32 0.044715, %v4183_v2  ;;  %v1798_v20 = vpack.c.bf16 %v1726_v4, %v1722_v60  ;;  %v4206_v27 = vmul.f32 %v1373_v59, %v4130_v37  ;;  %v4675_v59 = vld [vmem:[#allocation13_spill] sm:$0xff]  ;;  %v4676_v4 = vld [vmem:[#allocation27_spill] sm:$0xff] }
 0x2e1   : > { %v3040_v14 = vpop.eup %3039  ;;  %v1660_v26 = vadd.f32 1.0, %v3038_v36  ;;  %v4209_v42 = vmul.f32 %v1375_v6, %v4134_v46  ;;  %v4212_v10 = vmul.f32 %v1374_v18, %v4164_v58  ;;  %v4215_v52 = vmul.f32 %v1376_v63, %v4168_v62  ;;  %v4678_v37 = vld [vmem:[#allocation35_spill] sm:$0xff] }
 0x2e2   : > { %4672 = vst [vmem:[#allocation14_spill] sm:$0xff] %v4206_v27  ;;  %v1664_v21 = vadd.f32 1.0, %v3040_v14  ;;  %v1314_v31 = vmul.f32 0.044715, %v4192_v47  ;;  %2121 = vmatprep.mubr.bf16.mxu0 %v1798_v20  ;;  %v1377_v30 = vmul.f32 %v1313_v56, %v4178_v3  ;;  %v1316_v60 = vmul.f32 0.044715, %v4199_v57 }
 0x2e3   : > { %4673 = vst [vmem:[#allocation8_spill] sm:$0xff] %v4209_v42  ;;  %4674 = vst [vmem:[#allocation19_spill] sm:$0xff] %v4215_v52  ;;  %v3042_v55 = vpop.eup %3041  ;;  %v1474_v36 = vadd.f32 %v4676_v4, %v4675_v59  ;;  %v1478_v6 = vadd.f32 %v3928_v1, %v3821_v54  ;;  %v1724_v18 = vmul.f32 %v1660_v26, %v1212_v7  ;;  %v4677_v20 = vld [vmem:[#allocation16_spill] sm:$0xff] }
 0x2e4   : > { %v3044_v14 = vpop.eup %3043  ;;  %v1728_v42 = vmul.f32 %v1664_v21, %v1216_v44  ;;  %v1657_v46 = vadd.f32 1.0, %v3042_v55  ;;  %v1379_v63 = vmul.f32 %v1315_v32, %v4183_v2  ;;  %v1476_v56 = vadd.f32 %v4678_v37, %v4677_v20 }
 0x2e5   : > { %v1661_v5 = vadd.f32 1.0, %v3044_v14  ;;  %v1538_v41 = vmul.f32 0.7978846, %v1474_v36  ;;  %v1542_v27 = vmul.f32 0.7978846, %v1478_v6  ;;  %v1480_v4 = vadd.f32 %v3934_v43, %v3824_v13  ;;  %v4684_v36 = vld [vmem:[#allocation12_spill] sm:$0xff] }
 0x2e6   : > { %v3046_v25 = vpop.eup %3045  ;;  %v1800_v49 = vpack.c.bf16 %v1728_v42, %v1724_v18  ;;  %v1721_v52 = vmul.f32 %v1657_v46, %v1209_v33  ;;  %v4231_v1 = vadd.f32 %v4040_v61, %v3695_v38  ;;  %v1540_v32 = vmul.f32 0.7978846, %v1476_v56  ;;  %v4685_v6 = vld [vmem:[#allocation26_spill] sm:$0xff] }
 0x2e7   : > { %v3048_v7 = vpop.eup %3047  ;;  %v1725_v44 = vmul.f32 %v1661_v5, %v1213_v17  ;;  %v1659_v26 = vadd.f32 1.0, %v3046_v25  ;;  %3049 = vtanh.f32 %v1538_v41  ;;  %v1378_v55 = vmul.f32 %v1314_v31, %v4192_v47  ;;  %v4681_v5 = vld [vmem:[#allocation11_spill] sm:$0xff]  ;;  %v4682_v17 = vld [vmem:[#allocation25_spill] sm:$0xff] }
 0x2e8   : > { %4679 = vst [vmem:[#allocation6_spill] sm:$0xff] %v4231_v1  ;;  %2218 = vmatprep.mubr.bf16.mxu1 %v1800_v49  ;;  %v1663_v21 = vadd.f32 1.0, %v3048_v7  ;;  %3051 = vtanh.f32 %v1542_v27  ;;  %v1544_v37 = vmul.f32 0.7978846, %v1480_v4  ;;  %v1380_v46 = vmul.f32 %v1316_v60, %v4199_v57 }
 0x2e9   : > { %v1797_v42 = vpack.c.bf16 %v1725_v44, %v1721_v52  ;;  %v1218_v43 = vmul.f32 0.5, %v4675_v59  ;;  %3053 = vtanh.f32 %v1540_v32  ;;  %v1723_v33 = vmul.f32 %v1659_v26, %v1211_v8  ;;  %v4687_v32 = vld [vmem:[#allocation22_spill] sm:$0xff] }
 0x2ea   : > { %v1727_v61 = vmul.f32 %v1663_v21, %v1215_v24  ;;  %3055 = vtanh.f32 %v1544_v37  ;;  %v4238_v25 = vadd.f32 %v4042_v16, %v3697_v29  ;;  %v1222_v49 = vmul.f32 0.5, %v3821_v54 }
 0x2eb   : > { %2122 = vmatmul.mubr.bf16.gmra.mrb[36].mxu0 %v1797_v42  ;;  %v1317_v41 = vmul.f32 0.044715, %v4231_v1  ;;  %v1473_v27 = vadd.f32 %v4682_v17, %v4681_v5  ;;  %v1477_v52 = vadd.f32 %v3922_v9, %v3808_v23  ;;  %v4247_v8 = vmul.f32 %v1377_v30, %v4178_v3  ;;  %v4686_v30 = vld [vmem:[#allocation36_spill] sm:$0xff] }
 0x2ec   : > { %4680 = vst [vmem:[#allocation15_spill] sm:$0xff] %v4238_v25  ;;  %v1799_v31 = vpack.c.bf16 %v1727_v61, %v1723_v33  ;;  %v4250_v24 = vmul.f32 %v1379_v63, %v4183_v2  ;;  %v4253_v16 = vmul.f32 %v1378_v55, %v4192_v47  ;;  %v4256_v54 = vmul.f32 %v1380_v46, %v4199_v57  ;;  %v4688_v55 = vld [vmem:[#allocation57_spill] sm:$0xff] }
 0x2ed   : > { %v1537_v60 = vmul.f32 0.7978846, %v1473_v27  ;;  %v1541_v59 = vmul.f32 0.7978846, %v1477_v52  ;;  %v1475_v14 = vadd.f32 %v4685_v6, %v4684_v36  ;;  %v1319_v9 = vmul.f32 0.044715, %v4238_v25 }
 0x2ee   : > { %4683 = vst [vmem:[#allocation9_spill] sm:$0xff] %v4250_v24  ;;  %2219 = vmatmul.mubr.bf16.gmra.mrb[36].mxu1 %v1799_v31  ;;  %v1479_v18 = vadd.f32 %v4686_v30, %v3811_v28  ;;  %v4265_v63 = vadd.f32 %v4051_v15, %v3699_v39  ;;  %v4269_v56 = vadd.f32 %v4053_v48, %v3701_v40  ;;  %v1220_v4 = vmul.f32 0.5, %v4677_v20 }
 0x2ef   : > { %v1381_v7 = vmul.f32 %v1317_v41, %v4231_v1  ;;  %3057 = vtanh.f32 %v1537_v60  ;;  %v1539_v44 = vmul.f32 0.7978846, %v1475_v14  ;;  %v4275_v21 = vadd.f32 %v4687_v32, %v3695_v38  ;;  %v4690_v14 = vld [vmem:[#allocation58_spill] sm:$0xff]  ;;  %v4692_v32 = vld [vmem:[#allocation59_spill] sm:$0xff] }
 0x2f0   : > { %3059 = vtanh.f32 %v1541_v59  ;;  %v1543_v26 = vmul.f32 0.7978846, %v1479_v18  ;;  %v4279_v15 = vadd.f32 %v4688_v55, %v3697_v29  ;;  %v1224_v48 = vmul.f32 0.5, %v3824_v13 }
 0x2f1   : > { %v3050_v37 = vpop.eup %3049  ;;  %v1217_v42 = vmul.f32 0.5, %v4681_v5  ;;  %3061 = vtanh.f32 %v1539_v44  ;;  %v1318_v20 = vmul.f32 0.044715, %v4265_v63  ;;  %v1383_v61 = vmul.f32 %v1319_v9, %v4238_v25 }
 0x2f2   : > { %v3052_v46 = vpop.eup %3051  ;;  %v1666_v33 = vadd.f32 1.0, %v3050_v37  ;;  %3063 = vtanh.f32 %v1543_v26  ;;  %v1320_v41 = vmul.f32 0.044715, %v4269_v56  ;;  %v4287_v52 = vmul.f32 %v1381_v7, %v4231_v1 }
 0x2f3   : > { %v3054_v17 = vpop.eup %3053  ;;  %v1670_v27 = vadd.f32 1.0, %v3052_v46  ;;  %v1221_v31 = vmul.f32 0.5, %v3808_v23  ;;  %v1219_v13 = vmul.f32 0.5, %v4684_v36  ;;  %v1321_v59 = vmul.f32 0.044715, %v4275_v21 }
 0x2f4   : > { %4689 = vst [vmem:[#allocation20_spill] sm:$0xff] %v4287_v52  ;;  %v3056_v5 = vpop.eup %3055  ;;  %v1668_v60 = vadd.f32 1.0, %v3054_v17  ;;  %v1323_v6 = vmul.f32 0.044715, %v4279_v15  ;;  %v4295_v9 = vadd.f32 %v4690_v14, %v3699_v39  ;;  %v1730_v30 = vmul.f32 %v1666_v33, %v1218_v43  ;;  %v4693_v14 = vld [vmem:[#allocation24_spill] sm:$0xff] }
 0x2f5   : > { %v1734_v18 = vmul.f32 %v1670_v27, %v1222_v49  ;;  %v1672_v44 = vadd.f32 1.0, %v3056_v5  ;;  %v1382_v7 = vmul.f32 %v1318_v20, %v4265_v63  ;;  %v4299_v26 = vmul.f32 %v1383_v61, %v4238_v25  ;;  %v4694_v43 = vld [vmem:[#allocation40_spill] sm:$0xff]  ;;  %v4695_v27 = vld [vmem:[#allocation31_spill] sm:$0xff] }
 0x2f6   : > { %v1223_v23 = vmul.f32 0.5, %v3811_v28  ;;  %v1384_v36 = vmul.f32 %v1320_v41, %v4269_v56  ;;  %v4305_v55 = vadd.f32 %v4692_v32, %v3701_v40  ;;  %v1732_v46 = vmul.f32 %v1668_v60, %v1220_v4  ;;  %v4696_v28 = vld [vmem:[#allocation45_spill] sm:$0xff]  ;;  %v4700_v25 = vld [vmem:[#allocation48_spill] sm:$0xff] }
 0x2f7   : > { %4691 = vst [vmem:[#allocation13_spill] sm:$0xff] %v4299_v26  ;;  %v1802_v37 = vpack.c.bf16 %v1734_v18, %v1730_v30  ;;  %v1736_v17 = vmul.f32 %v1672_v44, %v1224_v48  ;;  %v1482_v49 = vadd.f32 %v4694_v43, %v4693_v14  ;;  %v1385_v33 = vmul.f32 %v1321_v59, %v4275_v21  ;;  %v4697_v48 = vld [vmem:[#allocation28_spill] sm:$0xff]  ;;  %v4698_v60 = vld [vmem:[#allocation41_spill] sm:$0xff] }
 0x2f8   : > { %v1387_v20 = vmul.f32 %v1323_v6, %v4279_v15  ;;  %v1322_v61 = vmul.f32 0.044715, %v4295_v9  ;;  %v1486_v5 = vadd.f32 %v4696_v28, %v4695_v27  ;;  %v4315_v32 = vmul.f32 %v1382_v7, %v4265_v63  ;;  %v4699_v43 = vld [vmem:[#allocation32_spill] sm:$0xff] }
 0x2f9   : > { %v3058_v41 = vpop.eup %3057  ;;  %2129 = vmatprep.mubr.bf16.mxu0 %v1802_v37  ;;  %v1804_v26 = vpack.c.bf16 %v1736_v17, %v1732_v46  ;;  %v1546_v4 = vmul.f32 0.7978846, %v1482_v49  ;;  %v1484_v30 = vadd.f32 %v4698_v60, %v4697_v48  ;;  %v1324_v59 = vmul.f32 0.044715, %v4305_v55 }
 0x2fa   : > { %v3060_v18 = vpop.eup %3059  ;;  %v1665_v44 = vadd.f32 1.0, %v3058_v41  ;;  %v1550_v6 = vmul.f32 0.7978846, %v1486_v5  ;;  %v1488_v24 = vadd.f32 %v4700_v25, %v4699_v43  ;;  %v4323_v37 = vmul.f32 %v1384_v36, %v4269_v56  ;;  %v4701_v41 = vld [vmem:[#allocation60_spill] sm:$0xff] }
 0x2fb   : > { %v3062_v2 = vpop.eup %3061  ;;  %2226 = vmatprep.mubr.bf16.mxu1 %v1804_v26  ;;  %v1669_v28 = vadd.f32 1.0, %v3060_v18  ;;  %3065 = vtanh.f32 %v1546_v4  ;;  %v1548_v7 = vmul.f32 0.7978846, %v1484_v30  ;;  %v4327_v60 = vadd.f32 %v4701_v41, %v3695_v38  ;;  %v4704_v18 = vld [vmem:[#allocation38_spill] sm:$0xff]  ;;  %v4710_v41 = vld [vmem:[#allocation43_spill] sm:$0xff] }
 0x2fc   : > { %v3064_v46 = vpop.eup %3063  ;;  %v1729_v17 = vmul.f32 %v1665_v44, %v1217_v42  ;;  %v1667_v49 = vadd.f32 1.0, %v3062_v2  ;;  %3067 = vtanh.f32 %v1550_v6  ;;  %v1552_v1 = vmul.f32 0.7978846, %v1488_v24  ;;  %v4703_v24 = vld [vmem:[#allocation17_spill] sm:$0xff]  ;;  %v4706_v6 = vld [vmem:[#allocation42_spill] sm:$0xff] }
 0x2fd   : > { %v1733_v5 = vmul.f32 %v1669_v28, %v1221_v31  ;;  %v1671_v52 = vadd.f32 1.0, %v3064_v46  ;;  %3069 = vtanh.f32 %v1548_v7  ;;  %v4330_v25 = vmul.f32 %v1385_v33, %v4275_v21  ;;  %v4705_v33 = vld [vmem:[#allocation29_spill] sm:$0xff] }
 0x2fe   : > { %v4333_v26 = vmul.f32 %v1387_v20, %v4279_v15  ;;  %v1386_v36 = vmul.f32 %v1322_v61, %v4295_v9  ;;  %v1388_v42 = vmul.f32 %v1324_v59, %v4305_v55  ;;  %v1731_v4 = vmul.f32 %v1667_v49, %v1219_v13  ;;  %v4709_v49 = vld [vmem:[#allocation30_spill] sm:$0xff] }
 0x2ff   : > { %v1801_v2 = vpack.c.bf16 %v1733_v5, %v1729_v17  ;;  %v1735_v30 = vmul.f32 %v1671_v52, %v1223_v23  ;;  %3071 = vtanh.f32 %v1552_v1  ;;  %v1226_v38 = vmul.f32 0.5, %v4693_v14  ;;  %v4707_v52 = vld [vmem:[#allocation21_spill] sm:$0xff]  ;;  %v4708_v1 = vld [vmem:[#allocation39_spill] sm:$0xff] }
 0x300   : > { %4702 = vst [vmem:[#allocation27_spill] sm:$0xff] %v4333_v26  ;;  %v1325_v31 = vmul.f32 0.044715, %v4327_v60  ;;  %v1481_v44 = vadd.f32 %v4704_v18, %v4703_v24  ;;  %v1485_v28 = vadd.f32 %v4706_v6, %v4705_v33  ;;  %v1230_v61 = vmul.f32 0.5, %v4695_v27  ;;  %v4722_v26 = vld [vmem:[#allocation56_spill] sm:$0xff] }
 0x301   : > { %2130 = vmatmul.mubr.bf16.gmra.mrb[40].mxu0 %v1801_v2  ;;  %v1803_v20 = vpack.c.bf16 %v1735_v30, %v1731_v4  ;;  %v4346_v59 = vadd.f32 %v4110_v50, %v3697_v29  ;;  %v1483_v13 = vadd.f32 %v4708_v1, %v4707_v52  ;;  %v4351_v23 = vmul.f32 %v1386_v36, %v4295_v9 }
 0x302   : > { %v1228_v14 = vmul.f32 0.5, %v4697_v48  ;;  %v1545_v7 = vmul.f32 0.7978846, %v1481_v44  ;;  %v1549_v46 = vmul.f32 0.7978846, %v1485_v28  ;;  %v4355_v17 = vmul.f32 %v1388_v42, %v4305_v55  ;;  %v4712_v44 = vld [vmem:[#allocation53_spill] sm:$0xff] }
 0x303   : > { %2227 = vmatmul.mubr.bf16.gmra.mrb[40].mxu1 %v1803_v20  ;;  %v1232_v27 = vmul.f32 0.5, %v4699_v43  ;;  %v1487_v29 = vadd.f32 %v4710_v41, %v4709_v49  ;;  %v1547_v50 = vmul.f32 0.7978846, %v1483_v13  ;;  %v1389_v5 = vmul.f32 %v1325_v31, %v4327_v60  ;;  %v4711_v31 = vld [vmem:[#allocation37_spill] sm:$0xff] }
 0x304   : > { %v4362_v2 = vmul.f32 0.5, %v4703_v24  ;;  %v4365_v36 = vmul.f32 0.5, %v4705_v33  ;;  %3073 = vtanh.f32 %v1545_v7  ;;  %v1327_v4 = vmul.f32 0.044715, %v4346_v59 }
 0x305   : > { %v3066_v48 = vpop.eup %3065  ;;  %3075 = vtanh.f32 %v1549_v46  ;;  %v1551_v42 = vmul.f32 0.7978846, %v1487_v29  ;;  %v4370_v43 = vadd.f32 %v4112_v22, %v3699_v39  ;;  %v1490_v24 = vadd.f32 %v4712_v44, %v4711_v31  ;;  %v4715_v44 = vld [vmem:[#allocation33_spill] sm:$0xff] }
 0x306   : > { %v3068_v30 = vpop.eup %3067  ;;  %v1674_v18 = vadd.f32 1.0, %v3066_v48  ;;  %3077 = vtanh.f32 %v1547_v50  ;;  %v1494_v33 = vadd.f32 %v4123_v51, %v4021_v35  ;;  %v1227_v20 = vmul.f32 0.5, %v4707_v52 }
 0x307   : > { %v3070_v6 = vpop.eup %3069  ;;  %v1678_v28 = vadd.f32 1.0, %v3068_v30  ;;  %v1231_v1 = vmul.f32 0.5, %v4709_v49  ;;  %3079 = vtanh.f32 %v1551_v42  ;;  %v4380_v39 = vadd.f32 %v4118_v11, %v3701_v40  ;;  %v4713_v40 = vld [vmem:[#allocation44_spill] sm:$0xff]  ;;  %v4714_v11 = vld [vmem:[#allocation54_spill] sm:$0xff] }
 0x308   : > { %v1676_v13 = vadd.f32 1.0, %v3070_v6  ;;  %v1554_v22 = vmul.f32 0.7978846, %v1490_v24  ;;  %v1558_v7 = vmul.f32 0.7978846, %v1494_v33  ;;  %v1738_v41 = vmul.f32 %v1674_v18, %v1226_v38  ;;  %v4716_v24 = vld [vmem:[#allocation49_spill] sm:$0xff] }
 0x309   : > { %v3072_v46 = vpop.eup %3071  ;;  %v1742_v29 = vmul.f32 %v1678_v28, %v1230_v61  ;;  %v4383_v50 = vmul.f32 %v1389_v5, %v4327_v60  ;;  %v1326_v51 = vmul.f32 0.044715, %v4370_v43  ;;  %v4387_v52 = vmul.f32 %v1327_v4, %v4346_v59  ;;  %v4717_v28 = vld [vmem:[#allocation46_spill] sm:$0xff] }
 0x30a   : > { %v1680_v48 = vadd.f32 1.0, %v3072_v46  ;;  %v1234_v49 = vmul.f32 0.5, %v4711_v31  ;;  %3081 = vtanh.f32 %v1554_v22  ;;  %v1492_v30 = vadd.f32 %v4714_v11, %v4713_v40  ;;  %v4718_v22 = vld [vmem:[#allocation55_spill] sm:$0xff] }
 0x30b   : > { %v1806_v42 = vpack.c.bf16 %v1742_v29, %v1738_v41  ;;  %3083 = vtanh.f32 %v1558_v7  ;;  %v1496_v38 = vadd.f32 %v4126_v34, %v4025_v19  ;;  %v1740_v61 = vmul.f32 %v1676_v13, %v1228_v14  ;;  %v4719_v14 = vld [vmem:[#allocation34_spill] sm:$0xff] }
 0x30c   : > { %v1744_v5 = vmul.f32 %v1680_v48, %v1232_v27  ;;  %v1328_v18 = vmul.f32 0.044715, %v4380_v39  ;;  %v1489_v33 = vadd.f32 %v4716_v24, %v4715_v44  ;;  %v1390_v4 = vmul.f32 %v1326_v51, %v4370_v43  ;;  %v4720_v27 = vld [vmem:[#allocation52_spill] sm:$0xff] }
 0x30d   : > { %2137 = vmatprep.mubr.bf16.mxu0 %v1806_v42  ;;  %v1556_v31 = vmul.f32 0.7978846, %v1492_v30  ;;  %v1560_v6 = vmul.f32 0.7978846, %v1496_v38  ;;  %v1493_v7 = vadd.f32 %v4718_v22, %v4717_v28  ;;  %v1238_v29 = vmul.f32 0.5, %v4021_v35  ;;  %v4721_v42 = vld [vmem:[#allocation47_spill] sm:$0xff] }
 0x30e   : > { %v3074_v46 = vpop.eup %3073  ;;  %v1808_v41 = vpack.c.bf16 %v1744_v5, %v1740_v61  ;;  %v1553_v34 = vmul.f32 0.7978846, %v1489_v33  ;;  %v1491_v13 = vadd.f32 %v4720_v27, %v4719_v14  ;;  %v1495_v51 = vadd.f32 %v4722_v26, %v4721_v42 }
 0x30f   : > { %v3076_v48 = vpop.eup %3075  ;;  %v1673_v11 = vadd.f32 1.0, %v3074_v46  ;;  %3085 = vtanh.f32 %v1556_v31  ;;  %v1557_v24 = vmul.f32 0.7978846, %v1493_v7  ;;  %v4406_v22 = vmul.f32 %v1328_v18, %v4380_v39 }
 0x310   : > { %v3078_v30 = vpop.eup %3077  ;;  %2234 = vmatprep.mubr.bf16.mxu1 %v1808_v41  ;;  %v1677_v38 = vadd.f32 1.0, %v3076_v48  ;;  %3087 = vtanh.f32 %v1560_v6  ;;  %v1555_v61 = vmul.f32 0.7978846, %v1491_v13  ;;  %v4409_v33 = vmul.f32 %v1390_v4, %v4370_v43 }
 0x311   : > { %v3080_v35 = vpop.eup %3079  ;;  %v1675_v5 = vadd.f32 1.0, %v3078_v30  ;;  %3089 = vtanh.f32 %v1553_v34  ;;  %v1559_v46 = vmul.f32 0.7978846, %v1495_v51  ;;  %v1737_v31 = vmul.f32 %v1673_v11, %v4362_v2  ;;  %v4723_v30 = vld [vmem:[#allocation19_spill] sm:$0xff] }
 0x312   : > { %v1741_v7 = vmul.f32 %v1677_v38, %v4365_v36  ;;  %v1679_v26 = vadd.f32 1.0, %v3080_v35  ;;  %3091 = vtanh.f32 %v1557_v24  ;;  %v1236_v41 = vmul.f32 0.5, %v4713_v40 }
 0x313   : > { %3093 = vtanh.f32 %v1555_v61  ;;  %v1498_v18 = vadd.f32 %v4151_v0, %v4061_v45  ;;  %v1502_v6 = vadd.f32 %v4212_v10, %v4164_v58  ;;  %v1739_v13 = vmul.f32 %v1675_v5, %v1227_v20 }
 0x314   : > { %v3082_v27 = vpop.eup %3081  ;;  %v1805_v4 = vpack.c.bf16 %v1741_v7, %v1737_v31  ;;  %v1743_v34 = vmul.f32 %v1679_v26, %v1231_v1  ;;  %3095 = vtanh.f32 %v1559_v46  ;;  %v1240_v36 = vmul.f32 0.5, %v4025_v19  ;;  %v4725_v7 = vld [vmem:[#allocation10_spill] sm:$0xff] }
 0x315   : > { %v3084_v48 = vpop.eup %3083  ;;  %v1682_v2 = vadd.f32 1.0, %v3082_v27  ;;  %v1562_v11 = vmul.f32 0.7978846, %v1498_v18  ;;  %v1566_v24 = vmul.f32 0.7978846, %v1502_v6  ;;  %v1500_v0 = vadd.f32 %v4171_v12, %v4075_v53  ;;  %v4724_v12 = vld [vmem:[#allocation50_spill] sm:$0xff] }
 0x316   : > { %2138 = vmatmul.mubr.bf16.gmra.mrb[44].mxu0 %v1805_v4  ;;  %v1807_v40 = vpack.c.bf16 %v1743_v34, %v1739_v13  ;;  %v1686_v51 = vadd.f32 1.0, %v3084_v48  ;;  %v1504_v10 = vadd.f32 %v4723_v30, %v4168_v62  ;;  %v1233_v20 = vmul.f32 0.5, %v4715_v44  ;;  %v4726_v18 = vld [vmem:[#allocation7_spill] sm:$0xff] }
 0x317   : > { %v1746_v38 = vmul.f32 %v1682_v2, %v1234_v49  ;;  %v1237_v1 = vmul.f32 0.5, %v4717_v28  ;;  %3097 = vtanh.f32 %v1562_v11  ;;  %v1564_v19 = vmul.f32 0.7978846, %v1500_v0  ;;  %v4727_v49 = vld [vmem:[#allocation14_spill] sm:$0xff]  ;;  %v4728_v4 = vld [vmem:[#allocation51_spill] sm:$0xff] }
 0x318   : > { %2235 = vmatmul.mubr.bf16.gmra.mrb[44].mxu1 %v1807_v40  ;;  %v1750_v61 = vmul.f32 %v1686_v51, %v1238_v29  ;;  %3099 = vtanh.f32 %v1566_v24  ;;  %v1568_v35 = vmul.f32 0.7978846, %v1504_v10  ;;  %v1235_v46 = vmul.f32 0.5, %v4719_v14  ;;  %v4729_v29 = vld [vmem:[#allocation23_spill] sm:$0xff]  ;;  %v4730_v40 = vld [vmem:[#allocation18_spill] sm:$0xff]  ;;  %v4731_v51 = vld [vmem:[#allocation8_spill] sm:$0xff] }
 0x319   : > { %v3086_v5 = vpop.eup %3085  ;;  %v1239_v31 = vmul.f32 0.5, %v4721_v42  ;;  %v1497_v26 = vadd.f32 %v4725_v7, %v4724_v12  ;;  %v1501_v6 = vadd.f32 %v4727_v49, %v4726_v18  ;;  %3101 = vtanh.f32 %v1564_v19 }
 0x31a   : > { %v3088_v44 = vpop.eup %3087  ;;  %v1810_v27 = vpack.c.bf16 %v1750_v61, %v1746_v38  ;;  %v1684_v28 = vadd.f32 1.0, %v3086_v5  ;;  %v1499_v13 = vadd.f32 %v4729_v29, %v4728_v4  ;;  %3103 = vtanh.f32 %v1568_v35 }
 0x31b   : > { %v3090_v34 = vpop.eup %3089  ;;  %v1688_v48 = vadd.f32 1.0, %v3088_v44  ;;  %v1561_v2 = vmul.f32 0.7978846, %v1497_v26  ;;  %v1565_v14 = vmul.f32 0.7978846, %v1501_v6  ;;  %v1242_v24 = vmul.f32 0.5, %v4061_v45 }
 0x31c   : > { %v3092_v11 = vpop.eup %3091  ;;  %2145 = vmatprep.mubr.bf16.mxu0 %v1810_v27  ;;  %v1681_v42 = vadd.f32 1.0, %v3090_v34  ;;  %v1503_v0 = vadd.f32 %v4731_v51, %v4730_v40  ;;  %v1563_v30 = vmul.f32 0.7978846, %v1499_v13  ;;  %v1748_v38 = vmul.f32 %v1684_v28, %v1236_v41 }
 0x31d   : > { %v3094_v10 = vpop.eup %3093  ;;  %v1752_v61 = vmul.f32 %v1688_v48, %v1240_v36  ;;  %v1685_v19 = vadd.f32 1.0, %v3092_v11  ;;  %3105 = vtanh.f32 %v1561_v2  ;;  %v1246_v45 = vmul.f32 0.5, %v4164_v58 }
 0x31e   : > { %v3096_v5 = vpop.eup %3095  ;;  %v1745_v7 = vmul.f32 %v1681_v42, %v1233_v20  ;;  %v1683_v49 = vadd.f32 1.0, %v3094_v10  ;;  %3107 = vtanh.f32 %v1565_v14  ;;  %v1567_v35 = vmul.f32 0.7978846, %v1503_v0 }
 0x31f   : > { %v1812_v26 = vpack.c.bf16 %v1752_v61, %v1748_v38  ;;  %v1749_v6 = vmul.f32 %v1685_v19, %v1237_v1  ;;  %v1687_v44 = vadd.f32 1.0, %v3096_v5  ;;  %3109 = vtanh.f32 %v1563_v30  ;;  %v4733_v19 = vld [vmem:[#allocation20_spill] sm:$0xff] }
 0x320   : > { %v1244_v27 = vmul.f32 0.5, %v4075_v53  ;;  %3111 = vtanh.f32 %v1567_v35  ;;  %v1506_v41 = vadd.f32 %v4253_v16, %v4192_v47  ;;  %v1747_v29 = vmul.f32 %v1683_v49, %v1235_v46 }
 0x321   : > { %v3098_v36 = vpop.eup %3097  ;;  %2242 = vmatprep.mubr.bf16.mxu1 %v1812_v26  ;;  %v1809_v28 = vpack.c.bf16 %v1749_v6, %v1745_v7  ;;  %v1751_v20 = vmul.f32 %v1687_v44, %v1239_v31  ;;  %v1510_v13 = vadd.f32 %v4315_v32, %v4265_v63  ;;  %v1248_v48 = vmul.f32 0.5, %v4168_v62 }
 0x322   : > { %v3100_v34 = vpop.eup %3099  ;;  %v1690_v1 = vadd.f32 1.0, %v3098_v36  ;;  %v1570_v2 = vmul.f32 0.7978846, %v1506_v41  ;;  %v1508_v53 = vadd.f32 %v4256_v54, %v4199_v57  ;;  %v1512_v11 = vadd.f32 %v4323_v37, %v4269_v56  ;;  %v4735_v36 = vld [vmem:[#allocation9_spill] sm:$0xff] }
 0x323   : > { %2146 = vmatmul.mubr.bf16.gmra.mrb[48].mxu0 %v1809_v28  ;;  %v1811_v58 = vpack.c.bf16 %v1751_v20, %v1747_v29  ;;  %v1694_v14 = vadd.f32 1.0, %v3100_v34  ;;  %v1574_v16 = vmul.f32 0.7978846, %v1510_v13  ;;  %v3102_v46 = vpop.eup %3101  ;;  %v1241_v42 = vmul.f32 0.5, %v4724_v12  ;;  %v4732_v12 = vld [vmem:[#allocation6_spill] sm:$0xff] }
 0x324   : > { %v1754_v31 = vmul.f32 %v1690_v1, %v1242_v24  ;;  %3113 = vtanh.f32 %v1570_v2  ;;  %v1572_v32 = vmul.f32 0.7978846, %v1508_v53  ;;  %v3104_v51 = vpop.eup %3103  ;;  %v1692_v0 = vadd.f32 1.0, %v3102_v46 }
 0x325   : > { %2243 = vmatmul.mubr.bf16.gmra.mrb[48].mxu1 %v1811_v58  ;;  %v1758_v62 = vmul.f32 %v1694_v14, %v1246_v45  ;;  %3115 = vtanh.f32 %v1574_v16  ;;  %v1576_v30 = vmul.f32 0.7978846, %v1512_v11  ;;  %v1696_v54 = vadd.f32 1.0, %v3104_v51 }
 0x326   : > { %v1245_v10 = vmul.f32 0.5, %v4726_v18  ;;  %3117 = vtanh.f32 %v1572_v32  ;;  %v1505_v38 = vadd.f32 %v4247_v8, %v4178_v3  ;;  %v1243_v24 = vmul.f32 0.5, %v4728_v4  ;;  %v4734_v8 = vld [vmem:[#allocation5_spill] sm:$0xff] }
 0x327   : > { %v3106_v37 = vpop.eup %3105  ;;  %v1814_v61 = vpack.c.bf16 %v1758_v62, %v1754_v31  ;;  %3119 = vtanh.f32 %v1576_v30  ;;  %v1509_v5 = vadd.f32 %v4733_v19, %v4732_v12  ;;  %v1756_v49 = vmul.f32 %v1692_v0, %v1244_v27  ;;  %v4736_v27 = vld [vmem:[#allocation15_spill] sm:$0xff] }
 0x328   : > { %v3108_v7 = vpop.eup %3107  ;;  %v1760_v35 = vmul.f32 %v1696_v54, %v1248_v48  ;;  %v1689_v26 = vadd.f32 1.0, %v3106_v37  ;;  %v1569_v6 = vmul.f32 0.7978846, %v1505_v38  ;;  %v1247_v45 = vmul.f32 0.5, %v4730_v40  ;;  %v4737_v48 = vld [vmem:[#allocation13_spill] sm:$0xff] }
 0x329   : > { %v3110_v44 = vpop.eup %3109  ;;  %2153 = vmatprep.mubr.bf16.mxu0 %v1814_v61  ;;  %v1693_v18 = vadd.f32 1.0, %v3108_v7  ;;  %v1573_v41 = vmul.f32 0.7978846, %v1509_v5  ;;  %v1507_v28 = vadd.f32 %v4735_v36, %v4734_v8  ;;  %v1511_v2 = vadd.f32 %v4737_v48, %v4736_v27 }
 0x32a   : > { %v3112_v29 = vpop.eup %3111  ;;  %v1816_v4 = vpack.c.bf16 %v1760_v35, %v1756_v49  ;;  %v1753_v20 = vmul.f32 %v1689_v26, %v1241_v42  ;;  %v1691_v13 = vadd.f32 1.0, %v3110_v44  ;;  %3121 = vtanh.f32 %v1569_v6 }
 0x32b   : > { %v1757_v34 = vmul.f32 %v1693_v18, %v1245_v10  ;;  %v1695_v1 = vadd.f32 1.0, %v3112_v29  ;;  %3123 = vtanh.f32 %v1573_v41  ;;  %v1456_v53 = vmul.f32 %v4406_v22, %v4380_v39 }
 0x32c   : > { %2250 = vmatprep.mubr.bf16.mxu1 %v1816_v4  ;;  %v1755_v40 = vmul.f32 %v1691_v13, %v1243_v24  ;;  %v1250_v58 = vmul.f32 0.5, %v4192_v47  ;;  %v1571_v14 = vmul.f32 0.7978846, %v1507_v28  ;;  %v1575_v46 = vmul.f32 0.7978846, %v1511_v2 }
 0x32d   : > { %v1813_v16 = vpack.c.bf16 %v1757_v34, %v1753_v20  ;;  %v1759_v11 = vmul.f32 %v1695_v1, %v1247_v45  ;;  %v1514_v31 = vadd.f32 %v4351_v23, %v4295_v9  ;;  %v1254_v32 = vmul.f32 0.5, %v4265_v63 }
 0x32e   : > { %v3114_v42 = vpop.eup %3113  ;;  %v1252_v51 = vmul.f32 0.5, %v4199_v57  ;;  %3125 = vtanh.f32 %v1571_v14  ;;  %v1518_v22 = vadd.f32 %v4409_v33, %v4370_v43  ;;  %v1516_v23 = vadd.f32 %v4355_v17, %v4305_v55 }
 0x32f   : > { %v3116_v62 = vpop.eup %3115  ;;  %2154 = vmatmul.mubr.bf16.gmra.mrb[52].mxu0 %v1813_v16  ;;  %v1815_v0 = vpack.c.bf16 %v1759_v11, %v1755_v40  ;;  %v1698_v47 = vadd.f32 1.0, %v3114_v42  ;;  %3127 = vtanh.f32 %v1575_v46  ;;  %v1578_v30 = vmul.f32 0.7978846, %v1514_v31 }
 0x330   : > { %v3118_v54 = vpop.eup %3117  ;;  %v1702_v10 = vadd.f32 1.0, %v3116_v62  ;;  %v1582_v38 = vmul.f32 0.7978846, %v1518_v22  ;;  %v1520_v63 = vadd.f32 %v1456_v53, %v4380_v39  ;;  %v1256_v61 = vmul.f32 0.5, %v4269_v56 }
 0x331   : > { %v3120_v37 = vpop.eup %3119  ;;  %2251 = vmatmul.mubr.bf16.gmra.mrb[52].mxu1 %v1815_v0  ;;  %v1762_v57 = vmul.f32 %v1698_v47, %v1250_v58  ;;  %v1700_v33 = vadd.f32 1.0, %v3118_v54  ;;  %3129 = vtanh.f32 %v1578_v30  ;;  %v1580_v5 = vmul.f32 0.7978846, %v1516_v23 }
 0x332   : > { %v1766_v24 = vmul.f32 %v1702_v10, %v1254_v32  ;;  %v1704_v19 = vadd.f32 1.0, %v3120_v37  ;;  %3131 = vtanh.f32 %v1582_v38  ;;  %v1455_v7 = vmul.f32 %v4387_v52, %v4346_v59 }
 0x333   : > { %v1764_v49 = vmul.f32 %v1700_v33, %v1252_v51  ;;  %v1584_v35 = vmul.f32 0.7978846, %v1520_v63  ;;  %v1513_v17 = vadd.f32 %v4330_v25, %v4275_v21  ;;  %3133 = vtanh.f32 %v1580_v5  ;;  %v4738_v25 = vld [vmem:[#allocation27_spill] sm:$0xff] }
 0x334   : > { %v3122_v26 = vpop.eup %3121  ;;  %v1818_v6 = vpack.c.bf16 %v1766_v24, %v1762_v57  ;;  %v1768_v44 = vmul.f32 %v1704_v19, %v1256_v61  ;;  %v1517_v56 = vadd.f32 %v4383_v50, %v4327_v60  ;;  %v1249_v45 = vmul.f32 0.5, %v4178_v3 }
 0x335   : > { %v3124_v18 = vpop.eup %3123  ;;  %v1697_v41 = vadd.f32 1.0, %v3122_v26  ;;  %3135 = vtanh.f32 %v1584_v35  ;;  %v1577_v36 = vmul.f32 0.7978846, %v1513_v17  ;;  %v1253_v28 = vmul.f32 0.5, %v4732_v12 }
 0x336   : > { %2161 = vmatprep.mubr.bf16.mxu0 %v1818_v6  ;;  %v1820_v52 = vpack.c.bf16 %v1768_v44, %v1764_v49  ;;  %v1701_v29 = vadd.f32 1.0, %v3124_v18  ;;  %v1581_v4 = vmul.f32 0.7978846, %v1517_v56  ;;  %v1515_v20 = vadd.f32 %v4738_v25, %v4279_v15 }
 0x337   : > { %3137 = vtanh.f32 %v1577_v36  ;;  %v1519_v13 = vadd.f32 %v1455_v7, %v4346_v59  ;;  %v1761_v50 = vmul.f32 %v1697_v41, %v1249_v45  ;;  %v1251_v12 = vmul.f32 0.5, %v4734_v8 }
 0x338   : > { %v3126_v34 = vpop.eup %3125  ;;  %2258 = vmatprep.mubr.bf16.mxu1 %v1820_v52  ;;  %v1765_v1 = vmul.f32 %v1701_v29, %v1253_v28  ;;  %3139 = vtanh.f32 %v1581_v4  ;;  %v1579_v2 = vmul.f32 0.7978846, %v1515_v20  ;;  %v1255_v58 = vmul.f32 0.5, %v4736_v27  ;;  %v1777_v20 = vld [vmem:[#allocation2] sm:$0xff] }
 0x339   : > { %v3128_v3 = vpop.eup %3127  ;;  %v1699_v48 = vadd.f32 1.0, %v3126_v34  ;;  %v1583_v53 = vmul.f32 0.7978846, %v1519_v13  ;;  %v1258_v32 = vmul.f32 0.5, %v4295_v9  ;;  %v1262_v51 = vmul.f32 0.5, %v4370_v43  ;;  %v1778_v34 = vld [vmem:[#allocation2 + $0x8] sm:$0xff] }
 0x33a   : > { %v1817_v40 = vpack.c.bf16 %v1765_v1, %v1761_v50  ;;  %v1703_v14 = vadd.f32 1.0, %v3128_v3  ;;  %3141 = vtanh.f32 %v1579_v2  ;;  %v1260_v54 = vmul.f32 0.5, %v4305_v55 }
 0x33b   : > { %v3130_v16 = vpop.eup %3129  ;;  %v1763_v46 = vmul.f32 %v1699_v48, %v1251_v12  ;;  %3143 = vtanh.f32 %v1583_v53  ;;  %v1264_v10 = vmul.f32 0.5, %v4380_v39  ;;  %v1257_v43 = vmul.f32 0.5, %v4275_v21 }
 0x33c   : > { %v3132_v11 = vpop.eup %3131  ;;  %2162 = vmatmul.mubr.bf16.gmra.mrb[56].mxu0 %v1817_v40  ;;  %v1767_v31 = vmul.f32 %v1703_v14, %v1255_v58  ;;  %v1706_v42 = vadd.f32 1.0, %v3130_v16  ;;  %v1261_v33 = vmul.f32 0.5, %v4327_v60  ;;  %v1259_v17 = vmul.f32 0.5, %v4279_v15 }
 0x33d   : > { %v1710_v22 = vadd.f32 1.0, %v3132_v11  ;;  %v3134_v62 = vpop.eup %3133  ;;  %v1263_v26 = vmul.f32 0.5, %v4346_v59 }
 0x33e   : > { %v1819_v0 = vpack.c.bf16 %v1767_v31, %v1763_v46  ;;  %v1770_v8 = vmul.f32 %v1706_v42, %v1258_v32  ;;  %v1708_v27 = vadd.f32 1.0, %v3134_v62  ;;  %v1779_v31 = vld [vmem:[#allocation2 + $0x10] sm:$0xff] }
 0x33f   : > { %v3136_v47 = vpop.eup %3135  ;;  %v1774_v30 = vmul.f32 %v1710_v22, %v1262_v51  ;;  %v1780_v22 = vld [vmem:[#allocation2 + $0x18] sm:$0xff] }
 0x340   : > { %2259 = vmatmul.mubr.bf16.gmra.mrb[56].mxu1 %v1819_v0  ;;  %v1712_v38 = vadd.f32 1.0, %v3136_v47  ;;  %v1772_v57 = vmul.f32 %v1708_v27, %v1260_v54 }
 0x341   : > { %v3138_v23 = vpop.eup %3137  ;;  %v1822_v63 = vpack.c.bf16 %v1774_v30, %v1770_v8 }
 0x342   : > { %v3140_v37 = vpop.eup %3139  ;;  %v1776_v9 = vmul.f32 %v1712_v38, %v1264_v10  ;;  %v1705_v61 = vadd.f32 1.0, %v3138_v23 }
 0x343   : > { %2169 = vmatprep.mubr.bf16.mxu0 %v1822_v63  ;;  %v1709_v24 = vadd.f32 1.0, %v3140_v37 }
 0x344   : > { %v1824_v19 = vpack.c.bf16 %v1776_v9, %v1772_v57  ;;  %v3142_v5 = vpop.eup %3141  ;;  %v1769_v7 = vmul.f32 %v1705_v61, %v1257_v43  ;;  %v1781_v9 = vld [vmem:[#allocation2 + $0x20] sm:$0xff] }
 0x345   : > { %v1773_v49 = vmul.f32 %v1709_v24, %v1261_v33  ;;  %v3144_v55 = vpop.eup %3143  ;;  %v1707_v39 = vadd.f32 1.0, %v3142_v5  ;;  %v1782_v24 = vld [vmem:[#allocation2 + $0x28] sm:$0xff] }
 0x346   : > { %2266 = vmatprep.mubr.bf16.mxu1 %v1824_v19  ;;  %v1711_v6 = vadd.f32 1.0, %v3144_v55 }
 0x347   : > { %v1821_v35 = vpack.c.bf16 %v1773_v49, %v1769_v7  ;;  %v1771_v44 = vmul.f32 %v1707_v39, %v1259_v17 }
 0x348   : > { %v1775_v56 = vmul.f32 %v1711_v6, %v1263_v26 }
 0x349   : > { %2170 = vmatmul.mubr.bf16.gmra.mrb[60].mxu0 %v1821_v35 }
 0x34a   : > { %v1823_v21 = vpack.c.bf16 %v1775_v56, %v1771_v44 }
 0x34c   : > { %2267 = vmatmul.mubr.bf16.gmra.mrb[60].mxu1 %v1823_v21 }
 0x3a9   : > { %v2736_v60 = vpop.f32.mrb[32].mxu0 }
 0x3aa   : > { %v2737_v18 = vpop.f32.mrb[33].mxu0 }
 0x3ab   : > { %v2738_v41 = vadd.f32 %v2737_v18, %v2736_v60  ;;  %v2739_v36 = vpop.f32.mrb[34].mxu0  ;;  %v1783_v60 = vld [vmem:[#allocation2 + $0x30] sm:$0xff] }
 0x3ac   : > { %v2800_v45 = vpop.f32.mrb[32].mxu1  ;;  %v2740_v28 = vpop.f32.mrb[35].mxu0 }
 0x3ad   : > { %v2801_v52 = vpop.f32.mrb[33].mxu1  ;;  %v2741_v25 = vadd.f32 %v2740_v28, %v2739_v36  ;;  %v1784_v36 = vld [vmem:[#allocation2 + $0x38] sm:$0xff] }
 0x3ae   : > { %v2802_v29 = vadd.f32 %v2801_v52, %v2800_v45  ;;  %v2803_v4 = vpop.f32.mrb[34].mxu1 }
 0x3af   : > { %v2804_v15 = vpop.f32.mrb[35].mxu1 }
 0x3b0   : > { %v2213_v13 = vadd.f32 %v2802_v29, %v2738_v41  ;;  %v2805_v59 = vadd.f32 %v2804_v15, %v2803_v4 }
 0x3b2   : > { %v2275_v50 = vadd.f32 %v2213_v13, %v1777_v20  ;;  %v2216_v1 = vadd.f32 %v2805_v59, %v2741_v25 }
 0x3b4   : > { %2291 = vst [vmem:[#allocation2] sm:$0xff] %v2275_v50  ;;  %v2276_v3 = vadd.f32 %v2216_v1, %v1778_v34 }
 0x3b6   : > { %2292 = vst [vmem:[#allocation2 + $0x8] sm:$0xff] %v2276_v3 }
 0x3be   : > { %v2742_v48 = vpop.f32.mrb[36].mxu0 }
 0x3bf   : > { %v2743_v2 = vpop.f32.mrb[37].mxu0 }
 0x3c0   : > { %v2744_v53 = vadd.f32 %v2743_v2, %v2742_v48  ;;  %v2745_v40 = vpop.f32.mrb[38].mxu0  ;;  %v1785_v48 = vld [vmem:[#allocation2 + $0x40] sm:$0xff] }
 0x3c1   : > { %v2806_v12 = vpop.f32.mrb[36].mxu1  ;;  %v2746_v58 = vpop.f32.mrb[39].mxu0 }
 0x3c2   : > { %v2807_v14 = vpop.f32.mrb[37].mxu1  ;;  %v2747_v16 = vadd.f32 %v2746_v58, %v2745_v40 }
 0x3c3   : > { %v2808_v11 = vadd.f32 %v2807_v14, %v2806_v12  ;;  %v2809_v46 = vpop.f32.mrb[38].mxu1  ;;  %v1786_v12 = vld [vmem:[#allocation2 + $0x48] sm:$0xff] }
 0x3c4   : > { %v2810_v42 = vpop.f32.mrb[39].mxu1 }
 0x3c5   : > { %v2221_v32 = vadd.f32 %v2808_v11, %v2744_v53  ;;  %v2811_v51 = vadd.f32 %v2810_v42, %v2809_v46 }
 0x3c7   : > { %v2277_v62 = vadd.f32 %v2221_v32, %v1779_v31  ;;  %v2224_v0 = vadd.f32 %v2811_v51, %v2747_v16 }
 0x3c9   : > { %2293 = vst [vmem:[#allocation2 + $0x10] sm:$0xff] %v2277_v62  ;;  %v2278_v47 = vadd.f32 %v2224_v0, %v1780_v22 }
 0x3cb   : > { %2294 = vst [vmem:[#allocation2 + $0x18] sm:$0xff] %v2278_v47 }
 0x3d4   : > { %v2748_v8 = vpop.f32.mrb[40].mxu0 }
 0x3d5   : > { %v2749_v30 = vpop.f32.mrb[41].mxu0 }
 0x3d6   : > { %v2812_v27 = vpop.f32.mrb[40].mxu1  ;;  %v2750_v54 = vadd.f32 %v2749_v30, %v2748_v8  ;;  %v2751_v10 = vpop.f32.mrb[42].mxu0  ;;  %v1787_v8 = vld [vmem:[#allocation2 + $0x50] sm:$0xff] }
 0x3d7   : > { %v2813_v38 = vpop.f32.mrb[41].mxu1  ;;  %v2752_v23 = vpop.f32.mrb[43].mxu0 }
 0x3d8   : > { %v2814_v63 = vadd.f32 %v2813_v38, %v2812_v27  ;;  %v2815_v37 = vpop.f32.mrb[42].mxu1  ;;  %v2753_v57 = vadd.f32 %v2752_v23, %v2751_v10  ;;  %v1788_v10 = vld [vmem:[#allocation2 + $0x58] sm:$0xff] }
 0x3d9   : > { %v2816_v61 = vpop.f32.mrb[43].mxu1 }
 0x3da   : > { %v2229_v43 = vadd.f32 %v2814_v63, %v2750_v54  ;;  %v2817_v33 = vadd.f32 %v2816_v61, %v2815_v37 }
 0x3dc   : > { %v2279_v19 = vadd.f32 %v2229_v43, %v1781_v9  ;;  %v2232_v5 = vadd.f32 %v2817_v33, %v2753_v57 }
 0x3de   : > { %2295 = vst [vmem:[#allocation2 + $0x20] sm:$0xff] %v2279_v19  ;;  %v2280_v7 = vadd.f32 %v2232_v5, %v1782_v24 }
 0x3e0   : > { %2296 = vst [vmem:[#allocation2 + $0x28] sm:$0xff] %v2280_v7 }
 0x3e9   : > { %v2754_v49 = vpop.f32.mrb[44].mxu0 }
 0x3ea   : > { %v2755_v55 = vpop.f32.mrb[45].mxu0 }
 0x3eb   : > { %v2818_v39 = vpop.f32.mrb[44].mxu1  ;;  %v2756_v35 = vadd.f32 %v2755_v55, %v2754_v49  ;;  %v2757_v17 = vpop.f32.mrb[46].mxu0  ;;  %v1789_v49 = vld [vmem:[#allocation2 + $0x60] sm:$0xff] }
 0x3ec   : > { %v2819_v26 = vpop.f32.mrb[45].mxu1  ;;  %v2758_v6 = vpop.f32.mrb[47].mxu0 }
 0x3ed   : > { %v2820_v44 = vadd.f32 %v2819_v26, %v2818_v39  ;;  %v2821_v56 = vpop.f32.mrb[46].mxu1  ;;  %v2759_v21 = vadd.f32 %v2758_v6, %v2757_v17  ;;  %v1790_v17 = vld [vmem:[#allocation2 + $0x68] sm:$0xff] }
 0x3ee   : > { %v2822_v18 = vpop.f32.mrb[47].mxu1 }
 0x3ef   : > { %v2237_v45 = vadd.f32 %v2820_v44, %v2756_v35  ;;  %v2823_v41 = vadd.f32 %v2822_v18, %v2821_v56 }
 0x3f1   : > { %v2281_v52 = vadd.f32 %v2237_v45, %v1783_v60  ;;  %v2240_v28 = vadd.f32 %v2823_v41, %v2759_v21 }
 0x3f3   : > { %2297 = vst [vmem:[#allocation2 + $0x30] sm:$0xff] %v2281_v52  ;;  %v2282_v29 = vadd.f32 %v2240_v28, %v1784_v36 }
 0x3f5   : > { %2298 = vst [vmem:[#allocation2 + $0x38] sm:$0xff] %v2282_v29 }
 0x3f6   : > { %v2760_v4 = vpop.f32.mrb[48].mxu0 }
 0x3f7   : > { %v2761_v25 = vpop.f32.mrb[49].mxu0 }
 0x3f8   : > { %v2824_v20 = vpop.f32.mrb[48].mxu1  ;;  %v2762_v15 = vadd.f32 %v2761_v25, %v2760_v4  ;;  %v2763_v13 = vpop.f32.mrb[50].mxu0  ;;  %v1791_v4 = vld [vmem:[#allocation2 + $0x70] sm:$0xff] }
 0x3f9   : > { %v2825_v59 = vpop.f32.mrb[49].mxu1  ;;  %v2764_v34 = vpop.f32.mrb[51].mxu0 }
 0x3fa   : > { %v2826_v50 = vadd.f32 %v2825_v59, %v2824_v20  ;;  %v2827_v1 = vpop.f32.mrb[50].mxu1  ;;  %v2765_v3 = vadd.f32 %v2764_v34, %v2763_v13  ;;  %v1792_v13 = vld [vmem:[#allocation2 + $0x78] sm:$0xff] }
 0x3fb   : > { %v2828_v2 = vpop.f32.mrb[51].mxu1 }
 0x3fc   : > { %v2245_v53 = vadd.f32 %v2826_v50, %v2762_v15  ;;  %v2829_v40 = vadd.f32 %v2828_v2, %v2827_v1  ;;  %v2311_v1 = vld [vmem:[#allocation2] sm:$0xff] (!%p2598_p0) }
 0x3fe   : > { %v2283_v58 = vadd.f32 %v2245_v53, %v1785_v48  ;;  %v2248_v14 = vadd.f32 %v2829_v40, %v2765_v3  ;;  %v2312_v3 = vld [vmem:[#allocation2 + $0x8] sm:$0xff] (!%p2598_p0)  ;;  %v2313_v48 = vld [vmem:[#allocation2 + $0x10] sm:$0xff] (!%p2598_p0)  ;;  %v2314_v53 = vld [vmem:[#allocation2 + $0x18] sm:$0xff] (!%p2598_p0) }
 0x3ff   : > { %v2669_v2 = vpack.c.bf16 (!%p2598_p0), %v2312_v3, %v2311_v1  ;;  %v2315_v40 = vld [vmem:[#allocation2 + $0x20] sm:$0xff] (!%p2598_p0) }
 0x400   : > { %2299 = vst [vmem:[#allocation2 + $0x40] sm:$0xff] %v2283_v58  ;;  %v2284_v16 = vadd.f32 %v2248_v14, %v1786_v12  ;;  %v2316_v12 = vld [vmem:[#allocation2 + $0x28] sm:$0xff] (!%p2598_p0)  ;;  %v2674_v58 = vpack.c.bf16 (!%p2598_p0), %v2314_v53, %v2313_v48 }
 0x401   : > { %v2679_v14 = vpack.c.bf16 (!%p2598_p0), %v2316_v12, %v2315_v40  ;;  %2670 = vst [vmem:[%s3381_s18] sm:$0xff] (!%p2598_p0), %v2669_v2  }
 0x402   : > { %2300 = vst [vmem:[#allocation2 + $0x48] sm:$0xff] %v2284_v16  ;;  %v2766_v11 = vpop.f32.mrb[52].mxu0  ;;  %v2317_v16 = vld [vmem:[#allocation2 + $0x30] sm:$0xff] (!%p2598_p0)  ;;  %2713 = vst [vmem:[%s3381_s18 + $0x8] sm:$0xff] (!%p2598_p0), %v2674_v58  }
 0x403   : > { %v2767_v46 = vpop.f32.mrb[53].mxu0  ;;  %2714 = vst [vmem:[%s3381_s18 + $0x10] sm:$0xff] (!%p2598_p0), %v2679_v14  }
 0x404   : > { %v2830_v31 = vpop.f32.mrb[52].mxu1  ;;  %v2768_v42 = vadd.f32 %v2767_v46, %v2766_v11  ;;  %v2769_v32 = vpop.f32.mrb[54].mxu0  ;;  %v2318_v11 = vld [vmem:[#allocation2 + $0x38] sm:$0xff] (!%p2598_p0) }
 0x405   : > { %v2831_v51 = vpop.f32.mrb[53].mxu1  ;;  %v2770_v22 = vpop.f32.mrb[55].mxu0 }
 0x406   : > { %v2832_v62 = vadd.f32 %v2831_v51, %v2830_v31  ;;  %v2833_v0 = vpop.f32.mrb[54].mxu1  ;;  %v2771_v47 = vadd.f32 %v2770_v22, %v2769_v32  ;;  %v2684_v31 = vpack.c.bf16 (!%p2598_p0), %v2318_v11, %v2317_v16 }
 0x407   : > { %v2834_v30 = vpop.f32.mrb[55].mxu1  ;;  %v2319_v46 = vld [vmem:[#allocation2 + $0x40] sm:$0xff] (!%p2598_p0) }
 0x408   : > { %v2253_v27 = vadd.f32 %v2832_v62, %v2768_v42  ;;  %v2835_v54 = vadd.f32 %v2834_v30, %v2833_v0  ;;  %2715 = vst [vmem:[%s3381_s18 + $0x18] sm:$0xff] (!%p2598_p0), %v2684_v31  }
 0x409   : > { %v2320_v42 = vld [vmem:[#allocation2 + $0x48] sm:$0xff] (!%p2598_p0) }
 0x40a   : > { %v2285_v38 = vadd.f32 %v2253_v27, %v1787_v8  ;;  %v2256_v23 = vadd.f32 %v2835_v54, %v2771_v47  ;;  %v2689_v22 = vpack.c.bf16 (!%p2598_p0), %v2320_v42, %v2319_v46 }
 0x40c   : > { %2301 = vst [vmem:[#allocation2 + $0x50] sm:$0xff] %v2285_v38  ;;  %v2286_v63 = vadd.f32 %v2256_v23, %v1788_v10  ;;  %2716 = vst [vmem:[%s3381_s18 + $0x20] sm:$0xff] (!%p2598_p0), %v2689_v22  }
 0x40e   : > { %2302 = vst [vmem:[#allocation2 + $0x58] sm:$0xff] %v2286_v63 }
 0x40f   : > { %v2772_v37 = vpop.f32.mrb[56].mxu0 }
 0x410   : > { %v2773_v57 = vpop.f32.mrb[57].mxu0 }
 0x411   : > { %v2774_v9 = vadd.f32 %v2773_v57, %v2772_v37  ;;  %v2775_v61 = vpop.f32.mrb[58].mxu0 }
 0x412   : > { %v2776_v43 = vpop.f32.mrb[59].mxu0 }
 0x413   : > { %v2836_v33 = vpop.f32.mrb[56].mxu1  ;;  %v2777_v24 = vadd.f32 %v2776_v43, %v2775_v61  ;;  %v2321_v32 = vld [vmem:[#allocation2 + $0x50] sm:$0xff] (!%p2598_p0) }
 0x414   : > { %v2837_v19 = vpop.f32.mrb[57].mxu1 }
 0x415   : > { %v2838_v5 = vadd.f32 %v2837_v19, %v2836_v33  ;;  %v2839_v7 = vpop.f32.mrb[58].mxu1  ;;  %v2322_v51 = vld [vmem:[#allocation2 + $0x58] sm:$0xff] (!%p2598_p0) }
 0x416   : > { %v2840_v55 = vpop.f32.mrb[59].mxu1  ;;  %v2694_v62 = vpack.c.bf16 (!%p2598_p0), %v2322_v51, %v2321_v32 }
 0x417   : > { %v2261_v39 = vadd.f32 %v2838_v5, %v2774_v9  ;;  %v2841_v35 = vadd.f32 %v2840_v55, %v2839_v7 }
 0x418   : > { %2717 = vst [vmem:[%s3381_s18 + $0x28] sm:$0xff] (!%p2598_p0), %v2694_v62  }
 0x419   : > { %v2287_v26 = vadd.f32 %v2261_v39, %v1789_v49  ;;  %v2264_v6 = vadd.f32 %v2841_v35, %v2777_v24 }
 0x41b   : > { %2303 = vst [vmem:[#allocation2 + $0x60] sm:$0xff] %v2287_v26  ;;  %v2288_v44 = vadd.f32 %v2264_v6, %v1790_v17 }
 0x41c   : > { %v2778_v56 = vpop.f32.mrb[60].mxu0 }
 0x41d   : > { %2304 = vst [vmem:[#allocation2 + $0x68] sm:$0xff] %v2288_v44  ;;  %v2779_v21 = vpop.f32.mrb[61].mxu0 }
 0x41e   : > { %v2780_v60 = vadd.f32 %v2779_v21, %v2778_v56  ;;  %v2781_v18 = vpop.f32.mrb[62].mxu0 }
 0x41f   : > { %v2782_v45 = vpop.f32.mrb[63].mxu0  ;;  %v2842_v41 = vpop.f32.mrb[60].mxu1 }
 0x420   : > { %v2783_v36 = vadd.f32 %v2782_v45, %v2781_v18  ;;  %v2843_v52 = vpop.f32.mrb[61].mxu1 }
 0x421   : > { %v2844_v28 = vadd.f32 %v2843_v52, %v2842_v41  ;;  %v2845_v29 = vpop.f32.mrb[62].mxu1 }
 0x422   : > { %v2846_v25 = vpop.f32.mrb[63].mxu1  ;;  %v2323_v0 = vld [vmem:[#allocation2 + $0x60] sm:$0xff] (!%p2598_p0) }
 0x423   : > { %v2269_v20 = vadd.f32 %v2844_v28, %v2780_v60  ;;  %v2847_v15 = vadd.f32 %v2846_v25, %v2845_v29  ;;  %2310 = sbr.rel (%p2598_p0) target bundleno = 1076 (0x434), region = 79 }
 0x424   : > { %v2324_v47 = vld [vmem:[#allocation2 + $0x68] sm:$0xff] (!%p2598_p0) }
 0x425   : > { %v2289_v59 = vadd.f32 %v2269_v20, %v1791_v4  ;;  %v2272_v34 = vadd.f32 %v2847_v15, %v2783_v36  ;;  %v2699_v30 = vpack.c.bf16 (!%p2598_p0), %v2324_v47, %v2323_v0 }
 0x427   : > { %2305 = vst [vmem:[#allocation2 + $0x70] sm:$0xff] %v2289_v59  ;;  %v2290_v50 = vadd.f32 %v2272_v34, %v1792_v13  ;;  %2718 = vst [vmem:[%s3381_s18 + $0x30] sm:$0xff] (!%p2598_p0), %v2699_v30  }
 0x429   : > { %2306 = vst [vmem:[#allocation2 + $0x78] sm:$0xff] %v2290_v50 }
 0x42e   : > { %v2325_v8 = vld [vmem:[#allocation2 + $0x70] sm:$0xff] }
 0x430   : > { %v2326_v27 = vld [vmem:[#allocation2 + $0x78] sm:$0xff] }
 0x431   : > { %v2704_v54 = vpack.c.bf16 %v2326_v27, %v2325_v8 }
 0x433   : > { %2719 = vst [vmem:[%s3381_s18 + $0x38] sm:$0xff] %v2704_v54  }
 0x434 PF: > { %s17_s30 = sadd.s32 1, %s3199_s30   ;;  %s4739_s24 = smov %s3179_s25 }
 0x435   : > { %p14_p1 = scmp.ge.s32.totalorder %s17_s30, 6   ;;  %s4740_s25 = smov %s3291_s12 }
 0x436   : > { %s4741_s26 = smov %s3191_s28  ;;  %s4742_s27 = smov %s3195_s29 }
 0x437   : > { %s4743_s28 = smov %s4746_s8  ;;  %s4744_s29 = smov %s4750_s9 }
 0x438   :  { %16 = sbr.rel (!%p14_p1) target bundleno = 6 (0x6), region = 123 }

</bundles_post_ra>
